<compile_context>
chip_gen: v7x
topology: tpu7x:2x2x1
jax: 0.10.0
libtpu: 0.0.40
codegen_flags: <defaults>
</compile_context>

<pallas_src>
import functools

import jax
import jax.numpy as jnp
import numpy as np
from jax import lax
from jax.experimental import pallas as pl
from jax.experimental.pallas import tpu as pltpu

BN_EPS = 1e-5
K_CONV = 7       # kernel_size of conv1..conv3
STRIDE = 3       # stride of conv1..conv3
K4 = 35          # kernel_size of conv4


def _conv_len(l, k, s):
    return (l - k) // s + 1


# ----------------------------- fused Pallas kernel ---------------------------

def fused_forward_kernel(x_ref, w1_ref, sh1_ref, w2_ref, sh2_ref,
                         w3_ref, sh3_ref, w4p_ref, b4_ref, o_ref,
                         h1_ref, h2_ref, *, n1, n2, l3):
    """One batch element per grid step (grid axis 0 = batch, "parallel").

    Layouts (channels on sublanes, time on lanes; time phase-split so every
    stride-3 tap read is a dense contiguous lane slice):
      x_ref  : (27, n1+1)  27-phase split input:  x_ref[r, m]   = x[27*m + r]
      h1_ref : (9, 4, n1)  9-phase split layer-1:  h1_ref[q,c,i] = y1[c, 9*i+q]
      h2_ref : (3, 8, n2)  3-phase split layer-2:  h2_ref[p,c,j] = y2[c, 3*j+p]
      w*_ref : (K, C_out, C_in) per-tap weights, BN scale folded into C_out
      sh*_ref: (C_out, 1)  folded conv-bias + BatchNorm shift
      w4p_ref: (16, l3)    conv4 x avg-pool folded weights
      b4_ref : (1, 1)      conv4 bias,   o_ref : (1, 1) pooled output
    """
    # hoisted loop-invariant loads
    sh1 = sh1_ref[...]                               # (4, 1)
    sh2 = sh2_ref[...]                               # (8, 1)
    sh3 = sh3_ref[...]                               # (16, 1)
    w1 = [w1_ref[k] for k in range(K_CONV)]          # 7 x (4, 1)
    w2 = [w2_ref[k] for k in range(K_CONV)]          # 7 x (8, 4)

    # -- layer 1: Conv1d(1->4, k=7, s=3) + BN + ReLU -> 9-phase-split output
    #    y1[c, 9i+q] = relu(sh1[c] + sum_k w1[k,c] * x[27i + 3q + k])
    for q in range(9):
        acc = jnp.zeros((4, n1), jnp.float32)
        for k in range(K_CONV):
            t = 3 * q + k
            xs = x_ref[t % 27:t % 27 + 1, t // 27:t // 27 + n1]    # (1, n1)
            acc = acc + w1[k] * xs                                 # (4,1)*(1,n1)
        h1_ref[q] = jnp.maximum(acc + sh1, 0.0)

    # -- layer 2: Conv1d(4->8, k=7, s=3) + BN + ReLU -> 3-phase-split output
    #    y2[c, 3j+p] = relu(sh2[c] + sum_{k,ci} w2[k,c,ci] * y1[ci, 9j+3p+k])
    for p in range(3):
        acc = jnp.zeros((8, n2), jnp.float32)
        for k in range(K_CONV):
            t = 3 * p + k
            xs = h1_ref[t % 9, :, t // 9:t // 9 + n2]              # (4, n2)
            for ci in range(4):
                acc = acc + w2[k][:, ci:ci + 1] * xs[ci:ci + 1, :]
        h2_ref[p] = jnp.maximum(acc + sh2, 0.0)

    # -- layer 3: Conv1d(8->16, k=7, s=3) + BN + ReLU -> dense (16, l3)
    acc3 = jnp.zeros((16, l3), jnp.float32)
    for k in range(K_CONV):
        xs = h2_ref[k % 3, :, k // 3:k // 3 + l3]                  # (8, l3)
        w3k = w3_ref[k]                                            # (16, 8)
        for ci in range(8):
            acc3 = acc3 + w3k[:, ci:ci + 1] * xs[ci:ci + 1, :]
    h3 = jnp.maximum(acc3 + sh3, 0.0)                              # (16, l3)

    # -- layer 4 (Conv1d(16->1, k=35, s=1)) + AdaptiveAvgPool1d(1), folded
    o_ref[...] = jnp.sum(h3 * w4p_ref[...], keepdims=True) + b4_ref[...]


# ----------------------------- host-side glue --------------------------------

def fold_bn(conv_bias, gamma, beta, mean, var):
    """Fold conv bias + inference BatchNorm into per-channel (scale, shift)."""
    s = gamma / jnp.sqrt(var + BN_EPS)
    return s, s * (conv_bias - mean) + beta


def pallas_forward(x, params):
    (W1, b1, g1, be1, m1, v1,
     W2, b2, g2, be2, m2, v2,
     W3, b3, g3, be3, m3, v3,
     W4, b4) = params

    B, _, L = x.shape
    l1 = _conv_len(L, K_CONV, STRIDE)
    l2 = _conv_len(l1, K_CONV, STRIDE)
    l3 = _conv_len(l2, K_CONV, STRIDE)
    l4 = l3 - K4 + 1
    assert l4 >= 1, "seq_len too short for conv4 (needs L3 >= 35)"

    s1, sh1 = fold_bn(b1, g1, be1, m1, v1)
    s2, sh2 = fold_bn(b2, g2, be2, m2, v2)
    s3, sh3 = fold_bn(b3, g3, be3, m3, v3)

    # weights -> (K, C_out, C_in), BN scale folded into the C_out axis
    w1r = jnp.transpose(W1, (2, 0, 1)) * s1[None, :, None]   # (7, 4, 1)
    w2r = jnp.transpose(W2, (2, 0, 1)) * s2[None, :, None]   # (7, 8, 4)
    w3r = jnp.transpose(W3, (2, 0, 1)) * s3[None, :, None]   # (7, 16, 8)

    # conv4 + AdaptiveAvgPool1d(1) fold -> w4pool (16, l3):
    #   pooled = b4 + sum_{c,s} y3[c,s] * w4pool[c,s]
    #   w4pool[c,s] = (1/l4) * sum_{k : 0 <= s-k <= l4-1} W4[0,c,k]
    s_idx = jnp.arange(l3)[:, None]
    k_idx = jnp.arange(K4)[None, :]
    mask = ((s_idx - k_idx >= 0) & (s_idx - k_idx <= l4 - 1)).astype(jnp.float32)
    w4pool = ((mask @ W4[0].T) / float(l4)).T                # (16, l3)

    # phase-split sizes (cover all in-kernel dense-slice reads; see kernel doc)
    n2 = l3 + 2            # per-phase length of 3-phase-split h2
    n1 = n2 + 1            # per-phase length of 9-phase-split h1
    n_x = n1 + 1           # per-phase length of 27-phase-split x
    pad = 27 * n_x - L
    assert pad >= 0
    x27 = jnp.pad(x[:, 0, :], ((0, 0), (0, pad)))            # (B, 27*n_x)
    x27 = jnp.transpose(x27.reshape(B, n_x, 27), (0, 2, 1))  # (B, 27, n_x)

    kernel = functools.partial(fused_forward_kernel, n1=n1, n2=n2, l3=l3)

    flops = 2 * B * (l1 * K_CONV * 4 + l2 * K_CONV * 4 * 8
                     + l3 * K_CONV * 8 * 16 + l3 * 16)
    bytes_accessed = 4 * (B * 27 * n_x + 7 * 4 + 7 * 8 * 4 + 7 * 16 * 8
                          + 4 + 8 + 16 + 16 * l3 + 1 + B)

    out = pl.pallas_call(
        kernel,
        out_shape=jax.ShapeDtypeStruct((B, 1, 1), jnp.float32),
        grid=(B,),
        in_specs=[
            pl.BlockSpec((None, 27, n_x), lambda b: (b, 0, 0)),   # x27 (per batch)
            pl.BlockSpec((K_CONV, 4, 1), lambda b: (0, 0, 0)),    # w1
            pl.BlockSpec((4, 1), lambda b: (0, 0)),               # sh1
            pl.BlockSpec((K_CONV, 8, 4), lambda b: (0, 0, 0)),    # w2
            pl.BlockSpec((8, 1), lambda b: (0, 0)),               # sh2
            pl.BlockSpec((K_CONV, 16, 8), lambda b: (0, 0, 0)),   # w3
            pl.BlockSpec((16, 1), lambda b: (0, 0)),              # sh3
            pl.BlockSpec((16, l3), lambda b: (0, 0)),             # w4pool
            pl.BlockSpec((1, 1), lambda b: (0, 0)),               # b4
        ],
        out_specs=pl.BlockSpec((None, 1, 1), lambda b: (b, 0, 0)),
        scratch_shapes=[pltpu.VMEM((9, 4, n1), jnp.float32),      # h1 (9-phase)
                        pltpu.VMEM((3, 8, n2), jnp.float32)],     # h2 (3-phase)
        compiler_params=pltpu.CompilerParams(
            dimension_semantics=("parallel",)),
        cost_estimate=pl.CostEstimate(flops=flops, transcendentals=0,
                                      bytes_accessed=bytes_accessed),
    )(x27, w1r, sh1.reshape(4, 1), w2r, sh2.reshape(8, 1),
      w3r, sh3.reshape(16, 1), w4pool, b4.reshape(1, 1))
    return out.reshape(B, 1)


# ----------------------------- pure-JAX reference ----------------------------

def ref_forward(x, params):
    (W1, b1, g1, be1, m1, v1,
     W2, b2, g2, be2, m2, v2,
     W3, b3, g3, be3, m3, v3,
     W4, b4) = params

    def conv(x, W, b, stride):
        y = lax.conv_general_dilated(x, W, window_strides=(stride,),
                                     padding='VALID',
                                     dimension_numbers=('NCH', 'OIH', 'NCH'))
        return y + b[None, :, None]

    def bn(x, g, be, m, v):
        return (g[None, :, None] * (x - m[None, :, None])
                / jnp.sqrt(v[None, :, None] + BN_EPS) + be[None, :, None])

    h = jax.nn.relu(bn(conv(x, W1, b1, 3), g1, be1, m1, v1))
    h = jax.nn.relu(bn(conv(h, W2, b2, 3), g2, be2, m2, v2))
    h = jax.nn.relu(bn(conv(h, W3, b3, 3), g3, be3, m3, v3))
    h = conv(h, W4, b4, 1)
    return jnp.mean(h, axis=-1)   # (B, 1)  == adaptive_avg_pool1d(1) + view


# ----------------------------- parameter init --------------------------------

def init_params(key):
    ks = jax.random.split(key, 7)

    def conv_init(k, c_out, c_in, ksz):
        kw, kb = jax.random.split(k)
        bound = 1.0 / float(np.sqrt(c_in * ksz))
        W = jax.random.uniform(kw, (c_out, c_in, ksz), jnp.float32, -bound, bound)
        b = jax.random.uniform(kb, (c_out,), jnp.float32, -bound, bound)
        return W, b

    def bn_init(k, c):
        k1, k2, k3, k4 = jax.random.split(k, 4)
        gamma = 1.0 + 0.1 * jax.random.normal(k1, (c,), jnp.float32)
        beta = 0.1 * jax.random.normal(k2, (c,), jnp.float32)
        mean = 0.1 * jax.random.normal(k3, (c,), jnp.float32)
        var = jax.random.uniform(k4, (c,), jnp.float32, 0.5, 1.5)
        return gamma, beta, mean, var

    W1, b1 = conv_init(ks[0], 4, 1, 7)
    g1, be1, m1, v1 = bn_init(ks[1], 4)
    W2, b2 = conv_init(ks[2], 8, 4, 7)
    g2, be2, m2, v2 = bn_init(ks[3], 8)
    W3, b3 = conv_init(ks[4], 16, 8, 7)
    g3, be3, m3, v3 = bn_init(ks[5], 16)
    W4, b4 = conv_init(ks[6], 1, 16, 35)

    return (W1, b1, g1, be1, m1, v1,
            W2, b2, g2, be2, m2, v2,
            W3, b3, g3, be3, m3, v3,
            W4, b4)


# ----------------------------------- main -------------------------------------

if __name__ == "__main__":
    key = jax.random.PRNGKey(0)
    kx, kp = jax.random.split(key)

    # seq_len=1000 is the smallest "nice" length: 1000 -> 332 -> 109 -> 35 -> 1.
    B, L = 2, 1000
    x = jax.random.normal(kx, (B, 1, L), jnp.float32)
    params = init_params(kp)

    out = jax.jit(pallas_forward)(x, params)
    out = jax.block_until_ready(out)

    ref = jax.block_until_ready(jax.jit(ref_forward)(x, params))

    assert out.shape == (B, 1), out.shape
    np.testing.assert_allclose(np.asarray(out), np.asarray(ref),
                               rtol=1e-3, atol=1e-3)

    print("KERNEL_OK")
</pallas_src>

<mosaic_0001>
module attributes {stable_mosaic.version = 11 : i64} {
  func.func @fused_forward_kernel(%arg0: i32, %arg1: memref<1x27x39xf32, #tpu.memory_space<vmem>>, %arg2: memref<7x4x1xf32, #tpu.memory_space<vmem>>, %arg3: memref<4x1xf32, #tpu.memory_space<vmem>>, %arg4: memref<7x8x4xf32, #tpu.memory_space<vmem>>, %arg5: memref<8x1xf32, #tpu.memory_space<vmem>>, %arg6: memref<7x16x8xf32, #tpu.memory_space<vmem>>, %arg7: memref<16x1xf32, #tpu.memory_space<vmem>>, %arg8: memref<16x35xf32, #tpu.memory_space<vmem>>, %arg9: memref<1x1xf32, #tpu.memory_space<vmem>>, %arg10: memref<1x1x1xf32, #tpu.memory_space<vmem>>, %arg11: memref<9x4x38xf32, #tpu.memory_space<vmem>>, %arg12: memref<3x8x37xf32, #tpu.memory_space<vmem>>) attributes {dimension_semantics = [#tpu.dimension_semantics<parallel>], iteration_bounds = array<i64: 2>, scalar_prefetch = 0 : i64, scratch_operands = 2 : i64, tpu.core_type = #tpu.core_type<tc>, window_params = [{transform_indices = @transform_0, window_bounds = array<i64: 1, 27, 39>}, {pipeline_mode = #tpu.pipeline_mode<synchronous>, transform_indices = @transform_1, window_bounds = array<i64: 7, 4, 1>}, {pipeline_mode = #tpu.pipeline_mode<synchronous>, transform_indices = @transform_2, window_bounds = array<i64: 4, 1>}, {pipeline_mode = #tpu.pipeline_mode<synchronous>, transform_indices = @transform_3, window_bounds = array<i64: 7, 8, 4>}, {pipeline_mode = #tpu.pipeline_mode<synchronous>, transform_indices = @transform_4, window_bounds = array<i64: 8, 1>}, {pipeline_mode = #tpu.pipeline_mode<synchronous>, transform_indices = @transform_5, window_bounds = array<i64: 7, 16, 8>}, {pipeline_mode = #tpu.pipeline_mode<synchronous>, transform_indices = @transform_6, window_bounds = array<i64: 16, 1>}, {pipeline_mode = #tpu.pipeline_mode<synchronous>, transform_indices = @transform_7, window_bounds = array<i64: 16, 35>}, {pipeline_mode = #tpu.pipeline_mode<synchronous>, transform_indices = @transform_8, window_bounds = array<i64: 1, 1>}, {transform_indices = @transform_9, window_bounds = array<i64: 1, 1, 1>}]} {
    %c0 = arith.constant 0 : index
    %c0_0 = arith.constant 0 : index
    %0 = vector.load %arg3[%c0, %c0_0] : memref<4x1xf32, #tpu.memory_space<vmem>>, vector<4x1xf32>
    %c0_1 = arith.constant 0 : index
    %c0_2 = arith.constant 0 : index
    %1 = vector.load %arg5[%c0_1, %c0_2] : memref<8x1xf32, #tpu.memory_space<vmem>>, vector<8x1xf32>
    %c0_3 = arith.constant 0 : index
    %c0_4 = arith.constant 0 : index
    %2 = vector.load %arg7[%c0_3, %c0_4] : memref<16x1xf32, #tpu.memory_space<vmem>>, vector<16x1xf32>
    %c0_5 = arith.constant 0 : index
    %c0_6 = arith.constant 0 : index
    %c0_7 = arith.constant 0 : index
    %3 = vector.load %arg2[%c0_5, %c0_6, %c0_7] : memref<7x4x1xf32, #tpu.memory_space<vmem>>, vector<1x4x1xf32>
    %4 = vector.shape_cast %3 : vector<1x4x1xf32> to vector<4x1xf32>
    %c1 = arith.constant 1 : index
    %c0_8 = arith.constant 0 : index
    %c0_9 = arith.constant 0 : index
    %5 = vector.load %arg2[%c1, %c0_8, %c0_9] : memref<7x4x1xf32, #tpu.memory_space<vmem>>, vector<1x4x1xf32>
    %6 = vector.shape_cast %5 : vector<1x4x1xf32> to vector<4x1xf32>
    %c2 = arith.constant 2 : index
    %c0_10 = arith.constant 0 : index
    %c0_11 = arith.constant 0 : index
    %7 = vector.load %arg2[%c2, %c0_10, %c0_11] : memref<7x4x1xf32, #tpu.memory_space<vmem>>, vector<1x4x1xf32>
    %8 = vector.shape_cast %7 : vector<1x4x1xf32> to vector<4x1xf32>
    %c3 = arith.constant 3 : index
    %c0_12 = arith.constant 0 : index
    %c0_13 = arith.constant 0 : index
    %9 = vector.load %arg2[%c3, %c0_12, %c0_13] : memref<7x4x1xf32, #tpu.memory_space<vmem>>, vector<1x4x1xf32>
    %10 = vector.shape_cast %9 : vector<1x4x1xf32> to vector<4x1xf32>
    %c4 = arith.constant 4 : index
    %c0_14 = arith.constant 0 : index
    %c0_15 = arith.constant 0 : index
    %11 = vector.load %arg2[%c4, %c0_14, %c0_15] : memref<7x4x1xf32, #tpu.memory_space<vmem>>, vector<1x4x1xf32>
    %12 = vector.shape_cast %11 : vector<1x4x1xf32> to vector<4x1xf32>
    %c5 = arith.constant 5 : index
    %c0_16 = arith.constant 0 : index
    %c0_17 = arith.constant 0 : index
    %13 = vector.load %arg2[%c5, %c0_16, %c0_17] : memref<7x4x1xf32, #tpu.memory_space<vmem>>, vector<1x4x1xf32>
    %14 = vector.shape_cast %13 : vector<1x4x1xf32> to vector<4x1xf32>
    %c6 = arith.constant 6 : index
    %c0_18 = arith.constant 0 : index
    %c0_19 = arith.constant 0 : index
    %15 = vector.load %arg2[%c6, %c0_18, %c0_19] : memref<7x4x1xf32, #tpu.memory_space<vmem>>, vector<1x4x1xf32>
    %16 = vector.shape_cast %15 : vector<1x4x1xf32> to vector<4x1xf32>
    %c0_20 = arith.constant 0 : index
    %c0_21 = arith.constant 0 : index
    %c0_22 = arith.constant 0 : index
    %17 = vector.load %arg4[%c0_20, %c0_21, %c0_22] : memref<7x8x4xf32, #tpu.memory_space<vmem>>, vector<1x8x4xf32>
    %18 = vector.shape_cast %17 : vector<1x8x4xf32> to vector<8x4xf32>
    %c1_23 = arith.constant 1 : index
    %c0_24 = arith.constant 0 : index
    %c0_25 = arith.constant 0 : index
    %19 = vector.load %arg4[%c1_23, %c0_24, %c0_25] : memref<7x8x4xf32, #tpu.memory_space<vmem>>, vector<1x8x4xf32>
    %20 = vector.shape_cast %19 : vector<1x8x4xf32> to vector<8x4xf32>
    %c2_26 = arith.constant 2 : index
    %c0_27 = arith.constant 0 : index
    %c0_28 = arith.constant 0 : index
    %21 = vector.load %arg4[%c2_26, %c0_27, %c0_28] : memref<7x8x4xf32, #tpu.memory_space<vmem>>, vector<1x8x4xf32>
    %22 = vector.shape_cast %21 : vector<1x8x4xf32> to vector<8x4xf32>
    %c3_29 = arith.constant 3 : index
    %c0_30 = arith.constant 0 : index
    %c0_31 = arith.constant 0 : index
    %23 = vector.load %arg4[%c3_29, %c0_30, %c0_31] : memref<7x8x4xf32, #tpu.memory_space<vmem>>, vector<1x8x4xf32>
    %24 = vector.shape_cast %23 : vector<1x8x4xf32> to vector<8x4xf32>
    %c4_32 = arith.constant 4 : index
    %c0_33 = arith.constant 0 : index
    %c0_34 = arith.constant 0 : index
    %25 = vector.load %arg4[%c4_32, %c0_33, %c0_34] : memref<7x8x4xf32, #tpu.memory_space<vmem>>, vector<1x8x4xf32>
    %26 = vector.shape_cast %25 : vector<1x8x4xf32> to vector<8x4xf32>
    %c5_35 = arith.constant 5 : index
    %c0_36 = arith.constant 0 : index
    %c0_37 = arith.constant 0 : index
    %27 = vector.load %arg4[%c5_35, %c0_36, %c0_37] : memref<7x8x4xf32, #tpu.memory_space<vmem>>, vector<1x8x4xf32>
    %28 = vector.shape_cast %27 : vector<1x8x4xf32> to vector<8x4xf32>
    %c6_38 = arith.constant 6 : index
    %c0_39 = arith.constant 0 : index
    %c0_40 = arith.constant 0 : index
    %29 = vector.load %arg4[%c6_38, %c0_39, %c0_40] : memref<7x8x4xf32, #tpu.memory_space<vmem>>, vector<1x8x4xf32>
    %30 = vector.shape_cast %29 : vector<1x8x4xf32> to vector<8x4xf32>
    %cst = arith.constant 0.000000e+00 : f32
    %31 = vector.broadcast %cst : f32 to vector<4x38xf32>
    %c0_41 = arith.constant 0 : index
    %c0_42 = arith.constant 0 : index
    %c0_43 = arith.constant 0 : index
    %32 = vector.load %arg1[%c0_41, %c0_42, %c0_43] : memref<1x27x39xf32, #tpu.memory_space<vmem>>, vector<1x1x38xf32>
    %33 = vector.shape_cast %32 : vector<1x1x38xf32> to vector<1x38xf32>
    %34 = vector.broadcast %4 : vector<4x1xf32> to vector<4x38xf32>
    %35 = vector.broadcast %33 : vector<1x38xf32> to vector<4x38xf32>
    %36 = arith.mulf %34, %35 : vector<4x38xf32>
    %37 = arith.addf %31, %36 : vector<4x38xf32>
    %c0_44 = arith.constant 0 : index
    %c1_45 = arith.constant 1 : index
    %c0_46 = arith.constant 0 : index
    %38 = vector.load %arg1[%c0_44, %c1_45, %c0_46] : memref<1x27x39xf32, #tpu.memory_space<vmem>>, vector<1x1x38xf32>
    %39 = vector.shape_cast %38 : vector<1x1x38xf32> to vector<1x38xf32>
    %40 = vector.broadcast %6 : vector<4x1xf32> to vector<4x38xf32>
    %41 = vector.broadcast %39 : vector<1x38xf32> to vector<4x38xf32>
    %42 = arith.mulf %40, %41 : vector<4x38xf32>
    %43 = arith.addf %37, %42 : vector<4x38xf32>
    %c0_47 = arith.constant 0 : index
    %c2_48 = arith.constant 2 : index
    %c0_49 = arith.constant 0 : index
    %44 = vector.load %arg1[%c0_47, %c2_48, %c0_49] : memref<1x27x39xf32, #tpu.memory_space<vmem>>, vector<1x1x38xf32>
    %45 = vector.shape_cast %44 : vector<1x1x38xf32> to vector<1x38xf32>
    %46 = vector.broadcast %8 : vector<4x1xf32> to vector<4x38xf32>
    %47 = vector.broadcast %45 : vector<1x38xf32> to vector<4x38xf32>
    %48 = arith.mulf %46, %47 : vector<4x38xf32>
    %49 = arith.addf %43, %48 : vector<4x38xf32>
    %c0_50 = arith.constant 0 : index
    %c3_51 = arith.constant 3 : index
    %c0_52 = arith.constant 0 : index
    %50 = vector.load %arg1[%c0_50, %c3_51, %c0_52] : memref<1x27x39xf32, #tpu.memory_space<vmem>>, vector<1x1x38xf32>
    %51 = vector.shape_cast %50 : vector<1x1x38xf32> to vector<1x38xf32>
    %52 = vector.broadcast %10 : vector<4x1xf32> to vector<4x38xf32>
    %53 = vector.broadcast %51 : vector<1x38xf32> to vector<4x38xf32>
    %54 = arith.mulf %52, %53 : vector<4x38xf32>
    %55 = arith.addf %49, %54 : vector<4x38xf32>
    %c0_53 = arith.constant 0 : index
    %c4_54 = arith.constant 4 : index
    %c0_55 = arith.constant 0 : index
    %56 = vector.load %arg1[%c0_53, %c4_54, %c0_55] : memref<1x27x39xf32, #tpu.memory_space<vmem>>, vector<1x1x38xf32>
    %57 = vector.shape_cast %56 : vector<1x1x38xf32> to vector<1x38xf32>
    %58 = vector.broadcast %12 : vector<4x1xf32> to vector<4x38xf32>
    %59 = vector.broadcast %57 : vector<1x38xf32> to vector<4x38xf32>
    %60 = arith.mulf %58, %59 : vector<4x38xf32>
    %61 = arith.addf %55, %60 : vector<4x38xf32>
    %c0_56 = arith.constant 0 : index
    %c5_57 = arith.constant 5 : index
    %c0_58 = arith.constant 0 : index
    %62 = vector.load %arg1[%c0_56, %c5_57, %c0_58] : memref<1x27x39xf32, #tpu.memory_space<vmem>>, vector<1x1x38xf32>
    %63 = vector.shape_cast %62 : vector<1x1x38xf32> to vector<1x38xf32>
    %64 = vector.broadcast %14 : vector<4x1xf32> to vector<4x38xf32>
    %65 = vector.broadcast %63 : vector<1x38xf32> to vector<4x38xf32>
    %66 = arith.mulf %64, %65 : vector<4x38xf32>
    %67 = arith.addf %61, %66 : vector<4x38xf32>
    %c0_59 = arith.constant 0 : index
    %c6_60 = arith.constant 6 : index
    %c0_61 = arith.constant 0 : index
    %68 = vector.load %arg1[%c0_59, %c6_60, %c0_61] : memref<1x27x39xf32, #tpu.memory_space<vmem>>, vector<1x1x38xf32>
    %69 = vector.shape_cast %68 : vector<1x1x38xf32> to vector<1x38xf32>
    %70 = vector.broadcast %16 : vector<4x1xf32> to vector<4x38xf32>
    %71 = vector.broadcast %69 : vector<1x38xf32> to vector<4x38xf32>
    %72 = arith.mulf %70, %71 : vector<4x38xf32>
    %73 = arith.addf %67, %72 : vector<4x38xf32>
    %74 = vector.broadcast %0 : vector<4x1xf32> to vector<4x38xf32>
    %75 = arith.addf %73, %74 : vector<4x38xf32>
    %cst_62 = arith.constant 0.000000e+00 : f32
    %76 = vector.broadcast %cst_62 : f32 to vector<4x38xf32>
    %77 = arith.maximumf %75, %76 : vector<4x38xf32>
    %c0_63 = arith.constant 0 : index
    %c0_64 = arith.constant 0 : index
    %c0_65 = arith.constant 0 : index
    %78 = vector.load %arg11[%c0_63, %c0_64, %c0_65] : memref<9x4x38xf32, #tpu.memory_space<vmem>>, vector<1x4x38xf32>
    %79 = vector.shape_cast %78 : vector<1x4x38xf32> to vector<4x38xf32>
    %80 = vector.shape_cast %77 : vector<4x38xf32> to vector<1x4x38xf32>
    tpu.vector_store %arg11[%c0_63, %c0_64, %c0_65], %80 {strides = array<i32>} : memref<9x4x38xf32, #tpu.memory_space<vmem>>, vector<1x4x38xf32>,
    %cst_66 = arith.constant 0.000000e+00 : f32
    %81 = vector.broadcast %cst_66 : f32 to vector<4x38xf32>
    %c0_67 = arith.constant 0 : index
    %c3_68 = arith.constant 3 : index
    %c0_69 = arith.constant 0 : index
    %82 = vector.load %arg1[%c0_67, %c3_68, %c0_69] : memref<1x27x39xf32, #tpu.memory_space<vmem>>, vector<1x1x38xf32>
    %83 = vector.shape_cast %82 : vector<1x1x38xf32> to vector<1x38xf32>
    %84 = vector.broadcast %4 : vector<4x1xf32> to vector<4x38xf32>
    %85 = vector.broadcast %83 : vector<1x38xf32> to vector<4x38xf32>
    %86 = arith.mulf %84, %85 : vector<4x38xf32>
    %87 = arith.addf %81, %86 : vector<4x38xf32>
    %c0_70 = arith.constant 0 : index
    %c4_71 = arith.constant 4 : index
    %c0_72 = arith.constant 0 : index
    %88 = vector.load %arg1[%c0_70, %c4_71, %c0_72] : memref<1x27x39xf32, #tpu.memory_space<vmem>>, vector<1x1x38xf32>
    %89 = vector.shape_cast %88 : vector<1x1x38xf32> to vector<1x38xf32>
    %90 = vector.broadcast %6 : vector<4x1xf32> to vector<4x38xf32>
    %91 = vector.broadcast %89 : vector<1x38xf32> to vector<4x38xf32>
    %92 = arith.mulf %90, %91 : vector<4x38xf32>
    %93 = arith.addf %87, %92 : vector<4x38xf32>
    %c0_73 = arith.constant 0 : index
    %c5_74 = arith.constant 5 : index
    %c0_75 = arith.constant 0 : index
    %94 = vector.load %arg1[%c0_73, %c5_74, %c0_75] : memref<1x27x39xf32, #tpu.memory_space<vmem>>, vector<1x1x38xf32>
    %95 = vector.shape_cast %94 : vector<1x1x38xf32> to vector<1x38xf32>
    %96 = vector.broadcast %8 : vector<4x1xf32> to vector<4x38xf32>
    %97 = vector.broadcast %95 : vector<1x38xf32> to vector<4x38xf32>
    %98 = arith.mulf %96, %97 : vector<4x38xf32>
    %99 = arith.addf %93, %98 : vector<4x38xf32>
    %c0_76 = arith.constant 0 : index
    %c6_77 = arith.constant 6 : index
    %c0_78 = arith.constant 0 : index
    %100 = vector.load %arg1[%c0_76, %c6_77, %c0_78] : memref<1x27x39xf32, #tpu.memory_space<vmem>>, vector<1x1x38xf32>
    %101 = vector.shape_cast %100 : vector<1x1x38xf32> to vector<1x38xf32>
    %102 = vector.broadcast %10 : vector<4x1xf32> to vector<4x38xf32>
    %103 = vector.broadcast %101 : vector<1x38xf32> to vector<4x38xf32>
    %104 = arith.mulf %102, %103 : vector<4x38xf32>
    %105 = arith.addf %99, %104 : vector<4x38xf32>
    %c0_79 = arith.constant 0 : index
    %c7 = arith.constant 7 : index
    %c0_80 = arith.constant 0 : index
    %106 = vector.load %arg1[%c0_79, %c7, %c0_80] : memref<1x27x39xf32, #tpu.memory_space<vmem>>, vector<1x1x38xf32>
    %107 = vector.shape_cast %106 : vector<1x1x38xf32> to vector<1x38xf32>
    %108 = vector.broadcast %12 : vector<4x1xf32> to vector<4x38xf32>
    %109 = vector.broadcast %107 : vector<1x38xf32> to vector<4x38xf32>
    %110 = arith.mulf %108, %109 : vector<4x38xf32>
    %111 = arith.addf %105, %110 : vector<4x38xf32>
    %c0_81 = arith.constant 0 : index
    %c8 = arith.constant 8 : index
    %c0_82 = arith.constant 0 : index
    %112 = vector.load %arg1[%c0_81, %c8, %c0_82] : memref<1x27x39xf32, #tpu.memory_space<vmem>>, vector<1x1x38xf32>
    %113 = vector.shape_cast %112 : vector<1x1x38xf32> to vector<1x38xf32>
    %114 = vector.broadcast %14 : vector<4x1xf32> to vector<4x38xf32>
    %115 = vector.broadcast %113 : vector<1x38xf32> to vector<4x38xf32>
    %116 = arith.mulf %114, %115 : vector<4x38xf32>
    %117 = arith.addf %111, %116 : vector<4x38xf32>
    %c0_83 = arith.constant 0 : index
    %c9 = arith.constant 9 : index
    %c0_84 = arith.constant 0 : index
    %118 = vector.load %arg1[%c0_83, %c9, %c0_84] : memref<1x27x39xf32, #tpu.memory_space<vmem>>, vector<1x1x38xf32>
    %119 = vector.shape_cast %118 : vector<1x1x38xf32> to vector<1x38xf32>
    %120 = vector.broadcast %16 : vector<4x1xf32> to vector<4x38xf32>
    %121 = vector.broadcast %119 : vector<1x38xf32> to vector<4x38xf32>
    %122 = arith.mulf %120, %121 : vector<4x38xf32>
    %123 = arith.addf %117, %122 : vector<4x38xf32>
    %124 = vector.broadcast %0 : vector<4x1xf32> to vector<4x38xf32>
    %125 = arith.addf %123, %124 : vector<4x38xf32>
    %cst_85 = arith.constant 0.000000e+00 : f32
    %126 = vector.broadcast %cst_85 : f32 to vector<4x38xf32>
    %127 = arith.maximumf %125, %126 : vector<4x38xf32>
    %c1_86 = arith.constant 1 : index
    %c0_87 = arith.constant 0 : index
    %c0_88 = arith.constant 0 : index
    %128 = vector.load %arg11[%c1_86, %c0_87, %c0_88] : memref<9x4x38xf32, #tpu.memory_space<vmem>>, vector<1x4x38xf32>
    %129 = vector.shape_cast %128 : vector<1x4x38xf32> to vector<4x38xf32>
    %130 = vector.shape_cast %127 : vector<4x38xf32> to vector<1x4x38xf32>
    tpu.vector_store %arg11[%c1_86, %c0_87, %c0_88], %130 {strides = array<i32>} : memref<9x4x38xf32, #tpu.memory_space<vmem>>, vector<1x4x38xf32>,
    %cst_89 = arith.constant 0.000000e+00 : f32
    %131 = vector.broadcast %cst_89 : f32 to vector<4x38xf32>
    %c0_90 = arith.constant 0 : index
    %c6_91 = arith.constant 6 : index
    %c0_92 = arith.constant 0 : index
    %132 = vector.load %arg1[%c0_90, %c6_91, %c0_92] : memref<1x27x39xf32, #tpu.memory_space<vmem>>, vector<1x1x38xf32>
    %133 = vector.shape_cast %132 : vector<1x1x38xf32> to vector<1x38xf32>
    %134 = vector.broadcast %4 : vector<4x1xf32> to vector<4x38xf32>
    %135 = vector.broadcast %133 : vector<1x38xf32> to vector<4x38xf32>
    %136 = arith.mulf %134, %135 : vector<4x38xf32>
    %137 = arith.addf %131, %136 : vector<4x38xf32>
    %c0_93 = arith.constant 0 : index
    %c7_94 = arith.constant 7 : index
    %c0_95 = arith.constant 0 : index
    %138 = vector.load %arg1[%c0_93, %c7_94, %c0_95] : memref<1x27x39xf32, #tpu.memory_space<vmem>>, vector<1x1x38xf32>
    %139 = vector.shape_cast %138 : vector<1x1x38xf32> to vector<1x38xf32>
    %140 = vector.broadcast %6 : vector<4x1xf32> to vector<4x38xf32>
    %141 = vector.broadcast %139 : vector<1x38xf32> to vector<4x38xf32>
    %142 = arith.mulf %140, %141 : vector<4x38xf32>
    %143 = arith.addf %137, %142 : vector<4x38xf32>
    %c0_96 = arith.constant 0 : index
    %c8_97 = arith.constant 8 : index
    %c0_98 = arith.constant 0 : index
    %144 = vector.load %arg1[%c0_96, %c8_97, %c0_98] : memref<1x27x39xf32, #tpu.memory_space<vmem>>, vector<1x1x38xf32>
    %145 = vector.shape_cast %144 : vector<1x1x38xf32> to vector<1x38xf32>
    %146 = vector.broadcast %8 : vector<4x1xf32> to vector<4x38xf32>
    %147 = vector.broadcast %145 : vector<1x38xf32> to vector<4x38xf32>
    %148 = arith.mulf %146, %147 : vector<4x38xf32>
    %149 = arith.addf %143, %148 : vector<4x38xf32>
    %c0_99 = arith.constant 0 : index
    %c9_100 = arith.constant 9 : index
    %c0_101 = arith.constant 0 : index
    %150 = vector.load %arg1[%c0_99, %c9_100, %c0_101] : memref<1x27x39xf32, #tpu.memory_space<vmem>>, vector<1x1x38xf32>
    %151 = vector.shape_cast %150 : vector<1x1x38xf32> to vector<1x38xf32>
    %152 = vector.broadcast %10 : vector<4x1xf32> to vector<4x38xf32>
    %153 = vector.broadcast %151 : vector<1x38xf32> to vector<4x38xf32>
    %154 = arith.mulf %152, %153 : vector<4x38xf32>
    %155 = arith.addf %149, %154 : vector<4x38xf32>
    %c0_102 = arith.constant 0 : index
    %c10 = arith.constant 10 : index
    %c0_103 = arith.constant 0 : index
    %156 = vector.load %arg1[%c0_102, %c10, %c0_103] : memref<1x27x39xf32, #tpu.memory_space<vmem>>, vector<1x1x38xf32>
    %157 = vector.shape_cast %156 : vector<1x1x38xf32> to vector<1x38xf32>
    %158 = vector.broadcast %12 : vector<4x1xf32> to vector<4x38xf32>
    %159 = vector.broadcast %157 : vector<1x38xf32> to vector<4x38xf32>
    %160 = arith.mulf %158, %159 : vector<4x38xf32>
    %161 = arith.addf %155, %160 : vector<4x38xf32>
    %c0_104 = arith.constant 0 : index
    %c11 = arith.constant 11 : index
    %c0_105 = arith.constant 0 : index
    %162 = vector.load %arg1[%c0_104, %c11, %c0_105] : memref<1x27x39xf32, #tpu.memory_space<vmem>>, vector<1x1x38xf32>
    %163 = vector.shape_cast %162 : vector<1x1x38xf32> to vector<1x38xf32>
    %164 = vector.broadcast %14 : vector<4x1xf32> to vector<4x38xf32>
    %165 = vector.broadcast %163 : vector<1x38xf32> to vector<4x38xf32>
    %166 = arith.mulf %164, %165 : vector<4x38xf32>
    %167 = arith.addf %161, %166 : vector<4x38xf32>
    %c0_106 = arith.constant 0 : index
    %c12 = arith.constant 12 : index
    %c0_107 = arith.constant 0 : index
    %168 = vector.load %arg1[%c0_106, %c12, %c0_107] : memref<1x27x39xf32, #tpu.memory_space<vmem>>, vector<1x1x38xf32>
    %169 = vector.shape_cast %168 : vector<1x1x38xf32> to vector<1x38xf32>
    %170 = vector.broadcast %16 : vector<4x1xf32> to vector<4x38xf32>
    %171 = vector.broadcast %169 : vector<1x38xf32> to vector<4x38xf32>
    %172 = arith.mulf %170, %171 : vector<4x38xf32>
    %173 = arith.addf %167, %172 : vector<4x38xf32>
    %174 = vector.broadcast %0 : vector<4x1xf32> to vector<4x38xf32>
    %175 = arith.addf %173, %174 : vector<4x38xf32>
    %cst_108 = arith.constant 0.000000e+00 : f32
    %176 = vector.broadcast %cst_108 : f32 to vector<4x38xf32>
    %177 = arith.maximumf %175, %176 : vector<4x38xf32>
    %c2_109 = arith.constant 2 : index
    %c0_110 = arith.constant 0 : index
    %c0_111 = arith.constant 0 : index
    %178 = vector.load %arg11[%c2_109, %c0_110, %c0_111] : memref<9x4x38xf32, #tpu.memory_space<vmem>>, vector<1x4x38xf32>
    %179 = vector.shape_cast %178 : vector<1x4x38xf32> to vector<4x38xf32>
    %180 = vector.shape_cast %177 : vector<4x38xf32> to vector<1x4x38xf32>
    tpu.vector_store %arg11[%c2_109, %c0_110, %c0_111], %180 {strides = array<i32>} : memref<9x4x38xf32, #tpu.memory_space<vmem>>, vector<1x4x38xf32>,
    %cst_112 = arith.constant 0.000000e+00 : f32
    %181 = vector.broadcast %cst_112 : f32 to vector<4x38xf32>
    %c0_113 = arith.constant 0 : index
    %c9_114 = arith.constant 9 : index
    %c0_115 = arith.constant 0 : index
    %182 = vector.load %arg1[%c0_113, %c9_114, %c0_115] : memref<1x27x39xf32, #tpu.memory_space<vmem>>, vector<1x1x38xf32>
    %183 = vector.shape_cast %182 : vector<1x1x38xf32> to vector<1x38xf32>
    %184 = vector.broadcast %4 : vector<4x1xf32> to vector<4x38xf32>
    %185 = vector.broadcast %183 : vector<1x38xf32> to vector<4x38xf32>
    %186 = arith.mulf %184, %185 : vector<4x38xf32>
    %187 = arith.addf %181, %186 : vector<4x38xf32>
    %c0_116 = arith.constant 0 : index
    %c10_117 = arith.constant 10 : index
    %c0_118 = arith.constant 0 : index
    %188 = vector.load %arg1[%c0_116, %c10_117, %c0_118] : memref<1x27x39xf32, #tpu.memory_space<vmem>>, vector<1x1x38xf32>
    %189 = vector.shape_cast %188 : vector<1x1x38xf32> to vector<1x38xf32>
    %190 = vector.broadcast %6 : vector<4x1xf32> to vector<4x38xf32>
    %191 = vector.broadcast %189 : vector<1x38xf32> to vector<4x38xf32>
    %192 = arith.mulf %190, %191 : vector<4x38xf32>
    %193 = arith.addf %187, %192 : vector<4x38xf32>
    %c0_119 = arith.constant 0 : index
    %c11_120 = arith.constant 11 : index
    %c0_121 = arith.constant 0 : index
    %194 = vector.load %arg1[%c0_119, %c11_120, %c0_121] : memref<1x27x39xf32, #tpu.memory_space<vmem>>, vector<1x1x38xf32>
    %195 = vector.shape_cast %194 : vector<1x1x38xf32> to vector<1x38xf32>
    %196 = vector.broadcast %8 : vector<4x1xf32> to vector<4x38xf32>
    %197 = vector.broadcast %195 : vector<1x38xf32> to vector<4x38xf32>
    %198 = arith.mulf %196, %197 : vector<4x38xf32>
    %199 = arith.addf %193, %198 : vector<4x38xf32>
    %c0_122 = arith.constant 0 : index
    %c12_123 = arith.constant 12 : index
    %c0_124 = arith.constant 0 : index
    %200 = vector.load %arg1[%c0_122, %c12_123, %c0_124] : memref<1x27x39xf32, #tpu.memory_space<vmem>>, vector<1x1x38xf32>
    %201 = vector.shape_cast %200 : vector<1x1x38xf32> to vector<1x38xf32>
    %202 = vector.broadcast %10 : vector<4x1xf32> to vector<4x38xf32>
    %203 = vector.broadcast %201 : vector<1x38xf32> to vector<4x38xf32>
    %204 = arith.mulf %202, %203 : vector<4x38xf32>
    %205 = arith.addf %199, %204 : vector<4x38xf32>
    %c0_125 = arith.constant 0 : index
    %c13 = arith.constant 13 : index
    %c0_126 = arith.constant 0 : index
    %206 = vector.load %arg1[%c0_125, %c13, %c0_126] : memref<1x27x39xf32, #tpu.memory_space<vmem>>, vector<1x1x38xf32>
    %207 = vector.shape_cast %206 : vector<1x1x38xf32> to vector<1x38xf32>
    %208 = vector.broadcast %12 : vector<4x1xf32> to vector<4x38xf32>
    %209 = vector.broadcast %207 : vector<1x38xf32> to vector<4x38xf32>
    %210 = arith.mulf %208, %209 : vector<4x38xf32>
    %211 = arith.addf %205, %210 : vector<4x38xf32>
    %c0_127 = arith.constant 0 : index
    %c14 = arith.constant 14 : index
    %c0_128 = arith.constant 0 : index
    %212 = vector.load %arg1[%c0_127, %c14, %c0_128] : memref<1x27x39xf32, #tpu.memory_space<vmem>>, vector<1x1x38xf32>
    %213 = vector.shape_cast %212 : vector<1x1x38xf32> to vector<1x38xf32>
    %214 = vector.broadcast %14 : vector<4x1xf32> to vector<4x38xf32>
    %215 = vector.broadcast %213 : vector<1x38xf32> to vector<4x38xf32>
    %216 = arith.mulf %214, %215 : vector<4x38xf32>
    %217 = arith.addf %211, %216 : vector<4x38xf32>
    %c0_129 = arith.constant 0 : index
    %c15 = arith.constant 15 : index
    %c0_130 = arith.constant 0 : index
    %218 = vector.load %arg1[%c0_129, %c15, %c0_130] : memref<1x27x39xf32, #tpu.memory_space<vmem>>, vector<1x1x38xf32>
    %219 = vector.shape_cast %218 : vector<1x1x38xf32> to vector<1x38xf32>
    %220 = vector.broadcast %16 : vector<4x1xf32> to vector<4x38xf32>
    %221 = vector.broadcast %219 : vector<1x38xf32> to vector<4x38xf32>
    %222 = arith.mulf %220, %221 : vector<4x38xf32>
    %223 = arith.addf %217, %222 : vector<4x38xf32>
    %224 = vector.broadcast %0 : vector<4x1xf32> to vector<4x38xf32>
    %225 = arith.addf %223, %224 : vector<4x38xf32>
    %cst_131 = arith.constant 0.000000e+00 : f32
    %226 = vector.broadcast %cst_131 : f32 to vector<4x38xf32>
    %227 = arith.maximumf %225, %226 : vector<4x38xf32>
    %c3_132 = arith.constant 3 : index
    %c0_133 = arith.constant 0 : index
    %c0_134 = arith.constant 0 : index
    %228 = vector.load %arg11[%c3_132, %c0_133, %c0_134] : memref<9x4x38xf32, #tpu.memory_space<vmem>>, vector<1x4x38xf32>
    %229 = vector.shape_cast %228 : vector<1x4x38xf32> to vector<4x38xf32>
    %230 = vector.shape_cast %227 : vector<4x38xf32> to vector<1x4x38xf32>
    tpu.vector_store %arg11[%c3_132, %c0_133, %c0_134], %230 {strides = array<i32>} : memref<9x4x38xf32, #tpu.memory_space<vmem>>, vector<1x4x38xf32>,
    %cst_135 = arith.constant 0.000000e+00 : f32
    %231 = vector.broadcast %cst_135 : f32 to vector<4x38xf32>
    %c0_136 = arith.constant 0 : index
    %c12_137 = arith.constant 12 : index
    %c0_138 = arith.constant 0 : index
    %232 = vector.load %arg1[%c0_136, %c12_137, %c0_138] : memref<1x27x39xf32, #tpu.memory_space<vmem>>, vector<1x1x38xf32>
    %233 = vector.shape_cast %232 : vector<1x1x38xf32> to vector<1x38xf32>
    %234 = vector.broadcast %4 : vector<4x1xf32> to vector<4x38xf32>
    %235 = vector.broadcast %233 : vector<1x38xf32> to vector<4x38xf32>
    %236 = arith.mulf %234, %235 : vector<4x38xf32>
    %237 = arith.addf %231, %236 : vector<4x38xf32>
    %c0_139 = arith.constant 0 : index
    %c13_140 = arith.constant 13 : index
    %c0_141 = arith.constant 0 : index
    %238 = vector.load %arg1[%c0_139, %c13_140, %c0_141] : memref<1x27x39xf32, #tpu.memory_space<vmem>>, vector<1x1x38xf32>
    %239 = vector.shape_cast %238 : vector<1x1x38xf32> to vector<1x38xf32>
    %240 = vector.broadcast %6 : vector<4x1xf32> to vector<4x38xf32>
    %241 = vector.broadcast %239 : vector<1x38xf32> to vector<4x38xf32>
    %242 = arith.mulf %240, %241 : vector<4x38xf32>
    %243 = arith.addf %237, %242 : vector<4x38xf32>
    %c0_142 = arith.constant 0 : index
    %c14_143 = arith.constant 14 : index
    %c0_144 = arith.constant 0 : index
    %244 = vector.load %arg1[%c0_142, %c14_143, %c0_144] : memref<1x27x39xf32, #tpu.memory_space<vmem>>, vector<1x1x38xf32>
    %245 = vector.shape_cast %244 : vector<1x1x38xf32> to vector<1x38xf32>
    %246 = vector.broadcast %8 : vector<4x1xf32> to vector<4x38xf32>
    %247 = vector.broadcast %245 : vector<1x38xf32> to vector<4x38xf32>
    %248 = arith.mulf %246, %247 : vector<4x38xf32>
    %249 = arith.addf %243, %248 : vector<4x38xf32>
    %c0_145 = arith.constant 0 : index
    %c15_146 = arith.constant 15 : index
    %c0_147 = arith.constant 0 : index
    %250 = vector.load %arg1[%c0_145, %c15_146, %c0_147] : memref<1x27x39xf32, #tpu.memory_space<vmem>>, vector<1x1x38xf32>
    %251 = vector.shape_cast %250 : vector<1x1x38xf32> to vector<1x38xf32>
    %252 = vector.broadcast %10 : vector<4x1xf32> to vector<4x38xf32>
    %253 = vector.broadcast %251 : vector<1x38xf32> to vector<4x38xf32>
    %254 = arith.mulf %252, %253 : vector<4x38xf32>
    %255 = arith.addf %249, %254 : vector<4x38xf32>
    %c0_148 = arith.constant 0 : index
    %c16 = arith.constant 16 : index
    %c0_149 = arith.constant 0 : index
    %256 = vector.load %arg1[%c0_148, %c16, %c0_149] : memref<1x27x39xf32, #tpu.memory_space<vmem>>, vector<1x1x38xf32>
    %257 = vector.shape_cast %256 : vector<1x1x38xf32> to vector<1x38xf32>
    %258 = vector.broadcast %12 : vector<4x1xf32> to vector<4x38xf32>
    %259 = vector.broadcast %257 : vector<1x38xf32> to vector<4x38xf32>
    %260 = arith.mulf %258, %259 : vector<4x38xf32>
    %261 = arith.addf %255, %260 : vector<4x38xf32>
    %c0_150 = arith.constant 0 : index
    %c17 = arith.constant 17 : index
    %c0_151 = arith.constant 0 : index
    %262 = vector.load %arg1[%c0_150, %c17, %c0_151] : memref<1x27x39xf32, #tpu.memory_space<vmem>>, vector<1x1x38xf32>
    %263 = vector.shape_cast %262 : vector<1x1x38xf32> to vector<1x38xf32>
    %264 = vector.broadcast %14 : vector<4x1xf32> to vector<4x38xf32>
    %265 = vector.broadcast %263 : vector<1x38xf32> to vector<4x38xf32>
    %266 = arith.mulf %264, %265 : vector<4x38xf32>
    %267 = arith.addf %261, %266 : vector<4x38xf32>
    %c0_152 = arith.constant 0 : index
    %c18 = arith.constant 18 : index
    %c0_153 = arith.constant 0 : index
    %268 = vector.load %arg1[%c0_152, %c18, %c0_153] : memref<1x27x39xf32, #tpu.memory_space<vmem>>, vector<1x1x38xf32>
    %269 = vector.shape_cast %268 : vector<1x1x38xf32> to vector<1x38xf32>
    %270 = vector.broadcast %16 : vector<4x1xf32> to vector<4x38xf32>
    %271 = vector.broadcast %269 : vector<1x38xf32> to vector<4x38xf32>
    %272 = arith.mulf %270, %271 : vector<4x38xf32>
    %273 = arith.addf %267, %272 : vector<4x38xf32>
    %274 = vector.broadcast %0 : vector<4x1xf32> to vector<4x38xf32>
    %275 = arith.addf %273, %274 : vector<4x38xf32>
    %cst_154 = arith.constant 0.000000e+00 : f32
    %276 = vector.broadcast %cst_154 : f32 to vector<4x38xf32>
    %277 = arith.maximumf %275, %276 : vector<4x38xf32>
    %c4_155 = arith.constant 4 : index
    %c0_156 = arith.constant 0 : index
    %c0_157 = arith.constant 0 : index
    %278 = vector.load %arg11[%c4_155, %c0_156, %c0_157] : memref<9x4x38xf32, #tpu.memory_space<vmem>>, vector<1x4x38xf32>
    %279 = vector.shape_cast %278 : vector<1x4x38xf32> to vector<4x38xf32>
    %280 = vector.shape_cast %277 : vector<4x38xf32> to vector<1x4x38xf32>
    tpu.vector_store %arg11[%c4_155, %c0_156, %c0_157], %280 {strides = array<i32>} : memref<9x4x38xf32, #tpu.memory_space<vmem>>, vector<1x4x38xf32>,
    %cst_158 = arith.constant 0.000000e+00 : f32
    %281 = vector.broadcast %cst_158 : f32 to vector<4x38xf32>
    %c0_159 = arith.constant 0 : index
    %c15_160 = arith.constant 15 : index
    %c0_161 = arith.constant 0 : index
    %282 = vector.load %arg1[%c0_159, %c15_160, %c0_161] : memref<1x27x39xf32, #tpu.memory_space<vmem>>, vector<1x1x38xf32>
    %283 = vector.shape_cast %282 : vector<1x1x38xf32> to vector<1x38xf32>
    %284 = vector.broadcast %4 : vector<4x1xf32> to vector<4x38xf32>
    %285 = vector.broadcast %283 : vector<1x38xf32> to vector<4x38xf32>
    %286 = arith.mulf %284, %285 : vector<4x38xf32>
    %287 = arith.addf %281, %286 : vector<4x38xf32>
    %c0_162 = arith.constant 0 : index
    %c16_163 = arith.constant 16 : index
    %c0_164 = arith.constant 0 : index
    %288 = vector.load %arg1[%c0_162, %c16_163, %c0_164] : memref<1x27x39xf32, #tpu.memory_space<vmem>>, vector<1x1x38xf32>
    %289 = vector.shape_cast %288 : vector<1x1x38xf32> to vector<1x38xf32>
    %290 = vector.broadcast %6 : vector<4x1xf32> to vector<4x38xf32>
    %291 = vector.broadcast %289 : vector<1x38xf32> to vector<4x38xf32>
    %292 = arith.mulf %290, %291 : vector<4x38xf32>
    %293 = arith.addf %287, %292 : vector<4x38xf32>
    %c0_165 = arith.constant 0 : index
    %c17_166 = arith.constant 17 : index
    %c0_167 = arith.constant 0 : index
    %294 = vector.load %arg1[%c0_165, %c17_166, %c0_167] : memref<1x27x39xf32, #tpu.memory_space<vmem>>, vector<1x1x38xf32>
    %295 = vector.shape_cast %294 : vector<1x1x38xf32> to vector<1x38xf32>
    %296 = vector.broadcast %8 : vector<4x1xf32> to vector<4x38xf32>
    %297 = vector.broadcast %295 : vector<1x38xf32> to vector<4x38xf32>
    %298 = arith.mulf %296, %297 : vector<4x38xf32>
    %299 = arith.addf %293, %298 : vector<4x38xf32>
    %c0_168 = arith.constant 0 : index
    %c18_169 = arith.constant 18 : index
    %c0_170 = arith.constant 0 : index
    %300 = vector.load %arg1[%c0_168, %c18_169, %c0_170] : memref<1x27x39xf32, #tpu.memory_space<vmem>>, vector<1x1x38xf32>
    %301 = vector.shape_cast %300 : vector<1x1x38xf32> to vector<1x38xf32>
    %302 = vector.broadcast %10 : vector<4x1xf32> to vector<4x38xf32>
    %303 = vector.broadcast %301 : vector<1x38xf32> to vector<4x38xf32>
    %304 = arith.mulf %302, %303 : vector<4x38xf32>
    %305 = arith.addf %299, %304 : vector<4x38xf32>
    %c0_171 = arith.constant 0 : index
    %c19 = arith.constant 19 : index
    %c0_172 = arith.constant 0 : index
    %306 = vector.load %arg1[%c0_171, %c19, %c0_172] : memref<1x27x39xf32, #tpu.memory_space<vmem>>, vector<1x1x38xf32>
    %307 = vector.shape_cast %306 : vector<1x1x38xf32> to vector<1x38xf32>
    %308 = vector.broadcast %12 : vector<4x1xf32> to vector<4x38xf32>
    %309 = vector.broadcast %307 : vector<1x38xf32> to vector<4x38xf32>
    %310 = arith.mulf %308, %309 : vector<4x38xf32>
    %311 = arith.addf %305, %310 : vector<4x38xf32>
    %c0_173 = arith.constant 0 : index
    %c20 = arith.constant 20 : index
    %c0_174 = arith.constant 0 : index
    %312 = vector.load %arg1[%c0_173, %c20, %c0_174] : memref<1x27x39xf32, #tpu.memory_space<vmem>>, vector<1x1x38xf32>
    %313 = vector.shape_cast %312 : vector<1x1x38xf32> to vector<1x38xf32>
    %314 = vector.broadcast %14 : vector<4x1xf32> to vector<4x38xf32>
    %315 = vector.broadcast %313 : vector<1x38xf32> to vector<4x38xf32>
    %316 = arith.mulf %314, %315 : vector<4x38xf32>
    %317 = arith.addf %311, %316 : vector<4x38xf32>
    %c0_175 = arith.constant 0 : index
    %c21 = arith.constant 21 : index
    %c0_176 = arith.constant 0 : index
    %318 = vector.load %arg1[%c0_175, %c21, %c0_176] : memref<1x27x39xf32, #tpu.memory_space<vmem>>, vector<1x1x38xf32>
    %319 = vector.shape_cast %318 : vector<1x1x38xf32> to vector<1x38xf32>
    %320 = vector.broadcast %16 : vector<4x1xf32> to vector<4x38xf32>
    %321 = vector.broadcast %319 : vector<1x38xf32> to vector<4x38xf32>
    %322 = arith.mulf %320, %321 : vector<4x38xf32>
    %323 = arith.addf %317, %322 : vector<4x38xf32>
    %324 = vector.broadcast %0 : vector<4x1xf32> to vector<4x38xf32>
    %325 = arith.addf %323, %324 : vector<4x38xf32>
    %cst_177 = arith.constant 0.000000e+00 : f32
    %326 = vector.broadcast %cst_177 : f32 to vector<4x38xf32>
    %327 = arith.maximumf %325, %326 : vector<4x38xf32>
    %c5_178 = arith.constant 5 : index
    %c0_179 = arith.constant 0 : index
    %c0_180 = arith.constant 0 : index
    %328 = vector.load %arg11[%c5_178, %c0_179, %c0_180] : memref<9x4x38xf32, #tpu.memory_space<vmem>>, vector<1x4x38xf32>
    %329 = vector.shape_cast %328 : vector<1x4x38xf32> to vector<4x38xf32>
    %330 = vector.shape_cast %327 : vector<4x38xf32> to vector<1x4x38xf32>
    tpu.vector_store %arg11[%c5_178, %c0_179, %c0_180], %330 {strides = array<i32>} : memref<9x4x38xf32, #tpu.memory_space<vmem>>, vector<1x4x38xf32>,
    %cst_181 = arith.constant 0.000000e+00 : f32
    %331 = vector.broadcast %cst_181 : f32 to vector<4x38xf32>
    %c0_182 = arith.constant 0 : index
    %c18_183 = arith.constant 18 : index
    %c0_184 = arith.constant 0 : index
    %332 = vector.load %arg1[%c0_182, %c18_183, %c0_184] : memref<1x27x39xf32, #tpu.memory_space<vmem>>, vector<1x1x38xf32>
    %333 = vector.shape_cast %332 : vector<1x1x38xf32> to vector<1x38xf32>
    %334 = vector.broadcast %4 : vector<4x1xf32> to vector<4x38xf32>
    %335 = vector.broadcast %333 : vector<1x38xf32> to vector<4x38xf32>
    %336 = arith.mulf %334, %335 : vector<4x38xf32>
    %337 = arith.addf %331, %336 : vector<4x38xf32>
    %c0_185 = arith.constant 0 : index
    %c19_186 = arith.constant 19 : index
    %c0_187 = arith.constant 0 : index
    %338 = vector.load %arg1[%c0_185, %c19_186, %c0_187] : memref<1x27x39xf32, #tpu.memory_space<vmem>>, vector<1x1x38xf32>
    %339 = vector.shape_cast %338 : vector<1x1x38xf32> to vector<1x38xf32>
    %340 = vector.broadcast %6 : vector<4x1xf32> to vector<4x38xf32>
    %341 = vector.broadcast %339 : vector<1x38xf32> to vector<4x38xf32>
    %342 = arith.mulf %340, %341 : vector<4x38xf32>
    %343 = arith.addf %337, %342 : vector<4x38xf32>
    %c0_188 = arith.constant 0 : index
    %c20_189 = arith.constant 20 : index
    %c0_190 = arith.constant 0 : index
    %344 = vector.load %arg1[%c0_188, %c20_189, %c0_190] : memref<1x27x39xf32, #tpu.memory_space<vmem>>, vector<1x1x38xf32>
    %345 = vector.shape_cast %344 : vector<1x1x38xf32> to vector<1x38xf32>
    %346 = vector.broadcast %8 : vector<4x1xf32> to vector<4x38xf32>
    %347 = vector.broadcast %345 : vector<1x38xf32> to vector<4x38xf32>
    %348 = arith.mulf %346, %347 : vector<4x38xf32>
    %349 = arith.addf %343, %348 : vector<4x38xf32>
    %c0_191 = arith.constant 0 : index
    %c21_192 = arith.constant 21 : index
    %c0_193 = arith.constant 0 : index
    %350 = vector.load %arg1[%c0_191, %c21_192, %c0_193] : memref<1x27x39xf32, #tpu.memory_space<vmem>>, vector<1x1x38xf32>
    %351 = vector.shape_cast %350 : vector<1x1x38xf32> to vector<1x38xf32>
    %352 = vector.broadcast %10 : vector<4x1xf32> to vector<4x38xf32>
    %353 = vector.broadcast %351 : vector<1x38xf32> to vector<4x38xf32>
    %354 = arith.mulf %352, %353 : vector<4x38xf32>
    %355 = arith.addf %349, %354 : vector<4x38xf32>
    %c0_194 = arith.constant 0 : index
    %c22 = arith.constant 22 : index
    %c0_195 = arith.constant 0 : index
    %356 = vector.load %arg1[%c0_194, %c22, %c0_195] : memref<1x27x39xf32, #tpu.memory_space<vmem>>, vector<1x1x38xf32>
    %357 = vector.shape_cast %356 : vector<1x1x38xf32> to vector<1x38xf32>
    %358 = vector.broadcast %12 : vector<4x1xf32> to vector<4x38xf32>
    %359 = vector.broadcast %357 : vector<1x38xf32> to vector<4x38xf32>
    %360 = arith.mulf %358, %359 : vector<4x38xf32>
    %361 = arith.addf %355, %360 : vector<4x38xf32>
    %c0_196 = arith.constant 0 : index
    %c23 = arith.constant 23 : index
    %c0_197 = arith.constant 0 : index
    %362 = vector.load %arg1[%c0_196, %c23, %c0_197] : memref<1x27x39xf32, #tpu.memory_space<vmem>>, vector<1x1x38xf32>
    %363 = vector.shape_cast %362 : vector<1x1x38xf32> to vector<1x38xf32>
    %364 = vector.broadcast %14 : vector<4x1xf32> to vector<4x38xf32>
    %365 = vector.broadcast %363 : vector<1x38xf32> to vector<4x38xf32>
    %366 = arith.mulf %364, %365 : vector<4x38xf32>
    %367 = arith.addf %361, %366 : vector<4x38xf32>
    %c0_198 = arith.constant 0 : index
    %c24 = arith.constant 24 : index
    %c0_199 = arith.constant 0 : index
    %368 = vector.load %arg1[%c0_198, %c24, %c0_199] : memref<1x27x39xf32, #tpu.memory_space<vmem>>, vector<1x1x38xf32>
    %369 = vector.shape_cast %368 : vector<1x1x38xf32> to vector<1x38xf32>
    %370 = vector.broadcast %16 : vector<4x1xf32> to vector<4x38xf32>
    %371 = vector.broadcast %369 : vector<1x38xf32> to vector<4x38xf32>
    %372 = arith.mulf %370, %371 : vector<4x38xf32>
    %373 = arith.addf %367, %372 : vector<4x38xf32>
    %374 = vector.broadcast %0 : vector<4x1xf32> to vector<4x38xf32>
    %375 = arith.addf %373, %374 : vector<4x38xf32>
    %cst_200 = arith.constant 0.000000e+00 : f32
    %376 = vector.broadcast %cst_200 : f32 to vector<4x38xf32>
    %377 = arith.maximumf %375, %376 : vector<4x38xf32>
    %c6_201 = arith.constant 6 : index
    %c0_202 = arith.constant 0 : index
    %c0_203 = arith.constant 0 : index
    %378 = vector.load %arg11[%c6_201, %c0_202, %c0_203] : memref<9x4x38xf32, #tpu.memory_space<vmem>>, vector<1x4x38xf32>
    %379 = vector.shape_cast %378 : vector<1x4x38xf32> to vector<4x38xf32>
    %380 = vector.shape_cast %377 : vector<4x38xf32> to vector<1x4x38xf32>
    tpu.vector_store %arg11[%c6_201, %c0_202, %c0_203], %380 {strides = array<i32>} : memref<9x4x38xf32, #tpu.memory_space<vmem>>, vector<1x4x38xf32>,
    %cst_204 = arith.constant 0.000000e+00 : f32
    %381 = vector.broadcast %cst_204 : f32 to vector<4x38xf32>
    %c0_205 = arith.constant 0 : index
    %c21_206 = arith.constant 21 : index
    %c0_207 = arith.constant 0 : index
    %382 = vector.load %arg1[%c0_205, %c21_206, %c0_207] : memref<1x27x39xf32, #tpu.memory_space<vmem>>, vector<1x1x38xf32>
    %383 = vector.shape_cast %382 : vector<1x1x38xf32> to vector<1x38xf32>
    %384 = vector.broadcast %4 : vector<4x1xf32> to vector<4x38xf32>
    %385 = vector.broadcast %383 : vector<1x38xf32> to vector<4x38xf32>
    %386 = arith.mulf %384, %385 : vector<4x38xf32>
    %387 = arith.addf %381, %386 : vector<4x38xf32>
    %c0_208 = arith.constant 0 : index
    %c22_209 = arith.constant 22 : index
    %c0_210 = arith.constant 0 : index
    %388 = vector.load %arg1[%c0_208, %c22_209, %c0_210] : memref<1x27x39xf32, #tpu.memory_space<vmem>>, vector<1x1x38xf32>
    %389 = vector.shape_cast %388 : vector<1x1x38xf32> to vector<1x38xf32>
    %390 = vector.broadcast %6 : vector<4x1xf32> to vector<4x38xf32>
    %391 = vector.broadcast %389 : vector<1x38xf32> to vector<4x38xf32>
    %392 = arith.mulf %390, %391 : vector<4x38xf32>
    %393 = arith.addf %387, %392 : vector<4x38xf32>
    %c0_211 = arith.constant 0 : index
    %c23_212 = arith.constant 23 : index
    %c0_213 = arith.constant 0 : index
    %394 = vector.load %arg1[%c0_211, %c23_212, %c0_213] : memref<1x27x39xf32, #tpu.memory_space<vmem>>, vector<1x1x38xf32>
    %395 = vector.shape_cast %394 : vector<1x1x38xf32> to vector<1x38xf32>
    %396 = vector.broadcast %8 : vector<4x1xf32> to vector<4x38xf32>
    %397 = vector.broadcast %395 : vector<1x38xf32> to vector<4x38xf32>
    %398 = arith.mulf %396, %397 : vector<4x38xf32>
    %399 = arith.addf %393, %398 : vector<4x38xf32>
    %c0_214 = arith.constant 0 : index
    %c24_215 = arith.constant 24 : index
    %c0_216 = arith.constant 0 : index
    %400 = vector.load %arg1[%c0_214, %c24_215, %c0_216] : memref<1x27x39xf32, #tpu.memory_space<vmem>>, vector<1x1x38xf32>
    %401 = vector.shape_cast %400 : vector<1x1x38xf32> to vector<1x38xf32>
    %402 = vector.broadcast %10 : vector<4x1xf32> to vector<4x38xf32>
    %403 = vector.broadcast %401 : vector<1x38xf32> to vector<4x38xf32>
    %404 = arith.mulf %402, %403 : vector<4x38xf32>
    %405 = arith.addf %399, %404 : vector<4x38xf32>
    %c0_217 = arith.constant 0 : index
    %c25 = arith.constant 25 : index
    %c0_218 = arith.constant 0 : index
    %406 = vector.load %arg1[%c0_217, %c25, %c0_218] : memref<1x27x39xf32, #tpu.memory_space<vmem>>, vector<1x1x38xf32>
    %407 = vector.shape_cast %406 : vector<1x1x38xf32> to vector<1x38xf32>
    %408 = vector.broadcast %12 : vector<4x1xf32> to vector<4x38xf32>
    %409 = vector.broadcast %407 : vector<1x38xf32> to vector<4x38xf32>
    %410 = arith.mulf %408, %409 : vector<4x38xf32>
    %411 = arith.addf %405, %410 : vector<4x38xf32>
    %c0_219 = arith.constant 0 : index
    %c26 = arith.constant 26 : index
    %c0_220 = arith.constant 0 : index
    %412 = vector.load %arg1[%c0_219, %c26, %c0_220] : memref<1x27x39xf32, #tpu.memory_space<vmem>>, vector<1x1x38xf32>
    %413 = vector.shape_cast %412 : vector<1x1x38xf32> to vector<1x38xf32>
    %414 = vector.broadcast %14 : vector<4x1xf32> to vector<4x38xf32>
    %415 = vector.broadcast %413 : vector<1x38xf32> to vector<4x38xf32>
    %416 = arith.mulf %414, %415 : vector<4x38xf32>
    %417 = arith.addf %411, %416 : vector<4x38xf32>
    %c0_221 = arith.constant 0 : index
    %c0_222 = arith.constant 0 : index
    %c1_223 = arith.constant 1 : index
    %418 = vector.load %arg1[%c0_221, %c0_222, %c1_223] : memref<1x27x39xf32, #tpu.memory_space<vmem>>, vector<1x1x38xf32>
    %419 = vector.shape_cast %418 : vector<1x1x38xf32> to vector<1x38xf32>
    %420 = vector.broadcast %16 : vector<4x1xf32> to vector<4x38xf32>
    %421 = vector.broadcast %419 : vector<1x38xf32> to vector<4x38xf32>
    %422 = arith.mulf %420, %421 : vector<4x38xf32>
    %423 = arith.addf %417, %422 : vector<4x38xf32>
    %424 = vector.broadcast %0 : vector<4x1xf32> to vector<4x38xf32>
    %425 = arith.addf %423, %424 : vector<4x38xf32>
    %cst_224 = arith.constant 0.000000e+00 : f32
    %426 = vector.broadcast %cst_224 : f32 to vector<4x38xf32>
    %427 = arith.maximumf %425, %426 : vector<4x38xf32>
    %c7_225 = arith.constant 7 : index
    %c0_226 = arith.constant 0 : index
    %c0_227 = arith.constant 0 : index
    %428 = vector.load %arg11[%c7_225, %c0_226, %c0_227] : memref<9x4x38xf32, #tpu.memory_space<vmem>>, vector<1x4x38xf32>
    %429 = vector.shape_cast %428 : vector<1x4x38xf32> to vector<4x38xf32>
    %430 = vector.shape_cast %427 : vector<4x38xf32> to vector<1x4x38xf32>
    tpu.vector_store %arg11[%c7_225, %c0_226, %c0_227], %430 {strides = array<i32>} : memref<9x4x38xf32, #tpu.memory_space<vmem>>, vector<1x4x38xf32>,
    %cst_228 = arith.constant 0.000000e+00 : f32
    %431 = vector.broadcast %cst_228 : f32 to vector<4x38xf32>
    %c0_229 = arith.constant 0 : index
    %c24_230 = arith.constant 24 : index
    %c0_231 = arith.constant 0 : index
    %432 = vector.load %arg1[%c0_229, %c24_230, %c0_231] : memref<1x27x39xf32, #tpu.memory_space<vmem>>, vector<1x1x38xf32>
    %433 = vector.shape_cast %432 : vector<1x1x38xf32> to vector<1x38xf32>
    %434 = vector.broadcast %4 : vector<4x1xf32> to vector<4x38xf32>
    %435 = vector.broadcast %433 : vector<1x38xf32> to vector<4x38xf32>
    %436 = arith.mulf %434, %435 : vector<4x38xf32>
    %437 = arith.addf %431, %436 : vector<4x38xf32>
    %c0_232 = arith.constant 0 : index
    %c25_233 = arith.constant 25 : index
    %c0_234 = arith.constant 0 : index
    %438 = vector.load %arg1[%c0_232, %c25_233, %c0_234] : memref<1x27x39xf32, #tpu.memory_space<vmem>>, vector<1x1x38xf32>
    %439 = vector.shape_cast %438 : vector<1x1x38xf32> to vector<1x38xf32>
    %440 = vector.broadcast %6 : vector<4x1xf32> to vector<4x38xf32>
    %441 = vector.broadcast %439 : vector<1x38xf32> to vector<4x38xf32>
    %442 = arith.mulf %440, %441 : vector<4x38xf32>
    %443 = arith.addf %437, %442 : vector<4x38xf32>
    %c0_235 = arith.constant 0 : index
    %c26_236 = arith.constant 26 : index
    %c0_237 = arith.constant 0 : index
    %444 = vector.load %arg1[%c0_235, %c26_236, %c0_237] : memref<1x27x39xf32, #tpu.memory_space<vmem>>, vector<1x1x38xf32>
    %445 = vector.shape_cast %444 : vector<1x1x38xf32> to vector<1x38xf32>
    %446 = vector.broadcast %8 : vector<4x1xf32> to vector<4x38xf32>
    %447 = vector.broadcast %445 : vector<1x38xf32> to vector<4x38xf32>
    %448 = arith.mulf %446, %447 : vector<4x38xf32>
    %449 = arith.addf %443, %448 : vector<4x38xf32>
    %c0_238 = arith.constant 0 : index
    %c0_239 = arith.constant 0 : index
    %c1_240 = arith.constant 1 : index
    %450 = vector.load %arg1[%c0_238, %c0_239, %c1_240] : memref<1x27x39xf32, #tpu.memory_space<vmem>>, vector<1x1x38xf32>
    %451 = vector.shape_cast %450 : vector<1x1x38xf32> to vector<1x38xf32>
    %452 = vector.broadcast %10 : vector<4x1xf32> to vector<4x38xf32>
    %453 = vector.broadcast %451 : vector<1x38xf32> to vector<4x38xf32>
    %454 = arith.mulf %452, %453 : vector<4x38xf32>
    %455 = arith.addf %449, %454 : vector<4x38xf32>
    %c0_241 = arith.constant 0 : index
    %c1_242 = arith.constant 1 : index
    %c1_243 = arith.constant 1 : index
    %456 = vector.load %arg1[%c0_241, %c1_242, %c1_243] : memref<1x27x39xf32, #tpu.memory_space<vmem>>, vector<1x1x38xf32>
    %457 = vector.shape_cast %456 : vector<1x1x38xf32> to vector<1x38xf32>
    %458 = vector.broadcast %12 : vector<4x1xf32> to vector<4x38xf32>
    %459 = vector.broadcast %457 : vector<1x38xf32> to vector<4x38xf32>
    %460 = arith.mulf %458, %459 : vector<4x38xf32>
    %461 = arith.addf %455, %460 : vector<4x38xf32>
    %c0_244 = arith.constant 0 : index
    %c2_245 = arith.constant 2 : index
    %c1_246 = arith.constant 1 : index
    %462 = vector.load %arg1[%c0_244, %c2_245, %c1_246] : memref<1x27x39xf32, #tpu.memory_space<vmem>>, vector<1x1x38xf32>
    %463 = vector.shape_cast %462 : vector<1x1x38xf32> to vector<1x38xf32>
    %464 = vector.broadcast %14 : vector<4x1xf32> to vector<4x38xf32>
    %465 = vector.broadcast %463 : vector<1x38xf32> to vector<4x38xf32>
    %466 = arith.mulf %464, %465 : vector<4x38xf32>
    %467 = arith.addf %461, %466 : vector<4x38xf32>
    %c0_247 = arith.constant 0 : index
    %c3_248 = arith.constant 3 : index
    %c1_249 = arith.constant 1 : index
    %468 = vector.load %arg1[%c0_247, %c3_248, %c1_249] : memref<1x27x39xf32, #tpu.memory_space<vmem>>, vector<1x1x38xf32>
    %469 = vector.shape_cast %468 : vector<1x1x38xf32> to vector<1x38xf32>
    %470 = vector.broadcast %16 : vector<4x1xf32> to vector<4x38xf32>
    %471 = vector.broadcast %469 : vector<1x38xf32> to vector<4x38xf32>
    %472 = arith.mulf %470, %471 : vector<4x38xf32>
    %473 = arith.addf %467, %472 : vector<4x38xf32>
    %474 = vector.broadcast %0 : vector<4x1xf32> to vector<4x38xf32>
    %475 = arith.addf %473, %474 : vector<4x38xf32>
    %cst_250 = arith.constant 0.000000e+00 : f32
    %476 = vector.broadcast %cst_250 : f32 to vector<4x38xf32>
    %477 = arith.maximumf %475, %476 : vector<4x38xf32>
    %c8_251 = arith.constant 8 : index
    %c0_252 = arith.constant 0 : index
    %c0_253 = arith.constant 0 : index
    %478 = vector.load %arg11[%c8_251, %c0_252, %c0_253] : memref<9x4x38xf32, #tpu.memory_space<vmem>>, vector<1x4x38xf32>
    %479 = vector.shape_cast %478 : vector<1x4x38xf32> to vector<4x38xf32>
    %480 = vector.shape_cast %477 : vector<4x38xf32> to vector<1x4x38xf32>
    tpu.vector_store %arg11[%c8_251, %c0_252, %c0_253], %480 {strides = array<i32>} : memref<9x4x38xf32, #tpu.memory_space<vmem>>, vector<1x4x38xf32>,
    %cst_254 = arith.constant 0.000000e+00 : f32
    %481 = vector.broadcast %cst_254 : f32 to vector<8x37xf32>
    %c0_255 = arith.constant 0 : index
    %c0_256 = arith.constant 0 : index
    %c0_257 = arith.constant 0 : index
    %482 = vector.load %arg11[%c0_255, %c0_256, %c0_257] : memref<9x4x38xf32, #tpu.memory_space<vmem>>, vector<1x4x37xf32>
    %483 = vector.shape_cast %482 : vector<1x4x37xf32> to vector<4x37xf32>
    %484 = vector.extract_strided_slice %18 {offsets = [0, 0], sizes = [8, 1], strides = [1, 1]} : vector<8x4xf32> to vector<8x1xf32>
    %485 = vector.extract_strided_slice %483 {offsets = [0, 0], sizes = [1, 37], strides = [1, 1]} : vector<4x37xf32> to vector<1x37xf32>
    %486 = vector.broadcast %484 : vector<8x1xf32> to vector<8x37xf32>
    %487 = vector.broadcast %485 : vector<1x37xf32> to vector<8x37xf32>
    %488 = arith.mulf %486, %487 : vector<8x37xf32>
    %489 = arith.addf %481, %488 : vector<8x37xf32>
    %490 = vector.extract_strided_slice %18 {offsets = [0, 1], sizes = [8, 1], strides = [1, 1]} : vector<8x4xf32> to vector<8x1xf32>
    %491 = vector.extract_strided_slice %483 {offsets = [1, 0], sizes = [1, 37], strides = [1, 1]} : vector<4x37xf32> to vector<1x37xf32>
    %492 = vector.broadcast %490 : vector<8x1xf32> to vector<8x37xf32>
    %493 = vector.broadcast %491 : vector<1x37xf32> to vector<8x37xf32>
    %494 = arith.mulf %492, %493 : vector<8x37xf32>
    %495 = arith.addf %489, %494 : vector<8x37xf32>
    %496 = vector.extract_strided_slice %18 {offsets = [0, 2], sizes = [8, 1], strides = [1, 1]} : vector<8x4xf32> to vector<8x1xf32>
    %497 = vector.extract_strided_slice %483 {offsets = [2, 0], sizes = [1, 37], strides = [1, 1]} : vector<4x37xf32> to vector<1x37xf32>
    %498 = vector.broadcast %496 : vector<8x1xf32> to vector<8x37xf32>
    %499 = vector.broadcast %497 : vector<1x37xf32> to vector<8x37xf32>
    %500 = arith.mulf %498, %499 : vector<8x37xf32>
    %501 = arith.addf %495, %500 : vector<8x37xf32>
    %502 = vector.extract_strided_slice %18 {offsets = [0, 3], sizes = [8, 1], strides = [1, 1]} : vector<8x4xf32> to vector<8x1xf32>
    %503 = vector.extract_strided_slice %483 {offsets = [3, 0], sizes = [1, 37], strides = [1, 1]} : vector<4x37xf32> to vector<1x37xf32>
    %504 = vector.broadcast %502 : vector<8x1xf32> to vector<8x37xf32>
    %505 = vector.broadcast %503 : vector<1x37xf32> to vector<8x37xf32>
    %506 = arith.mulf %504, %505 : vector<8x37xf32>
    %507 = arith.addf %501, %506 : vector<8x37xf32>
    %c1_258 = arith.constant 1 : index
    %c0_259 = arith.constant 0 : index
    %c0_260 = arith.constant 0 : index
    %508 = vector.load %arg11[%c1_258, %c0_259, %c0_260] : memref<9x4x38xf32, #tpu.memory_space<vmem>>, vector<1x4x37xf32>
    %509 = vector.shape_cast %508 : vector<1x4x37xf32> to vector<4x37xf32>
    %510 = vector.extract_strided_slice %20 {offsets = [0, 0], sizes = [8, 1], strides = [1, 1]} : vector<8x4xf32> to vector<8x1xf32>
    %511 = vector.extract_strided_slice %509 {offsets = [0, 0], sizes = [1, 37], strides = [1, 1]} : vector<4x37xf32> to vector<1x37xf32>
    %512 = vector.broadcast %510 : vector<8x1xf32> to vector<8x37xf32>
    %513 = vector.broadcast %511 : vector<1x37xf32> to vector<8x37xf32>
    %514 = arith.mulf %512, %513 : vector<8x37xf32>
    %515 = arith.addf %507, %514 : vector<8x37xf32>
    %516 = vector.extract_strided_slice %20 {offsets = [0, 1], sizes = [8, 1], strides = [1, 1]} : vector<8x4xf32> to vector<8x1xf32>
    %517 = vector.extract_strided_slice %509 {offsets = [1, 0], sizes = [1, 37], strides = [1, 1]} : vector<4x37xf32> to vector<1x37xf32>
    %518 = vector.broadcast %516 : vector<8x1xf32> to vector<8x37xf32>
    %519 = vector.broadcast %517 : vector<1x37xf32> to vector<8x37xf32>
    %520 = arith.mulf %518, %519 : vector<8x37xf32>
    %521 = arith.addf %515, %520 : vector<8x37xf32>
    %522 = vector.extract_strided_slice %20 {offsets = [0, 2], sizes = [8, 1], strides = [1, 1]} : vector<8x4xf32> to vector<8x1xf32>
    %523 = vector.extract_strided_slice %509 {offsets = [2, 0], sizes = [1, 37], strides = [1, 1]} : vector<4x37xf32> to vector<1x37xf32>
    %524 = vector.broadcast %522 : vector<8x1xf32> to vector<8x37xf32>
    %525 = vector.broadcast %523 : vector<1x37xf32> to vector<8x37xf32>
    %526 = arith.mulf %524, %525 : vector<8x37xf32>
    %527 = arith.addf %521, %526 : vector<8x37xf32>
    %528 = vector.extract_strided_slice %20 {offsets = [0, 3], sizes = [8, 1], strides = [1, 1]} : vector<8x4xf32> to vector<8x1xf32>
    %529 = vector.extract_strided_slice %509 {offsets = [3, 0], sizes = [1, 37], strides = [1, 1]} : vector<4x37xf32> to vector<1x37xf32>
    %530 = vector.broadcast %528 : vector<8x1xf32> to vector<8x37xf32>
    %531 = vector.broadcast %529 : vector<1x37xf32> to vector<8x37xf32>
    %532 = arith.mulf %530, %531 : vector<8x37xf32>
    %533 = arith.addf %527, %532 : vector<8x37xf32>
    %c2_261 = arith.constant 2 : index
    %c0_262 = arith.constant 0 : index
    %c0_263 = arith.constant 0 : index
    %534 = vector.load %arg11[%c2_261, %c0_262, %c0_263] : memref<9x4x38xf32, #tpu.memory_space<vmem>>, vector<1x4x37xf32>
    %535 = vector.shape_cast %534 : vector<1x4x37xf32> to vector<4x37xf32>
    %536 = vector.extract_strided_slice %22 {offsets = [0, 0], sizes = [8, 1], strides = [1, 1]} : vector<8x4xf32> to vector<8x1xf32>
    %537 = vector.extract_strided_slice %535 {offsets = [0, 0], sizes = [1, 37], strides = [1, 1]} : vector<4x37xf32> to vector<1x37xf32>
    %538 = vector.broadcast %536 : vector<8x1xf32> to vector<8x37xf32>
    %539 = vector.broadcast %537 : vector<1x37xf32> to vector<8x37xf32>
    %540 = arith.mulf %538, %539 : vector<8x37xf32>
    %541 = arith.addf %533, %540 : vector<8x37xf32>
    %542 = vector.extract_strided_slice %22 {offsets = [0, 1], sizes = [8, 1], strides = [1, 1]} : vector<8x4xf32> to vector<8x1xf32>
    %543 = vector.extract_strided_slice %535 {offsets = [1, 0], sizes = [1, 37], strides = [1, 1]} : vector<4x37xf32> to vector<1x37xf32>
    %544 = vector.broadcast %542 : vector<8x1xf32> to vector<8x37xf32>
    %545 = vector.broadcast %543 : vector<1x37xf32> to vector<8x37xf32>
    %546 = arith.mulf %544, %545 : vector<8x37xf32>
    %547 = arith.addf %541, %546 : vector<8x37xf32>
    %548 = vector.extract_strided_slice %22 {offsets = [0, 2], sizes = [8, 1], strides = [1, 1]} : vector<8x4xf32> to vector<8x1xf32>
    %549 = vector.extract_strided_slice %535 {offsets = [2, 0], sizes = [1, 37], strides = [1, 1]} : vector<4x37xf32> to vector<1x37xf32>
    %550 = vector.broadcast %548 : vector<8x1xf32> to vector<8x37xf32>
    %551 = vector.broadcast %549 : vector<1x37xf32> to vector<8x37xf32>
    %552 = arith.mulf %550, %551 : vector<8x37xf32>
    %553 = arith.addf %547, %552 : vector<8x37xf32>
    %554 = vector.extract_strided_slice %22 {offsets = [0, 3], sizes = [8, 1], strides = [1, 1]} : vector<8x4xf32> to vector<8x1xf32>
    %555 = vector.extract_strided_slice %535 {offsets = [3, 0], sizes = [1, 37], strides = [1, 1]} : vector<4x37xf32> to vector<1x37xf32>
    %556 = vector.broadcast %554 : vector<8x1xf32> to vector<8x37xf32>
    %557 = vector.broadcast %555 : vector<1x37xf32> to vector<8x37xf32>
    %558 = arith.mulf %556, %557 : vector<8x37xf32>
    %559 = arith.addf %553, %558 : vector<8x37xf32>
    %c3_264 = arith.constant 3 : index
    %c0_265 = arith.constant 0 : index
    %c0_266 = arith.constant 0 : index
    %560 = vector.load %arg11[%c3_264, %c0_265, %c0_266] : memref<9x4x38xf32, #tpu.memory_space<vmem>>, vector<1x4x37xf32>
    %561 = vector.shape_cast %560 : vector<1x4x37xf32> to vector<4x37xf32>
    %562 = vector.extract_strided_slice %24 {offsets = [0, 0], sizes = [8, 1], strides = [1, 1]} : vector<8x4xf32> to vector<8x1xf32>
    %563 = vector.extract_strided_slice %561 {offsets = [0, 0], sizes = [1, 37], strides = [1, 1]} : vector<4x37xf32> to vector<1x37xf32>
    %564 = vector.broadcast %562 : vector<8x1xf32> to vector<8x37xf32>
    %565 = vector.broadcast %563 : vector<1x37xf32> to vector<8x37xf32>
    %566 = arith.mulf %564, %565 : vector<8x37xf32>
    %567 = arith.addf %559, %566 : vector<8x37xf32>
    %568 = vector.extract_strided_slice %24 {offsets = [0, 1], sizes = [8, 1], strides = [1, 1]} : vector<8x4xf32> to vector<8x1xf32>
    %569 = vector.extract_strided_slice %561 {offsets = [1, 0], sizes = [1, 37], strides = [1, 1]} : vector<4x37xf32> to vector<1x37xf32>
    %570 = vector.broadcast %568 : vector<8x1xf32> to vector<8x37xf32>
    %571 = vector.broadcast %569 : vector<1x37xf32> to vector<8x37xf32>
    %572 = arith.mulf %570, %571 : vector<8x37xf32>
    %573 = arith.addf %567, %572 : vector<8x37xf32>
    %574 = vector.extract_strided_slice %24 {offsets = [0, 2], sizes = [8, 1], strides = [1, 1]} : vector<8x4xf32> to vector<8x1xf32>
    %575 = vector.extract_strided_slice %561 {offsets = [2, 0], sizes = [1, 37], strides = [1, 1]} : vector<4x37xf32> to vector<1x37xf32>
    %576 = vector.broadcast %574 : vector<8x1xf32> to vector<8x37xf32>
    %577 = vector.broadcast %575 : vector<1x37xf32> to vector<8x37xf32>
    %578 = arith.mulf %576, %577 : vector<8x37xf32>
    %579 = arith.addf %573, %578 : vector<8x37xf32>
    %580 = vector.extract_strided_slice %24 {offsets = [0, 3], sizes = [8, 1], strides = [1, 1]} : vector<8x4xf32> to vector<8x1xf32>
    %581 = vector.extract_strided_slice %561 {offsets = [3, 0], sizes = [1, 37], strides = [1, 1]} : vector<4x37xf32> to vector<1x37xf32>
    %582 = vector.broadcast %580 : vector<8x1xf32> to vector<8x37xf32>
    %583 = vector.broadcast %581 : vector<1x37xf32> to vector<8x37xf32>
    %584 = arith.mulf %582, %583 : vector<8x37xf32>
    %585 = arith.addf %579, %584 : vector<8x37xf32>
    %c4_267 = arith.constant 4 : index
    %c0_268 = arith.constant 0 : index
    %c0_269 = arith.constant 0 : index
    %586 = vector.load %arg11[%c4_267, %c0_268, %c0_269] : memref<9x4x38xf32, #tpu.memory_space<vmem>>, vector<1x4x37xf32>
    %587 = vector.shape_cast %586 : vector<1x4x37xf32> to vector<4x37xf32>
    %588 = vector.extract_strided_slice %26 {offsets = [0, 0], sizes = [8, 1], strides = [1, 1]} : vector<8x4xf32> to vector<8x1xf32>
    %589 = vector.extract_strided_slice %587 {offsets = [0, 0], sizes = [1, 37], strides = [1, 1]} : vector<4x37xf32> to vector<1x37xf32>
    %590 = vector.broadcast %588 : vector<8x1xf32> to vector<8x37xf32>
    %591 = vector.broadcast %589 : vector<1x37xf32> to vector<8x37xf32>
    %592 = arith.mulf %590, %591 : vector<8x37xf32>
    %593 = arith.addf %585, %592 : vector<8x37xf32>
    %594 = vector.extract_strided_slice %26 {offsets = [0, 1], sizes = [8, 1], strides = [1, 1]} : vector<8x4xf32> to vector<8x1xf32>
    %595 = vector.extract_strided_slice %587 {offsets = [1, 0], sizes = [1, 37], strides = [1, 1]} : vector<4x37xf32> to vector<1x37xf32>
    %596 = vector.broadcast %594 : vector<8x1xf32> to vector<8x37xf32>
    %597 = vector.broadcast %595 : vector<1x37xf32> to vector<8x37xf32>
    %598 = arith.mulf %596, %597 : vector<8x37xf32>
    %599 = arith.addf %593, %598 : vector<8x37xf32>
    %600 = vector.extract_strided_slice %26 {offsets = [0, 2], sizes = [8, 1], strides = [1, 1]} : vector<8x4xf32> to vector<8x1xf32>
    %601 = vector.extract_strided_slice %587 {offsets = [2, 0], sizes = [1, 37], strides = [1, 1]} : vector<4x37xf32> to vector<1x37xf32>
    %602 = vector.broadcast %600 : vector<8x1xf32> to vector<8x37xf32>
    %603 = vector.broadcast %601 : vector<1x37xf32> to vector<8x37xf32>
    %604 = arith.mulf %602, %603 : vector<8x37xf32>
    %605 = arith.addf %599, %604 : vector<8x37xf32>
    %606 = vector.extract_strided_slice %26 {offsets = [0, 3], sizes = [8, 1], strides = [1, 1]} : vector<8x4xf32> to vector<8x1xf32>
    %607 = vector.extract_strided_slice %587 {offsets = [3, 0], sizes = [1, 37], strides = [1, 1]} : vector<4x37xf32> to vector<1x37xf32>
    %608 = vector.broadcast %606 : vector<8x1xf32> to vector<8x37xf32>
    %609 = vector.broadcast %607 : vector<1x37xf32> to vector<8x37xf32>
    %610 = arith.mulf %608, %609 : vector<8x37xf32>
    %611 = arith.addf %605, %610 : vector<8x37xf32>
    %c5_270 = arith.constant 5 : index
    %c0_271 = arith.constant 0 : index
    %c0_272 = arith.constant 0 : index
    %612 = vector.load %arg11[%c5_270, %c0_271, %c0_272] : memref<9x4x38xf32, #tpu.memory_space<vmem>>, vector<1x4x37xf32>
    %613 = vector.shape_cast %612 : vector<1x4x37xf32> to vector<4x37xf32>
    %614 = vector.extract_strided_slice %28 {offsets = [0, 0], sizes = [8, 1], strides = [1, 1]} : vector<8x4xf32> to vector<8x1xf32>
    %615 = vector.extract_strided_slice %613 {offsets = [0, 0], sizes = [1, 37], strides = [1, 1]} : vector<4x37xf32> to vector<1x37xf32>
    %616 = vector.broadcast %614 : vector<8x1xf32> to vector<8x37xf32>
    %617 = vector.broadcast %615 : vector<1x37xf32> to vector<8x37xf32>
    %618 = arith.mulf %616, %617 : vector<8x37xf32>
    %619 = arith.addf %611, %618 : vector<8x37xf32>
    %620 = vector.extract_strided_slice %28 {offsets = [0, 1], sizes = [8, 1], strides = [1, 1]} : vector<8x4xf32> to vector<8x1xf32>
    %621 = vector.extract_strided_slice %613 {offsets = [1, 0], sizes = [1, 37], strides = [1, 1]} : vector<4x37xf32> to vector<1x37xf32>
    %622 = vector.broadcast %620 : vector<8x1xf32> to vector<8x37xf32>
    %623 = vector.broadcast %621 : vector<1x37xf32> to vector<8x37xf32>
    %624 = arith.mulf %622, %623 : vector<8x37xf32>
    %625 = arith.addf %619, %624 : vector<8x37xf32>
    %626 = vector.extract_strided_slice %28 {offsets = [0, 2], sizes = [8, 1], strides = [1, 1]} : vector<8x4xf32> to vector<8x1xf32>
    %627 = vector.extract_strided_slice %613 {offsets = [2, 0], sizes = [1, 37], strides = [1, 1]} : vector<4x37xf32> to vector<1x37xf32>
    %628 = vector.broadcast %626 : vector<8x1xf32> to vector<8x37xf32>
    %629 = vector.broadcast %627 : vector<1x37xf32> to vector<8x37xf32>
    %630 = arith.mulf %628, %629 : vector<8x37xf32>
    %631 = arith.addf %625, %630 : vector<8x37xf32>
    %632 = vector.extract_strided_slice %28 {offsets = [0, 3], sizes = [8, 1], strides = [1, 1]} : vector<8x4xf32> to vector<8x1xf32>
    %633 = vector.extract_strided_slice %613 {offsets = [3, 0], sizes = [1, 37], strides = [1, 1]} : vector<4x37xf32> to vector<1x37xf32>
    %634 = vector.broadcast %632 : vector<8x1xf32> to vector<8x37xf32>
    %635 = vector.broadcast %633 : vector<1x37xf32> to vector<8x37xf32>
    %636 = arith.mulf %634, %635 : vector<8x37xf32>
    %637 = arith.addf %631, %636 : vector<8x37xf32>
    %c6_273 = arith.constant 6 : index
    %c0_274 = arith.constant 0 : index
    %c0_275 = arith.constant 0 : index
    %638 = vector.load %arg11[%c6_273, %c0_274, %c0_275] : memref<9x4x38xf32, #tpu.memory_space<vmem>>, vector<1x4x37xf32>
    %639 = vector.shape_cast %638 : vector<1x4x37xf32> to vector<4x37xf32>
    %640 = vector.extract_strided_slice %30 {offsets = [0, 0], sizes = [8, 1], strides = [1, 1]} : vector<8x4xf32> to vector<8x1xf32>
    %641 = vector.extract_strided_slice %639 {offsets = [0, 0], sizes = [1, 37], strides = [1, 1]} : vector<4x37xf32> to vector<1x37xf32>
    %642 = vector.broadcast %640 : vector<8x1xf32> to vector<8x37xf32>
    %643 = vector.broadcast %641 : vector<1x37xf32> to vector<8x37xf32>
    %644 = arith.mulf %642, %643 : vector<8x37xf32>
    %645 = arith.addf %637, %644 : vector<8x37xf32>
    %646 = vector.extract_strided_slice %30 {offsets = [0, 1], sizes = [8, 1], strides = [1, 1]} : vector<8x4xf32> to vector<8x1xf32>
    %647 = vector.extract_strided_slice %639 {offsets = [1, 0], sizes = [1, 37], strides = [1, 1]} : vector<4x37xf32> to vector<1x37xf32>
    %648 = vector.broadcast %646 : vector<8x1xf32> to vector<8x37xf32>
    %649 = vector.broadcast %647 : vector<1x37xf32> to vector<8x37xf32>
    %650 = arith.mulf %648, %649 : vector<8x37xf32>
    %651 = arith.addf %645, %650 : vector<8x37xf32>
    %652 = vector.extract_strided_slice %30 {offsets = [0, 2], sizes = [8, 1], strides = [1, 1]} : vector<8x4xf32> to vector<8x1xf32>
    %653 = vector.extract_strided_slice %639 {offsets = [2, 0], sizes = [1, 37], strides = [1, 1]} : vector<4x37xf32> to vector<1x37xf32>
    %654 = vector.broadcast %652 : vector<8x1xf32> to vector<8x37xf32>
    %655 = vector.broadcast %653 : vector<1x37xf32> to vector<8x37xf32>
    %656 = arith.mulf %654, %655 : vector<8x37xf32>
    %657 = arith.addf %651, %656 : vector<8x37xf32>
    %658 = vector.extract_strided_slice %30 {offsets = [0, 3], sizes = [8, 1], strides = [1, 1]} : vector<8x4xf32> to vector<8x1xf32>
    %659 = vector.extract_strided_slice %639 {offsets = [3, 0], sizes = [1, 37], strides = [1, 1]} : vector<4x37xf32> to vector<1x37xf32>
    %660 = vector.broadcast %658 : vector<8x1xf32> to vector<8x37xf32>
    %661 = vector.broadcast %659 : vector<1x37xf32> to vector<8x37xf32>
    %662 = arith.mulf %660, %661 : vector<8x37xf32>
    %663 = arith.addf %657, %662 : vector<8x37xf32>
    %664 = vector.broadcast %1 : vector<8x1xf32> to vector<8x37xf32>
    %665 = arith.addf %663, %664 : vector<8x37xf32>
    %cst_276 = arith.constant 0.000000e+00 : f32
    %666 = vector.broadcast %cst_276 : f32 to vector<8x37xf32>
    %667 = arith.maximumf %665, %666 : vector<8x37xf32>
    %c0_277 = arith.constant 0 : index
    %c0_278 = arith.constant 0 : index
    %c0_279 = arith.constant 0 : index
    %668 = vector.load %arg12[%c0_277, %c0_278, %c0_279] : memref<3x8x37xf32, #tpu.memory_space<vmem>>, vector<1x8x37xf32>
    %669 = vector.shape_cast %668 : vector<1x8x37xf32> to vector<8x37xf32>
    %670 = vector.shape_cast %667 : vector<8x37xf32> to vector<1x8x37xf32>
    tpu.vector_store %arg12[%c0_277, %c0_278, %c0_279], %670 {strides = array<i32>} : memref<3x8x37xf32, #tpu.memory_space<vmem>>, vector<1x8x37xf32>,
    %cst_280 = arith.constant 0.000000e+00 : f32
    %671 = vector.broadcast %cst_280 : f32 to vector<8x37xf32>
    %c3_281 = arith.constant 3 : index
    %c0_282 = arith.constant 0 : index
    %c0_283 = arith.constant 0 : index
    %672 = vector.load %arg11[%c3_281, %c0_282, %c0_283] : memref<9x4x38xf32, #tpu.memory_space<vmem>>, vector<1x4x37xf32>
    %673 = vector.shape_cast %672 : vector<1x4x37xf32> to vector<4x37xf32>
    %674 = vector.extract_strided_slice %18 {offsets = [0, 0], sizes = [8, 1], strides = [1, 1]} : vector<8x4xf32> to vector<8x1xf32>
    %675 = vector.extract_strided_slice %673 {offsets = [0, 0], sizes = [1, 37], strides = [1, 1]} : vector<4x37xf32> to vector<1x37xf32>
    %676 = vector.broadcast %674 : vector<8x1xf32> to vector<8x37xf32>
    %677 = vector.broadcast %675 : vector<1x37xf32> to vector<8x37xf32>
    %678 = arith.mulf %676, %677 : vector<8x37xf32>
    %679 = arith.addf %671, %678 : vector<8x37xf32>
    %680 = vector.extract_strided_slice %18 {offsets = [0, 1], sizes = [8, 1], strides = [1, 1]} : vector<8x4xf32> to vector<8x1xf32>
    %681 = vector.extract_strided_slice %673 {offsets = [1, 0], sizes = [1, 37], strides = [1, 1]} : vector<4x37xf32> to vector<1x37xf32>
    %682 = vector.broadcast %680 : vector<8x1xf32> to vector<8x37xf32>
    %683 = vector.broadcast %681 : vector<1x37xf32> to vector<8x37xf32>
    %684 = arith.mulf %682, %683 : vector<8x37xf32>
    %685 = arith.addf %679, %684 : vector<8x37xf32>
    %686 = vector.extract_strided_slice %18 {offsets = [0, 2], sizes = [8, 1], strides = [1, 1]} : vector<8x4xf32> to vector<8x1xf32>
    %687 = vector.extract_strided_slice %673 {offsets = [2, 0], sizes = [1, 37], strides = [1, 1]} : vector<4x37xf32> to vector<1x37xf32>
    %688 = vector.broadcast %686 : vector<8x1xf32> to vector<8x37xf32>
    %689 = vector.broadcast %687 : vector<1x37xf32> to vector<8x37xf32>
    %690 = arith.mulf %688, %689 : vector<8x37xf32>
    %691 = arith.addf %685, %690 : vector<8x37xf32>
    %692 = vector.extract_strided_slice %18 {offsets = [0, 3], sizes = [8, 1], strides = [1, 1]} : vector<8x4xf32> to vector<8x1xf32>
    %693 = vector.extract_strided_slice %673 {offsets = [3, 0], sizes = [1, 37], strides = [1, 1]} : vector<4x37xf32> to vector<1x37xf32>
    %694 = vector.broadcast %692 : vector<8x1xf32> to vector<8x37xf32>
    %695 = vector.broadcast %693 : vector<1x37xf32> to vector<8x37xf32>
    %696 = arith.mulf %694, %695 : vector<8x37xf32>
    %697 = arith.addf %691, %696 : vector<8x37xf32>
    %c4_284 = arith.constant 4 : index
    %c0_285 = arith.constant 0 : index
    %c0_286 = arith.constant 0 : index
    %698 = vector.load %arg11[%c4_284, %c0_285, %c0_286] : memref<9x4x38xf32, #tpu.memory_space<vmem>>, vector<1x4x37xf32>
    %699 = vector.shape_cast %698 : vector<1x4x37xf32> to vector<4x37xf32>
    %700 = vector.extract_strided_slice %20 {offsets = [0, 0], sizes = [8, 1], strides = [1, 1]} : vector<8x4xf32> to vector<8x1xf32>
    %701 = vector.extract_strided_slice %699 {offsets = [0, 0], sizes = [1, 37], strides = [1, 1]} : vector<4x37xf32> to vector<1x37xf32>
    %702 = vector.broadcast %700 : vector<8x1xf32> to vector<8x37xf32>
    %703 = vector.broadcast %701 : vector<1x37xf32> to vector<8x37xf32>
    %704 = arith.mulf %702, %703 : vector<8x37xf32>
    %705 = arith.addf %697, %704 : vector<8x37xf32>
    %706 = vector.extract_strided_slice %20 {offsets = [0, 1], sizes = [8, 1], strides = [1, 1]} : vector<8x4xf32> to vector<8x1xf32>
    %707 = vector.extract_strided_slice %699 {offsets = [1, 0], sizes = [1, 37], strides = [1, 1]} : vector<4x37xf32> to vector<1x37xf32>
    %708 = vector.broadcast %706 : vector<8x1xf32> to vector<8x37xf32>
    %709 = vector.broadcast %707 : vector<1x37xf32> to vector<8x37xf32>
    %710 = arith.mulf %708, %709 : vector<8x37xf32>
    %711 = arith.addf %705, %710 : vector<8x37xf32>
    %712 = vector.extract_strided_slice %20 {offsets = [0, 2], sizes = [8, 1], strides = [1, 1]} : vector<8x4xf32> to vector<8x1xf32>
    %713 = vector.extract_strided_slice %699 {offsets = [2, 0], sizes = [1, 37], strides = [1, 1]} : vector<4x37xf32> to vector<1x37xf32>
    %714 = vector.broadcast %712 : vector<8x1xf32> to vector<8x37xf32>
    %715 = vector.broadcast %713 : vector<1x37xf32> to vector<8x37xf32>
    %716 = arith.mulf %714, %715 : vector<8x37xf32>
    %717 = arith.addf %711, %716 : vector<8x37xf32>
    %718 = vector.extract_strided_slice %20 {offsets = [0, 3], sizes = [8, 1], strides = [1, 1]} : vector<8x4xf32> to vector<8x1xf32>
    %719 = vector.extract_strided_slice %699 {offsets = [3, 0], sizes = [1, 37], strides = [1, 1]} : vector<4x37xf32> to vector<1x37xf32>
    %720 = vector.broadcast %718 : vector<8x1xf32> to vector<8x37xf32>
    %721 = vector.broadcast %719 : vector<1x37xf32> to vector<8x37xf32>
    %722 = arith.mulf %720, %721 : vector<8x37xf32>
    %723 = arith.addf %717, %722 : vector<8x37xf32>
    %c5_287 = arith.constant 5 : index
    %c0_288 = arith.constant 0 : index
    %c0_289 = arith.constant 0 : index
    %724 = vector.load %arg11[%c5_287, %c0_288, %c0_289] : memref<9x4x38xf32, #tpu.memory_space<vmem>>, vector<1x4x37xf32>
    %725 = vector.shape_cast %724 : vector<1x4x37xf32> to vector<4x37xf32>
    %726 = vector.extract_strided_slice %22 {offsets = [0, 0], sizes = [8, 1], strides = [1, 1]} : vector<8x4xf32> to vector<8x1xf32>
    %727 = vector.extract_strided_slice %725 {offsets = [0, 0], sizes = [1, 37], strides = [1, 1]} : vector<4x37xf32> to vector<1x37xf32>
    %728 = vector.broadcast %726 : vector<8x1xf32> to vector<8x37xf32>
    %729 = vector.broadcast %727 : vector<1x37xf32> to vector<8x37xf32>
    %730 = arith.mulf %728, %729 : vector<8x37xf32>
    %731 = arith.addf %723, %730 : vector<8x37xf32>
    %732 = vector.extract_strided_slice %22 {offsets = [0, 1], sizes = [8, 1], strides = [1, 1]} : vector<8x4xf32> to vector<8x1xf32>
    %733 = vector.extract_strided_slice %725 {offsets = [1, 0], sizes = [1, 37], strides = [1, 1]} : vector<4x37xf32> to vector<1x37xf32>
    %734 = vector.broadcast %732 : vector<8x1xf32> to vector<8x37xf32>
    %735 = vector.broadcast %733 : vector<1x37xf32> to vector<8x37xf32>
    %736 = arith.mulf %734, %735 : vector<8x37xf32>
    %737 = arith.addf %731, %736 : vector<8x37xf32>
    %738 = vector.extract_strided_slice %22 {offsets = [0, 2], sizes = [8, 1], strides = [1, 1]} : vector<8x4xf32> to vector<8x1xf32>
    %739 = vector.extract_strided_slice %725 {offsets = [2, 0], sizes = [1, 37], strides = [1, 1]} : vector<4x37xf32> to vector<1x37xf32>
    %740 = vector.broadcast %738 : vector<8x1xf32> to vector<8x37xf32>
    %741 = vector.broadcast %739 : vector<1x37xf32> to vector<8x37xf32>
    %742 = arith.mulf %740, %741 : vector<8x37xf32>
    %743 = arith.addf %737, %742 : vector<8x37xf32>
    %744 = vector.extract_strided_slice %22 {offsets = [0, 3], sizes = [8, 1], strides = [1, 1]} : vector<8x4xf32> to vector<8x1xf32>
    %745 = vector.extract_strided_slice %725 {offsets = [3, 0], sizes = [1, 37], strides = [1, 1]} : vector<4x37xf32> to vector<1x37xf32>
    %746 = vector.broadcast %744 : vector<8x1xf32> to vector<8x37xf32>
    %747 = vector.broadcast %745 : vector<1x37xf32> to vector<8x37xf32>
    %748 = arith.mulf %746, %747 : vector<8x37xf32>
    %749 = arith.addf %743, %748 : vector<8x37xf32>
    %c6_290 = arith.constant 6 : index
    %c0_291 = arith.constant 0 : index
    %c0_292 = arith.constant 0 : index
    %750 = vector.load %arg11[%c6_290, %c0_291, %c0_292] : memref<9x4x38xf32, #tpu.memory_space<vmem>>, vector<1x4x37xf32>
    %751 = vector.shape_cast %750 : vector<1x4x37xf32> to vector<4x37xf32>
    %752 = vector.extract_strided_slice %24 {offsets = [0, 0], sizes = [8, 1], strides = [1, 1]} : vector<8x4xf32> to vector<8x1xf32>
    %753 = vector.extract_strided_slice %751 {offsets = [0, 0], sizes = [1, 37], strides = [1, 1]} : vector<4x37xf32> to vector<1x37xf32>
    %754 = vector.broadcast %752 : vector<8x1xf32> to vector<8x37xf32>
    %755 = vector.broadcast %753 : vector<1x37xf32> to vector<8x37xf32>
    %756 = arith.mulf %754, %755 : vector<8x37xf32>
    %757 = arith.addf %749, %756 : vector<8x37xf32>
    %758 = vector.extract_strided_slice %24 {offsets = [0, 1], sizes = [8, 1], strides = [1, 1]} : vector<8x4xf32> to vector<8x1xf32>
    %759 = vector.extract_strided_slice %751 {offsets = [1, 0], sizes = [1, 37], strides = [1, 1]} : vector<4x37xf32> to vector<1x37xf32>
    %760 = vector.broadcast %758 : vector<8x1xf32> to vector<8x37xf32>
    %761 = vector.broadcast %759 : vector<1x37xf32> to vector<8x37xf32>
    %762 = arith.mulf %760, %761 : vector<8x37xf32>
    %763 = arith.addf %757, %762 : vector<8x37xf32>
    %764 = vector.extract_strided_slice %24 {offsets = [0, 2], sizes = [8, 1], strides = [1, 1]} : vector<8x4xf32> to vector<8x1xf32>
    %765 = vector.extract_strided_slice %751 {offsets = [2, 0], sizes = [1, 37], strides = [1, 1]} : vector<4x37xf32> to vector<1x37xf32>
    %766 = vector.broadcast %764 : vector<8x1xf32> to vector<8x37xf32>
    %767 = vector.broadcast %765 : vector<1x37xf32> to vector<8x37xf32>
    %768 = arith.mulf %766, %767 : vector<8x37xf32>
    %769 = arith.addf %763, %768 : vector<8x37xf32>
    %770 = vector.extract_strided_slice %24 {offsets = [0, 3], sizes = [8, 1], strides = [1, 1]} : vector<8x4xf32> to vector<8x1xf32>
    %771 = vector.extract_strided_slice %751 {offsets = [3, 0], sizes = [1, 37], strides = [1, 1]} : vector<4x37xf32> to vector<1x37xf32>
    %772 = vector.broadcast %770 : vector<8x1xf32> to vector<8x37xf32>
    %773 = vector.broadcast %771 : vector<1x37xf32> to vector<8x37xf32>
    %774 = arith.mulf %772, %773 : vector<8x37xf32>
    %775 = arith.addf %769, %774 : vector<8x37xf32>
    %c7_293 = arith.constant 7 : index
    %c0_294 = arith.constant 0 : index
    %c0_295 = arith.constant 0 : index
    %776 = vector.load %arg11[%c7_293, %c0_294, %c0_295] : memref<9x4x38xf32, #tpu.memory_space<vmem>>, vector<1x4x37xf32>
    %777 = vector.shape_cast %776 : vector<1x4x37xf32> to vector<4x37xf32>
    %778 = vector.extract_strided_slice %26 {offsets = [0, 0], sizes = [8, 1], strides = [1, 1]} : vector<8x4xf32> to vector<8x1xf32>
    %779 = vector.extract_strided_slice %777 {offsets = [0, 0], sizes = [1, 37], strides = [1, 1]} : vector<4x37xf32> to vector<1x37xf32>
    %780 = vector.broadcast %778 : vector<8x1xf32> to vector<8x37xf32>
    %781 = vector.broadcast %779 : vector<1x37xf32> to vector<8x37xf32>
    %782 = arith.mulf %780, %781 : vector<8x37xf32>
    %783 = arith.addf %775, %782 : vector<8x37xf32>
    %784 = vector.extract_strided_slice %26 {offsets = [0, 1], sizes = [8, 1], strides = [1, 1]} : vector<8x4xf32> to vector<8x1xf32>
    %785 = vector.extract_strided_slice %777 {offsets = [1, 0], sizes = [1, 37], strides = [1, 1]} : vector<4x37xf32> to vector<1x37xf32>
    %786 = vector.broadcast %784 : vector<8x1xf32> to vector<8x37xf32>
    %787 = vector.broadcast %785 : vector<1x37xf32> to vector<8x37xf32>
    %788 = arith.mulf %786, %787 : vector<8x37xf32>
    %789 = arith.addf %783, %788 : vector<8x37xf32>
    %790 = vector.extract_strided_slice %26 {offsets = [0, 2], sizes = [8, 1], strides = [1, 1]} : vector<8x4xf32> to vector<8x1xf32>
    %791 = vector.extract_strided_slice %777 {offsets = [2, 0], sizes = [1, 37], strides = [1, 1]} : vector<4x37xf32> to vector<1x37xf32>
    %792 = vector.broadcast %790 : vector<8x1xf32> to vector<8x37xf32>
    %793 = vector.broadcast %791 : vector<1x37xf32> to vector<8x37xf32>
    %794 = arith.mulf %792, %793 : vector<8x37xf32>
    %795 = arith.addf %789, %794 : vector<8x37xf32>
    %796 = vector.extract_strided_slice %26 {offsets = [0, 3], sizes = [8, 1], strides = [1, 1]} : vector<8x4xf32> to vector<8x1xf32>
    %797 = vector.extract_strided_slice %777 {offsets = [3, 0], sizes = [1, 37], strides = [1, 1]} : vector<4x37xf32> to vector<1x37xf32>
    %798 = vector.broadcast %796 : vector<8x1xf32> to vector<8x37xf32>
    %799 = vector.broadcast %797 : vector<1x37xf32> to vector<8x37xf32>
    %800 = arith.mulf %798, %799 : vector<8x37xf32>
    %801 = arith.addf %795, %800 : vector<8x37xf32>
    %c8_296 = arith.constant 8 : index
    %c0_297 = arith.constant 0 : index
    %c0_298 = arith.constant 0 : index
    %802 = vector.load %arg11[%c8_296, %c0_297, %c0_298] : memref<9x4x38xf32, #tpu.memory_space<vmem>>, vector<1x4x37xf32>
    %803 = vector.shape_cast %802 : vector<1x4x37xf32> to vector<4x37xf32>
    %804 = vector.extract_strided_slice %28 {offsets = [0, 0], sizes = [8, 1], strides = [1, 1]} : vector<8x4xf32> to vector<8x1xf32>
    %805 = vector.extract_strided_slice %803 {offsets = [0, 0], sizes = [1, 37], strides = [1, 1]} : vector<4x37xf32> to vector<1x37xf32>
    %806 = vector.broadcast %804 : vector<8x1xf32> to vector<8x37xf32>
    %807 = vector.broadcast %805 : vector<1x37xf32> to vector<8x37xf32>
    %808 = arith.mulf %806, %807 : vector<8x37xf32>
    %809 = arith.addf %801, %808 : vector<8x37xf32>
    %810 = vector.extract_strided_slice %28 {offsets = [0, 1], sizes = [8, 1], strides = [1, 1]} : vector<8x4xf32> to vector<8x1xf32>
    %811 = vector.extract_strided_slice %803 {offsets = [1, 0], sizes = [1, 37], strides = [1, 1]} : vector<4x37xf32> to vector<1x37xf32>
    %812 = vector.broadcast %810 : vector<8x1xf32> to vector<8x37xf32>
    %813 = vector.broadcast %811 : vector<1x37xf32> to vector<8x37xf32>
    %814 = arith.mulf %812, %813 : vector<8x37xf32>
    %815 = arith.addf %809, %814 : vector<8x37xf32>
    %816 = vector.extract_strided_slice %28 {offsets = [0, 2], sizes = [8, 1], strides = [1, 1]} : vector<8x4xf32> to vector<8x1xf32>
    %817 = vector.extract_strided_slice %803 {offsets = [2, 0], sizes = [1, 37], strides = [1, 1]} : vector<4x37xf32> to vector<1x37xf32>
    %818 = vector.broadcast %816 : vector<8x1xf32> to vector<8x37xf32>
    %819 = vector.broadcast %817 : vector<1x37xf32> to vector<8x37xf32>
    %820 = arith.mulf %818, %819 : vector<8x37xf32>
    %821 = arith.addf %815, %820 : vector<8x37xf32>
    %822 = vector.extract_strided_slice %28 {offsets = [0, 3], sizes = [8, 1], strides = [1, 1]} : vector<8x4xf32> to vector<8x1xf32>
    %823 = vector.extract_strided_slice %803 {offsets = [3, 0], sizes = [1, 37], strides = [1, 1]} : vector<4x37xf32> to vector<1x37xf32>
    %824 = vector.broadcast %822 : vector<8x1xf32> to vector<8x37xf32>
    %825 = vector.broadcast %823 : vector<1x37xf32> to vector<8x37xf32>
    %826 = arith.mulf %824, %825 : vector<8x37xf32>
    %827 = arith.addf %821, %826 : vector<8x37xf32>
    %c0_299 = arith.constant 0 : index
    %c0_300 = arith.constant 0 : index
    %c1_301 = arith.constant 1 : index
    %828 = vector.load %arg11[%c0_299, %c0_300, %c1_301] : memref<9x4x38xf32, #tpu.memory_space<vmem>>, vector<1x4x37xf32>
    %829 = vector.shape_cast %828 : vector<1x4x37xf32> to vector<4x37xf32>
    %830 = vector.extract_strided_slice %30 {offsets = [0, 0], sizes = [8, 1], strides = [1, 1]} : vector<8x4xf32> to vector<8x1xf32>
    %831 = vector.extract_strided_slice %829 {offsets = [0, 0], sizes = [1, 37], strides = [1, 1]} : vector<4x37xf32> to vector<1x37xf32>
    %832 = vector.broadcast %830 : vector<8x1xf32> to vector<8x37xf32>
    %833 = vector.broadcast %831 : vector<1x37xf32> to vector<8x37xf32>
    %834 = arith.mulf %832, %833 : vector<8x37xf32>
    %835 = arith.addf %827, %834 : vector<8x37xf32>
    %836 = vector.extract_strided_slice %30 {offsets = [0, 1], sizes = [8, 1], strides = [1, 1]} : vector<8x4xf32> to vector<8x1xf32>
    %837 = vector.extract_strided_slice %829 {offsets = [1, 0], sizes = [1, 37], strides = [1, 1]} : vector<4x37xf32> to vector<1x37xf32>
    %838 = vector.broadcast %836 : vector<8x1xf32> to vector<8x37xf32>
    %839 = vector.broadcast %837 : vector<1x37xf32> to vector<8x37xf32>
    %840 = arith.mulf %838, %839 : vector<8x37xf32>
    %841 = arith.addf %835, %840 : vector<8x37xf32>
    %842 = vector.extract_strided_slice %30 {offsets = [0, 2], sizes = [8, 1], strides = [1, 1]} : vector<8x4xf32> to vector<8x1xf32>
    %843 = vector.extract_strided_slice %829 {offsets = [2, 0], sizes = [1, 37], strides = [1, 1]} : vector<4x37xf32> to vector<1x37xf32>
    %844 = vector.broadcast %842 : vector<8x1xf32> to vector<8x37xf32>
    %845 = vector.broadcast %843 : vector<1x37xf32> to vector<8x37xf32>
    %846 = arith.mulf %844, %845 : vector<8x37xf32>
    %847 = arith.addf %841, %846 : vector<8x37xf32>
    %848 = vector.extract_strided_slice %30 {offsets = [0, 3], sizes = [8, 1], strides = [1, 1]} : vector<8x4xf32> to vector<8x1xf32>
    %849 = vector.extract_strided_slice %829 {offsets = [3, 0], sizes = [1, 37], strides = [1, 1]} : vector<4x37xf32> to vector<1x37xf32>
    %850 = vector.broadcast %848 : vector<8x1xf32> to vector<8x37xf32>
    %851 = vector.broadcast %849 : vector<1x37xf32> to vector<8x37xf32>
    %852 = arith.mulf %850, %851 : vector<8x37xf32>
    %853 = arith.addf %847, %852 : vector<8x37xf32>
    %854 = vector.broadcast %1 : vector<8x1xf32> to vector<8x37xf32>
    %855 = arith.addf %853, %854 : vector<8x37xf32>
    %cst_302 = arith.constant 0.000000e+00 : f32
    %856 = vector.broadcast %cst_302 : f32 to vector<8x37xf32>
    %857 = arith.maximumf %855, %856 : vector<8x37xf32>
    %c1_303 = arith.constant 1 : index
    %c0_304 = arith.constant 0 : index
    %c0_305 = arith.constant 0 : index
    %858 = vector.load %arg12[%c1_303, %c0_304, %c0_305] : memref<3x8x37xf32, #tpu.memory_space<vmem>>, vector<1x8x37xf32>
    %859 = vector.shape_cast %858 : vector<1x8x37xf32> to vector<8x37xf32>
    %860 = vector.shape_cast %857 : vector<8x37xf32> to vector<1x8x37xf32>
    tpu.vector_store %arg12[%c1_303, %c0_304, %c0_305], %860 {strides = array<i32>} : memref<3x8x37xf32, #tpu.memory_space<vmem>>, vector<1x8x37xf32>,
    %cst_306 = arith.constant 0.000000e+00 : f32
    %861 = vector.broadcast %cst_306 : f32 to vector<8x37xf32>
    %c6_307 = arith.constant 6 : index
    %c0_308 = arith.constant 0 : index
    %c0_309 = arith.constant 0 : index
    %862 = vector.load %arg11[%c6_307, %c0_308, %c0_309] : memref<9x4x38xf32, #tpu.memory_space<vmem>>, vector<1x4x37xf32>
    %863 = vector.shape_cast %862 : vector<1x4x37xf32> to vector<4x37xf32>
    %864 = vector.extract_strided_slice %18 {offsets = [0, 0], sizes = [8, 1], strides = [1, 1]} : vector<8x4xf32> to vector<8x1xf32>
    %865 = vector.extract_strided_slice %863 {offsets = [0, 0], sizes = [1, 37], strides = [1, 1]} : vector<4x37xf32> to vector<1x37xf32>
    %866 = vector.broadcast %864 : vector<8x1xf32> to vector<8x37xf32>
    %867 = vector.broadcast %865 : vector<1x37xf32> to vector<8x37xf32>
    %868 = arith.mulf %866, %867 : vector<8x37xf32>
    %869 = arith.addf %861, %868 : vector<8x37xf32>
    %870 = vector.extract_strided_slice %18 {offsets = [0, 1], sizes = [8, 1], strides = [1, 1]} : vector<8x4xf32> to vector<8x1xf32>
    %871 = vector.extract_strided_slice %863 {offsets = [1, 0], sizes = [1, 37], strides = [1, 1]} : vector<4x37xf32> to vector<1x37xf32>
    %872 = vector.broadcast %870 : vector<8x1xf32> to vector<8x37xf32>
    %873 = vector.broadcast %871 : vector<1x37xf32> to vector<8x37xf32>
    %874 = arith.mulf %872, %873 : vector<8x37xf32>
    %875 = arith.addf %869, %874 : vector<8x37xf32>
    %876 = vector.extract_strided_slice %18 {offsets = [0, 2], sizes = [8, 1], strides = [1, 1]} : vector<8x4xf32> to vector<8x1xf32>
    %877 = vector.extract_strided_slice %863 {offsets = [2, 0], sizes = [1, 37], strides = [1, 1]} : vector<4x37xf32> to vector<1x37xf32>
    %878 = vector.broadcast %876 : vector<8x1xf32> to vector<8x37xf32>
    %879 = vector.broadcast %877 : vector<1x37xf32> to vector<8x37xf32>
    %880 = arith.mulf %878, %879 : vector<8x37xf32>
    %881 = arith.addf %875, %880 : vector<8x37xf32>
    %882 = vector.extract_strided_slice %18 {offsets = [0, 3], sizes = [8, 1], strides = [1, 1]} : vector<8x4xf32> to vector<8x1xf32>
    %883 = vector.extract_strided_slice %863 {offsets = [3, 0], sizes = [1, 37], strides = [1, 1]} : vector<4x37xf32> to vector<1x37xf32>
    %884 = vector.broadcast %882 : vector<8x1xf32> to vector<8x37xf32>
    %885 = vector.broadcast %883 : vector<1x37xf32> to vector<8x37xf32>
    %886 = arith.mulf %884, %885 : vector<8x37xf32>
    %887 = arith.addf %881, %886 : vector<8x37xf32>
    %c7_310 = arith.constant 7 : index
    %c0_311 = arith.constant 0 : index
    %c0_312 = arith.constant 0 : index
    %888 = vector.load %arg11[%c7_310, %c0_311, %c0_312] : memref<9x4x38xf32, #tpu.memory_space<vmem>>, vector<1x4x37xf32>
    %889 = vector.shape_cast %888 : vector<1x4x37xf32> to vector<4x37xf32>
    %890 = vector.extract_strided_slice %20 {offsets = [0, 0], sizes = [8, 1], strides = [1, 1]} : vector<8x4xf32> to vector<8x1xf32>
    %891 = vector.extract_strided_slice %889 {offsets = [0, 0], sizes = [1, 37], strides = [1, 1]} : vector<4x37xf32> to vector<1x37xf32>
    %892 = vector.broadcast %890 : vector<8x1xf32> to vector<8x37xf32>
    %893 = vector.broadcast %891 : vector<1x37xf32> to vector<8x37xf32>
    %894 = arith.mulf %892, %893 : vector<8x37xf32>
    %895 = arith.addf %887, %894 : vector<8x37xf32>
    %896 = vector.extract_strided_slice %20 {offsets = [0, 1], sizes = [8, 1], strides = [1, 1]} : vector<8x4xf32> to vector<8x1xf32>
    %897 = vector.extract_strided_slice %889 {offsets = [1, 0], sizes = [1, 37], strides = [1, 1]} : vector<4x37xf32> to vector<1x37xf32>
    %898 = vector.broadcast %896 : vector<8x1xf32> to vector<8x37xf32>
    %899 = vector.broadcast %897 : vector<1x37xf32> to vector<8x37xf32>
    %900 = arith.mulf %898, %899 : vector<8x37xf32>
    %901 = arith.addf %895, %900 : vector<8x37xf32>
    %902 = vector.extract_strided_slice %20 {offsets = [0, 2], sizes = [8, 1], strides = [1, 1]} : vector<8x4xf32> to vector<8x1xf32>
    %903 = vector.extract_strided_slice %889 {offsets = [2, 0], sizes = [1, 37], strides = [1, 1]} : vector<4x37xf32> to vector<1x37xf32>
    %904 = vector.broadcast %902 : vector<8x1xf32> to vector<8x37xf32>
    %905 = vector.broadcast %903 : vector<1x37xf32> to vector<8x37xf32>
    %906 = arith.mulf %904, %905 : vector<8x37xf32>
    %907 = arith.addf %901, %906 : vector<8x37xf32>
    %908 = vector.extract_strided_slice %20 {offsets = [0, 3], sizes = [8, 1], strides = [1, 1]} : vector<8x4xf32> to vector<8x1xf32>
    %909 = vector.extract_strided_slice %889 {offsets = [3, 0], sizes = [1, 37], strides = [1, 1]} : vector<4x37xf32> to vector<1x37xf32>
    %910 = vector.broadcast %908 : vector<8x1xf32> to vector<8x37xf32>
    %911 = vector.broadcast %909 : vector<1x37xf32> to vector<8x37xf32>
    %912 = arith.mulf %910, %911 : vector<8x37xf32>
    %913 = arith.addf %907, %912 : vector<8x37xf32>
    %c8_313 = arith.constant 8 : index
    %c0_314 = arith.constant 0 : index
    %c0_315 = arith.constant 0 : index
    %914 = vector.load %arg11[%c8_313, %c0_314, %c0_315] : memref<9x4x38xf32, #tpu.memory_space<vmem>>, vector<1x4x37xf32>
    %915 = vector.shape_cast %914 : vector<1x4x37xf32> to vector<4x37xf32>
    %916 = vector.extract_strided_slice %22 {offsets = [0, 0], sizes = [8, 1], strides = [1, 1]} : vector<8x4xf32> to vector<8x1xf32>
    %917 = vector.extract_strided_slice %915 {offsets = [0, 0], sizes = [1, 37], strides = [1, 1]} : vector<4x37xf32> to vector<1x37xf32>
    %918 = vector.broadcast %916 : vector<8x1xf32> to vector<8x37xf32>
    %919 = vector.broadcast %917 : vector<1x37xf32> to vector<8x37xf32>
    %920 = arith.mulf %918, %919 : vector<8x37xf32>
    %921 = arith.addf %913, %920 : vector<8x37xf32>
    %922 = vector.extract_strided_slice %22 {offsets = [0, 1], sizes = [8, 1], strides = [1, 1]} : vector<8x4xf32> to vector<8x1xf32>
    %923 = vector.extract_strided_slice %915 {offsets = [1, 0], sizes = [1, 37], strides = [1, 1]} : vector<4x37xf32> to vector<1x37xf32>
    %924 = vector.broadcast %922 : vector<8x1xf32> to vector<8x37xf32>
    %925 = vector.broadcast %923 : vector<1x37xf32> to vector<8x37xf32>
    %926 = arith.mulf %924, %925 : vector<8x37xf32>
    %927 = arith.addf %921, %926 : vector<8x37xf32>
    %928 = vector.extract_strided_slice %22 {offsets = [0, 2], sizes = [8, 1], strides = [1, 1]} : vector<8x4xf32> to vector<8x1xf32>
    %929 = vector.extract_strided_slice %915 {offsets = [2, 0], sizes = [1, 37], strides = [1, 1]} : vector<4x37xf32> to vector<1x37xf32>
    %930 = vector.broadcast %928 : vector<8x1xf32> to vector<8x37xf32>
    %931 = vector.broadcast %929 : vector<1x37xf32> to vector<8x37xf32>
    %932 = arith.mulf %930, %931 : vector<8x37xf32>
    %933 = arith.addf %927, %932 : vector<8x37xf32>
    %934 = vector.extract_strided_slice %22 {offsets = [0, 3], sizes = [8, 1], strides = [1, 1]} : vector<8x4xf32> to vector<8x1xf32>
    %935 = vector.extract_strided_slice %915 {offsets = [3, 0], sizes = [1, 37], strides = [1, 1]} : vector<4x37xf32> to vector<1x37xf32>
    %936 = vector.broadcast %934 : vector<8x1xf32> to vector<8x37xf32>
    %937 = vector.broadcast %935 : vector<1x37xf32> to vector<8x37xf32>
    %938 = arith.mulf %936, %937 : vector<8x37xf32>
    %939 = arith.addf %933, %938 : vector<8x37xf32>
    %c0_316 = arith.constant 0 : index
    %c0_317 = arith.constant 0 : index
    %c1_318 = arith.constant 1 : index
    %940 = vector.load %arg11[%c0_316, %c0_317, %c1_318] : memref<9x4x38xf32, #tpu.memory_space<vmem>>, vector<1x4x37xf32>
    %941 = vector.shape_cast %940 : vector<1x4x37xf32> to vector<4x37xf32>
    %942 = vector.extract_strided_slice %24 {offsets = [0, 0], sizes = [8, 1], strides = [1, 1]} : vector<8x4xf32> to vector<8x1xf32>
    %943 = vector.extract_strided_slice %941 {offsets = [0, 0], sizes = [1, 37], strides = [1, 1]} : vector<4x37xf32> to vector<1x37xf32>
    %944 = vector.broadcast %942 : vector<8x1xf32> to vector<8x37xf32>
    %945 = vector.broadcast %943 : vector<1x37xf32> to vector<8x37xf32>
    %946 = arith.mulf %944, %945 : vector<8x37xf32>
    %947 = arith.addf %939, %946 : vector<8x37xf32>
    %948 = vector.extract_strided_slice %24 {offsets = [0, 1], sizes = [8, 1], strides = [1, 1]} : vector<8x4xf32> to vector<8x1xf32>
    %949 = vector.extract_strided_slice %941 {offsets = [1, 0], sizes = [1, 37], strides = [1, 1]} : vector<4x37xf32> to vector<1x37xf32>
    %950 = vector.broadcast %948 : vector<8x1xf32> to vector<8x37xf32>
    %951 = vector.broadcast %949 : vector<1x37xf32> to vector<8x37xf32>
    %952 = arith.mulf %950, %951 : vector<8x37xf32>
    %953 = arith.addf %947, %952 : vector<8x37xf32>
    %954 = vector.extract_strided_slice %24 {offsets = [0, 2], sizes = [8, 1], strides = [1, 1]} : vector<8x4xf32> to vector<8x1xf32>
    %955 = vector.extract_strided_slice %941 {offsets = [2, 0], sizes = [1, 37], strides = [1, 1]} : vector<4x37xf32> to vector<1x37xf32>
    %956 = vector.broadcast %954 : vector<8x1xf32> to vector<8x37xf32>
    %957 = vector.broadcast %955 : vector<1x37xf32> to vector<8x37xf32>
    %958 = arith.mulf %956, %957 : vector<8x37xf32>
    %959 = arith.addf %953, %958 : vector<8x37xf32>
    %960 = vector.extract_strided_slice %24 {offsets = [0, 3], sizes = [8, 1], strides = [1, 1]} : vector<8x4xf32> to vector<8x1xf32>
    %961 = vector.extract_strided_slice %941 {offsets = [3, 0], sizes = [1, 37], strides = [1, 1]} : vector<4x37xf32> to vector<1x37xf32>
    %962 = vector.broadcast %960 : vector<8x1xf32> to vector<8x37xf32>
    %963 = vector.broadcast %961 : vector<1x37xf32> to vector<8x37xf32>
    %964 = arith.mulf %962, %963 : vector<8x37xf32>
    %965 = arith.addf %959, %964 : vector<8x37xf32>
    %c1_319 = arith.constant 1 : index
    %c0_320 = arith.constant 0 : index
    %c1_321 = arith.constant 1 : index
    %966 = vector.load %arg11[%c1_319, %c0_320, %c1_321] : memref<9x4x38xf32, #tpu.memory_space<vmem>>, vector<1x4x37xf32>
    %967 = vector.shape_cast %966 : vector<1x4x37xf32> to vector<4x37xf32>
    %968 = vector.extract_strided_slice %26 {offsets = [0, 0], sizes = [8, 1], strides = [1, 1]} : vector<8x4xf32> to vector<8x1xf32>
    %969 = vector.extract_strided_slice %967 {offsets = [0, 0], sizes = [1, 37], strides = [1, 1]} : vector<4x37xf32> to vector<1x37xf32>
    %970 = vector.broadcast %968 : vector<8x1xf32> to vector<8x37xf32>
    %971 = vector.broadcast %969 : vector<1x37xf32> to vector<8x37xf32>
    %972 = arith.mulf %970, %971 : vector<8x37xf32>
    %973 = arith.addf %965, %972 : vector<8x37xf32>
    %974 = vector.extract_strided_slice %26 {offsets = [0, 1], sizes = [8, 1], strides = [1, 1]} : vector<8x4xf32> to vector<8x1xf32>
    %975 = vector.extract_strided_slice %967 {offsets = [1, 0], sizes = [1, 37], strides = [1, 1]} : vector<4x37xf32> to vector<1x37xf32>
    %976 = vector.broadcast %974 : vector<8x1xf32> to vector<8x37xf32>
    %977 = vector.broadcast %975 : vector<1x37xf32> to vector<8x37xf32>
    %978 = arith.mulf %976, %977 : vector<8x37xf32>
    %979 = arith.addf %973, %978 : vector<8x37xf32>
    %980 = vector.extract_strided_slice %26 {offsets = [0, 2], sizes = [8, 1], strides = [1, 1]} : vector<8x4xf32> to vector<8x1xf32>
    %981 = vector.extract_strided_slice %967 {offsets = [2, 0], sizes = [1, 37], strides = [1, 1]} : vector<4x37xf32> to vector<1x37xf32>
    %982 = vector.broadcast %980 : vector<8x1xf32> to vector<8x37xf32>
    %983 = vector.broadcast %981 : vector<1x37xf32> to vector<8x37xf32>
    %984 = arith.mulf %982, %983 : vector<8x37xf32>
    %985 = arith.addf %979, %984 : vector<8x37xf32>
    %986 = vector.extract_strided_slice %26 {offsets = [0, 3], sizes = [8, 1], strides = [1, 1]} : vector<8x4xf32> to vector<8x1xf32>
    %987 = vector.extract_strided_slice %967 {offsets = [3, 0], sizes = [1, 37], strides = [1, 1]} : vector<4x37xf32> to vector<1x37xf32>
    %988 = vector.broadcast %986 : vector<8x1xf32> to vector<8x37xf32>
    %989 = vector.broadcast %987 : vector<1x37xf32> to vector<8x37xf32>
    %990 = arith.mulf %988, %989 : vector<8x37xf32>
    %991 = arith.addf %985, %990 : vector<8x37xf32>
    %c2_322 = arith.constant 2 : index
    %c0_323 = arith.constant 0 : index
    %c1_324 = arith.constant 1 : index
    %992 = vector.load %arg11[%c2_322, %c0_323, %c1_324] : memref<9x4x38xf32, #tpu.memory_space<vmem>>, vector<1x4x37xf32>
    %993 = vector.shape_cast %992 : vector<1x4x37xf32> to vector<4x37xf32>
    %994 = vector.extract_strided_slice %28 {offsets = [0, 0], sizes = [8, 1], strides = [1, 1]} : vector<8x4xf32> to vector<8x1xf32>
    %995 = vector.extract_strided_slice %993 {offsets = [0, 0], sizes = [1, 37], strides = [1, 1]} : vector<4x37xf32> to vector<1x37xf32>
    %996 = vector.broadcast %994 : vector<8x1xf32> to vector<8x37xf32>
    %997 = vector.broadcast %995 : vector<1x37xf32> to vector<8x37xf32>
    %998 = arith.mulf %996, %997 : vector<8x37xf32>
    %999 = arith.addf %991, %998 : vector<8x37xf32>
    %1000 = vector.extract_strided_slice %28 {offsets = [0, 1], sizes = [8, 1], strides = [1, 1]} : vector<8x4xf32> to vector<8x1xf32>
    %1001 = vector.extract_strided_slice %993 {offsets = [1, 0], sizes = [1, 37], strides = [1, 1]} : vector<4x37xf32> to vector<1x37xf32>
    %1002 = vector.broadcast %1000 : vector<8x1xf32> to vector<8x37xf32>
    %1003 = vector.broadcast %1001 : vector<1x37xf32> to vector<8x37xf32>
    %1004 = arith.mulf %1002, %1003 : vector<8x37xf32>
    %1005 = arith.addf %999, %1004 : vector<8x37xf32>
    %1006 = vector.extract_strided_slice %28 {offsets = [0, 2], sizes = [8, 1], strides = [1, 1]} : vector<8x4xf32> to vector<8x1xf32>
    %1007 = vector.extract_strided_slice %993 {offsets = [2, 0], sizes = [1, 37], strides = [1, 1]} : vector<4x37xf32> to vector<1x37xf32>
    %1008 = vector.broadcast %1006 : vector<8x1xf32> to vector<8x37xf32>
    %1009 = vector.broadcast %1007 : vector<1x37xf32> to vector<8x37xf32>
    %1010 = arith.mulf %1008, %1009 : vector<8x37xf32>
    %1011 = arith.addf %1005, %1010 : vector<8x37xf32>
    %1012 = vector.extract_strided_slice %28 {offsets = [0, 3], sizes = [8, 1], strides = [1, 1]} : vector<8x4xf32> to vector<8x1xf32>
    %1013 = vector.extract_strided_slice %993 {offsets = [3, 0], sizes = [1, 37], strides = [1, 1]} : vector<4x37xf32> to vector<1x37xf32>
    %1014 = vector.broadcast %1012 : vector<8x1xf32> to vector<8x37xf32>
    %1015 = vector.broadcast %1013 : vector<1x37xf32> to vector<8x37xf32>
    %1016 = arith.mulf %1014, %1015 : vector<8x37xf32>
    %1017 = arith.addf %1011, %1016 : vector<8x37xf32>
    %c3_325 = arith.constant 3 : index
    %c0_326 = arith.constant 0 : index
    %c1_327 = arith.constant 1 : index
    %1018 = vector.load %arg11[%c3_325, %c0_326, %c1_327] : memref<9x4x38xf32, #tpu.memory_space<vmem>>, vector<1x4x37xf32>
    %1019 = vector.shape_cast %1018 : vector<1x4x37xf32> to vector<4x37xf32>
    %1020 = vector.extract_strided_slice %30 {offsets = [0, 0], sizes = [8, 1], strides = [1, 1]} : vector<8x4xf32> to vector<8x1xf32>
    %1021 = vector.extract_strided_slice %1019 {offsets = [0, 0], sizes = [1, 37], strides = [1, 1]} : vector<4x37xf32> to vector<1x37xf32>
    %1022 = vector.broadcast %1020 : vector<8x1xf32> to vector<8x37xf32>
    %1023 = vector.broadcast %1021 : vector<1x37xf32> to vector<8x37xf32>
    %1024 = arith.mulf %1022, %1023 : vector<8x37xf32>
    %1025 = arith.addf %1017, %1024 : vector<8x37xf32>
    %1026 = vector.extract_strided_slice %30 {offsets = [0, 1], sizes = [8, 1], strides = [1, 1]} : vector<8x4xf32> to vector<8x1xf32>
    %1027 = vector.extract_strided_slice %1019 {offsets = [1, 0], sizes = [1, 37], strides = [1, 1]} : vector<4x37xf32> to vector<1x37xf32>
    %1028 = vector.broadcast %1026 : vector<8x1xf32> to vector<8x37xf32>
    %1029 = vector.broadcast %1027 : vector<1x37xf32> to vector<8x37xf32>
    %1030 = arith.mulf %1028, %1029 : vector<8x37xf32>
    %1031 = arith.addf %1025, %1030 : vector<8x37xf32>
    %1032 = vector.extract_strided_slice %30 {offsets = [0, 2], sizes = [8, 1], strides = [1, 1]} : vector<8x4xf32> to vector<8x1xf32>
    %1033 = vector.extract_strided_slice %1019 {offsets = [2, 0], sizes = [1, 37], strides = [1, 1]} : vector<4x37xf32> to vector<1x37xf32>
    %1034 = vector.broadcast %1032 : vector<8x1xf32> to vector<8x37xf32>
    %1035 = vector.broadcast %1033 : vector<1x37xf32> to vector<8x37xf32>
    %1036 = arith.mulf %1034, %1035 : vector<8x37xf32>
    %1037 = arith.addf %1031, %1036 : vector<8x37xf32>
    %1038 = vector.extract_strided_slice %30 {offsets = [0, 3], sizes = [8, 1], strides = [1, 1]} : vector<8x4xf32> to vector<8x1xf32>
    %1039 = vector.extract_strided_slice %1019 {offsets = [3, 0], sizes = [1, 37], strides = [1, 1]} : vector<4x37xf32> to vector<1x37xf32>
    %1040 = vector.broadcast %1038 : vector<8x1xf32> to vector<8x37xf32>
    %1041 = vector.broadcast %1039 : vector<1x37xf32> to vector<8x37xf32>
    %1042 = arith.mulf %1040, %1041 : vector<8x37xf32>
    %1043 = arith.addf %1037, %1042 : vector<8x37xf32>
    %1044 = vector.broadcast %1 : vector<8x1xf32> to vector<8x37xf32>
    %1045 = arith.addf %1043, %1044 : vector<8x37xf32>
    %cst_328 = arith.constant 0.000000e+00 : f32
    %1046 = vector.broadcast %cst_328 : f32 to vector<8x37xf32>
    %1047 = arith.maximumf %1045, %1046 : vector<8x37xf32>
    %c2_329 = arith.constant 2 : index
    %c0_330 = arith.constant 0 : index
    %c0_331 = arith.constant 0 : index
    %1048 = vector.load %arg12[%c2_329, %c0_330, %c0_331] : memref<3x8x37xf32, #tpu.memory_space<vmem>>, vector<1x8x37xf32>
    %1049 = vector.shape_cast %1048 : vector<1x8x37xf32> to vector<8x37xf32>
    %1050 = vector.shape_cast %1047 : vector<8x37xf32> to vector<1x8x37xf32>
    tpu.vector_store %arg12[%c2_329, %c0_330, %c0_331], %1050 {strides = array<i32>} : memref<3x8x37xf32, #tpu.memory_space<vmem>>, vector<1x8x37xf32>,
    %cst_332 = arith.constant 0.000000e+00 : f32
    %1051 = vector.broadcast %cst_332 : f32 to vector<16x35xf32>
    %c0_333 = arith.constant 0 : index
    %c0_334 = arith.constant 0 : index
    %c0_335 = arith.constant 0 : index
    %1052 = vector.load %arg12[%c0_333, %c0_334, %c0_335] : memref<3x8x37xf32, #tpu.memory_space<vmem>>, vector<1x8x35xf32>
    %1053 = vector.shape_cast %1052 : vector<1x8x35xf32> to vector<8x35xf32>
    %c0_336 = arith.constant 0 : index
    %c0_337 = arith.constant 0 : index
    %c0_338 = arith.constant 0 : index
    %1054 = vector.load %arg6[%c0_336, %c0_337, %c0_338] : memref<7x16x8xf32, #tpu.memory_space<vmem>>, vector<1x16x8xf32>
    %1055 = vector.shape_cast %1054 : vector<1x16x8xf32> to vector<16x8xf32>
    %1056 = vector.extract_strided_slice %1055 {offsets = [0, 0], sizes = [16, 1], strides = [1, 1]} : vector<16x8xf32> to vector<16x1xf32>
    %1057 = vector.extract_strided_slice %1053 {offsets = [0, 0], sizes = [1, 35], strides = [1, 1]} : vector<8x35xf32> to vector<1x35xf32>
    %1058 = vector.broadcast %1056 : vector<16x1xf32> to vector<16x35xf32>
    %1059 = vector.broadcast %1057 : vector<1x35xf32> to vector<16x35xf32>
    %1060 = arith.mulf %1058, %1059 : vector<16x35xf32>
    %1061 = arith.addf %1051, %1060 : vector<16x35xf32>
    %1062 = vector.extract_strided_slice %1055 {offsets = [0, 1], sizes = [16, 1], strides = [1, 1]} : vector<16x8xf32> to vector<16x1xf32>
    %1063 = vector.extract_strided_slice %1053 {offsets = [1, 0], sizes = [1, 35], strides = [1, 1]} : vector<8x35xf32> to vector<1x35xf32>
    %1064 = vector.broadcast %1062 : vector<16x1xf32> to vector<16x35xf32>
    %1065 = vector.broadcast %1063 : vector<1x35xf32> to vector<16x35xf32>
    %1066 = arith.mulf %1064, %1065 : vector<16x35xf32>
    %1067 = arith.addf %1061, %1066 : vector<16x35xf32>
    %1068 = vector.extract_strided_slice %1055 {offsets = [0, 2], sizes = [16, 1], strides = [1, 1]} : vector<16x8xf32> to vector<16x1xf32>
    %1069 = vector.extract_strided_slice %1053 {offsets = [2, 0], sizes = [1, 35], strides = [1, 1]} : vector<8x35xf32> to vector<1x35xf32>
    %1070 = vector.broadcast %1068 : vector<16x1xf32> to vector<16x35xf32>
    %1071 = vector.broadcast %1069 : vector<1x35xf32> to vector<16x35xf32>
    %1072 = arith.mulf %1070, %1071 : vector<16x35xf32>
    %1073 = arith.addf %1067, %1072 : vector<16x35xf32>
    %1074 = vector.extract_strided_slice %1055 {offsets = [0, 3], sizes = [16, 1], strides = [1, 1]} : vector<16x8xf32> to vector<16x1xf32>
    %1075 = vector.extract_strided_slice %1053 {offsets = [3, 0], sizes = [1, 35], strides = [1, 1]} : vector<8x35xf32> to vector<1x35xf32>
    %1076 = vector.broadcast %1074 : vector<16x1xf32> to vector<16x35xf32>
    %1077 = vector.broadcast %1075 : vector<1x35xf32> to vector<16x35xf32>
    %1078 = arith.mulf %1076, %1077 : vector<16x35xf32>
    %1079 = arith.addf %1073, %1078 : vector<16x35xf32>
    %1080 = vector.extract_strided_slice %1055 {offsets = [0, 4], sizes = [16, 1], strides = [1, 1]} : vector<16x8xf32> to vector<16x1xf32>
    %1081 = vector.extract_strided_slice %1053 {offsets = [4, 0], sizes = [1, 35], strides = [1, 1]} : vector<8x35xf32> to vector<1x35xf32>
    %1082 = vector.broadcast %1080 : vector<16x1xf32> to vector<16x35xf32>
    %1083 = vector.broadcast %1081 : vector<1x35xf32> to vector<16x35xf32>
    %1084 = arith.mulf %1082, %1083 : vector<16x35xf32>
    %1085 = arith.addf %1079, %1084 : vector<16x35xf32>
    %1086 = vector.extract_strided_slice %1055 {offsets = [0, 5], sizes = [16, 1], strides = [1, 1]} : vector<16x8xf32> to vector<16x1xf32>
    %1087 = vector.extract_strided_slice %1053 {offsets = [5, 0], sizes = [1, 35], strides = [1, 1]} : vector<8x35xf32> to vector<1x35xf32>
    %1088 = vector.broadcast %1086 : vector<16x1xf32> to vector<16x35xf32>
    %1089 = vector.broadcast %1087 : vector<1x35xf32> to vector<16x35xf32>
    %1090 = arith.mulf %1088, %1089 : vector<16x35xf32>
    %1091 = arith.addf %1085, %1090 : vector<16x35xf32>
    %1092 = vector.extract_strided_slice %1055 {offsets = [0, 6], sizes = [16, 1], strides = [1, 1]} : vector<16x8xf32> to vector<16x1xf32>
    %1093 = vector.extract_strided_slice %1053 {offsets = [6, 0], sizes = [1, 35], strides = [1, 1]} : vector<8x35xf32> to vector<1x35xf32>
    %1094 = vector.broadcast %1092 : vector<16x1xf32> to vector<16x35xf32>
    %1095 = vector.broadcast %1093 : vector<1x35xf32> to vector<16x35xf32>
    %1096 = arith.mulf %1094, %1095 : vector<16x35xf32>
    %1097 = arith.addf %1091, %1096 : vector<16x35xf32>
    %1098 = vector.extract_strided_slice %1055 {offsets = [0, 7], sizes = [16, 1], strides = [1, 1]} : vector<16x8xf32> to vector<16x1xf32>
    %1099 = vector.extract_strided_slice %1053 {offsets = [7, 0], sizes = [1, 35], strides = [1, 1]} : vector<8x35xf32> to vector<1x35xf32>
    %1100 = vector.broadcast %1098 : vector<16x1xf32> to vector<16x35xf32>
    %1101 = vector.broadcast %1099 : vector<1x35xf32> to vector<16x35xf32>
    %1102 = arith.mulf %1100, %1101 : vector<16x35xf32>
    %1103 = arith.addf %1097, %1102 : vector<16x35xf32>
    %c1_339 = arith.constant 1 : index
    %c0_340 = arith.constant 0 : index
    %c0_341 = arith.constant 0 : index
    %1104 = vector.load %arg12[%c1_339, %c0_340, %c0_341] : memref<3x8x37xf32, #tpu.memory_space<vmem>>, vector<1x8x35xf32>
    %1105 = vector.shape_cast %1104 : vector<1x8x35xf32> to vector<8x35xf32>
    %c1_342 = arith.constant 1 : index
    %c0_343 = arith.constant 0 : index
    %c0_344 = arith.constant 0 : index
    %1106 = vector.load %arg6[%c1_342, %c0_343, %c0_344] : memref<7x16x8xf32, #tpu.memory_space<vmem>>, vector<1x16x8xf32>
    %1107 = vector.shape_cast %1106 : vector<1x16x8xf32> to vector<16x8xf32>
    %1108 = vector.extract_strided_slice %1107 {offsets = [0, 0], sizes = [16, 1], strides = [1, 1]} : vector<16x8xf32> to vector<16x1xf32>
    %1109 = vector.extract_strided_slice %1105 {offsets = [0, 0], sizes = [1, 35], strides = [1, 1]} : vector<8x35xf32> to vector<1x35xf32>
    %1110 = vector.broadcast %1108 : vector<16x1xf32> to vector<16x35xf32>
    %1111 = vector.broadcast %1109 : vector<1x35xf32> to vector<16x35xf32>
    %1112 = arith.mulf %1110, %1111 : vector<16x35xf32>
    %1113 = arith.addf %1103, %1112 : vector<16x35xf32>
    %1114 = vector.extract_strided_slice %1107 {offsets = [0, 1], sizes = [16, 1], strides = [1, 1]} : vector<16x8xf32> to vector<16x1xf32>
    %1115 = vector.extract_strided_slice %1105 {offsets = [1, 0], sizes = [1, 35], strides = [1, 1]} : vector<8x35xf32> to vector<1x35xf32>
    %1116 = vector.broadcast %1114 : vector<16x1xf32> to vector<16x35xf32>
    %1117 = vector.broadcast %1115 : vector<1x35xf32> to vector<16x35xf32>
    %1118 = arith.mulf %1116, %1117 : vector<16x35xf32>
    %1119 = arith.addf %1113, %1118 : vector<16x35xf32>
    %1120 = vector.extract_strided_slice %1107 {offsets = [0, 2], sizes = [16, 1], strides = [1, 1]} : vector<16x8xf32> to vector<16x1xf32>
    %1121 = vector.extract_strided_slice %1105 {offsets = [2, 0], sizes = [1, 35], strides = [1, 1]} : vector<8x35xf32> to vector<1x35xf32>
    %1122 = vector.broadcast %1120 : vector<16x1xf32> to vector<16x35xf32>
    %1123 = vector.broadcast %1121 : vector<1x35xf32> to vector<16x35xf32>
    %1124 = arith.mulf %1122, %1123 : vector<16x35xf32>
    %1125 = arith.addf %1119, %1124 : vector<16x35xf32>
    %1126 = vector.extract_strided_slice %1107 {offsets = [0, 3], sizes = [16, 1], strides = [1, 1]} : vector<16x8xf32> to vector<16x1xf32>
    %1127 = vector.extract_strided_slice %1105 {offsets = [3, 0], sizes = [1, 35], strides = [1, 1]} : vector<8x35xf32> to vector<1x35xf32>
    %1128 = vector.broadcast %1126 : vector<16x1xf32> to vector<16x35xf32>
    %1129 = vector.broadcast %1127 : vector<1x35xf32> to vector<16x35xf32>
    %1130 = arith.mulf %1128, %1129 : vector<16x35xf32>
    %1131 = arith.addf %1125, %1130 : vector<16x35xf32>
    %1132 = vector.extract_strided_slice %1107 {offsets = [0, 4], sizes = [16, 1], strides = [1, 1]} : vector<16x8xf32> to vector<16x1xf32>
    %1133 = vector.extract_strided_slice %1105 {offsets = [4, 0], sizes = [1, 35], strides = [1, 1]} : vector<8x35xf32> to vector<1x35xf32>
    %1134 = vector.broadcast %1132 : vector<16x1xf32> to vector<16x35xf32>
    %1135 = vector.broadcast %1133 : vector<1x35xf32> to vector<16x35xf32>
    %1136 = arith.mulf %1134, %1135 : vector<16x35xf32>
    %1137 = arith.addf %1131, %1136 : vector<16x35xf32>
    %1138 = vector.extract_strided_slice %1107 {offsets = [0, 5], sizes = [16, 1], strides = [1, 1]} : vector<16x8xf32> to vector<16x1xf32>
    %1139 = vector.extract_strided_slice %1105 {offsets = [5, 0], sizes = [1, 35], strides = [1, 1]} : vector<8x35xf32> to vector<1x35xf32>
    %1140 = vector.broadcast %1138 : vector<16x1xf32> to vector<16x35xf32>
    %1141 = vector.broadcast %1139 : vector<1x35xf32> to vector<16x35xf32>
    %1142 = arith.mulf %1140, %1141 : vector<16x35xf32>
    %1143 = arith.addf %1137, %1142 : vector<16x35xf32>
    %1144 = vector.extract_strided_slice %1107 {offsets = [0, 6], sizes = [16, 1], strides = [1, 1]} : vector<16x8xf32> to vector<16x1xf32>
    %1145 = vector.extract_strided_slice %1105 {offsets = [6, 0], sizes = [1, 35], strides = [1, 1]} : vector<8x35xf32> to vector<1x35xf32>
    %1146 = vector.broadcast %1144 : vector<16x1xf32> to vector<16x35xf32>
    %1147 = vector.broadcast %1145 : vector<1x35xf32> to vector<16x35xf32>
    %1148 = arith.mulf %1146, %1147 : vector<16x35xf32>
    %1149 = arith.addf %1143, %1148 : vector<16x35xf32>
    %1150 = vector.extract_strided_slice %1107 {offsets = [0, 7], sizes = [16, 1], strides = [1, 1]} : vector<16x8xf32> to vector<16x1xf32>
    %1151 = vector.extract_strided_slice %1105 {offsets = [7, 0], sizes = [1, 35], strides = [1, 1]} : vector<8x35xf32> to vector<1x35xf32>
    %1152 = vector.broadcast %1150 : vector<16x1xf32> to vector<16x35xf32>
    %1153 = vector.broadcast %1151 : vector<1x35xf32> to vector<16x35xf32>
    %1154 = arith.mulf %1152, %1153 : vector<16x35xf32>
    %1155 = arith.addf %1149, %1154 : vector<16x35xf32>
    %c2_345 = arith.constant 2 : index
    %c0_346 = arith.constant 0 : index
    %c0_347 = arith.constant 0 : index
    %1156 = vector.load %arg12[%c2_345, %c0_346, %c0_347] : memref<3x8x37xf32, #tpu.memory_space<vmem>>, vector<1x8x35xf32>
    %1157 = vector.shape_cast %1156 : vector<1x8x35xf32> to vector<8x35xf32>
    %c2_348 = arith.constant 2 : index
    %c0_349 = arith.constant 0 : index
    %c0_350 = arith.constant 0 : index
    %1158 = vector.load %arg6[%c2_348, %c0_349, %c0_350] : memref<7x16x8xf32, #tpu.memory_space<vmem>>, vector<1x16x8xf32>
    %1159 = vector.shape_cast %1158 : vector<1x16x8xf32> to vector<16x8xf32>
    %1160 = vector.extract_strided_slice %1159 {offsets = [0, 0], sizes = [16, 1], strides = [1, 1]} : vector<16x8xf32> to vector<16x1xf32>
    %1161 = vector.extract_strided_slice %1157 {offsets = [0, 0], sizes = [1, 35], strides = [1, 1]} : vector<8x35xf32> to vector<1x35xf32>
    %1162 = vector.broadcast %1160 : vector<16x1xf32> to vector<16x35xf32>
    %1163 = vector.broadcast %1161 : vector<1x35xf32> to vector<16x35xf32>
    %1164 = arith.mulf %1162, %1163 : vector<16x35xf32>
    %1165 = arith.addf %1155, %1164 : vector<16x35xf32>
    %1166 = vector.extract_strided_slice %1159 {offsets = [0, 1], sizes = [16, 1], strides = [1, 1]} : vector<16x8xf32> to vector<16x1xf32>
    %1167 = vector.extract_strided_slice %1157 {offsets = [1, 0], sizes = [1, 35], strides = [1, 1]} : vector<8x35xf32> to vector<1x35xf32>
    %1168 = vector.broadcast %1166 : vector<16x1xf32> to vector<16x35xf32>
    %1169 = vector.broadcast %1167 : vector<1x35xf32> to vector<16x35xf32>
    %1170 = arith.mulf %1168, %1169 : vector<16x35xf32>
    %1171 = arith.addf %1165, %1170 : vector<16x35xf32>
    %1172 = vector.extract_strided_slice %1159 {offsets = [0, 2], sizes = [16, 1], strides = [1, 1]} : vector<16x8xf32> to vector<16x1xf32>
    %1173 = vector.extract_strided_slice %1157 {offsets = [2, 0], sizes = [1, 35], strides = [1, 1]} : vector<8x35xf32> to vector<1x35xf32>
    %1174 = vector.broadcast %1172 : vector<16x1xf32> to vector<16x35xf32>
    %1175 = vector.broadcast %1173 : vector<1x35xf32> to vector<16x35xf32>
    %1176 = arith.mulf %1174, %1175 : vector<16x35xf32>
    %1177 = arith.addf %1171, %1176 : vector<16x35xf32>
    %1178 = vector.extract_strided_slice %1159 {offsets = [0, 3], sizes = [16, 1], strides = [1, 1]} : vector<16x8xf32> to vector<16x1xf32>
    %1179 = vector.extract_strided_slice %1157 {offsets = [3, 0], sizes = [1, 35], strides = [1, 1]} : vector<8x35xf32> to vector<1x35xf32>
    %1180 = vector.broadcast %1178 : vector<16x1xf32> to vector<16x35xf32>
    %1181 = vector.broadcast %1179 : vector<1x35xf32> to vector<16x35xf32>
    %1182 = arith.mulf %1180, %1181 : vector<16x35xf32>
    %1183 = arith.addf %1177, %1182 : vector<16x35xf32>
    %1184 = vector.extract_strided_slice %1159 {offsets = [0, 4], sizes = [16, 1], strides = [1, 1]} : vector<16x8xf32> to vector<16x1xf32>
    %1185 = vector.extract_strided_slice %1157 {offsets = [4, 0], sizes = [1, 35], strides = [1, 1]} : vector<8x35xf32> to vector<1x35xf32>
    %1186 = vector.broadcast %1184 : vector<16x1xf32> to vector<16x35xf32>
    %1187 = vector.broadcast %1185 : vector<1x35xf32> to vector<16x35xf32>
    %1188 = arith.mulf %1186, %1187 : vector<16x35xf32>
    %1189 = arith.addf %1183, %1188 : vector<16x35xf32>
    %1190 = vector.extract_strided_slice %1159 {offsets = [0, 5], sizes = [16, 1], strides = [1, 1]} : vector<16x8xf32> to vector<16x1xf32>
    %1191 = vector.extract_strided_slice %1157 {offsets = [5, 0], sizes = [1, 35], strides = [1, 1]} : vector<8x35xf32> to vector<1x35xf32>
    %1192 = vector.broadcast %1190 : vector<16x1xf32> to vector<16x35xf32>
    %1193 = vector.broadcast %1191 : vector<1x35xf32> to vector<16x35xf32>
    %1194 = arith.mulf %1192, %1193 : vector<16x35xf32>
    %1195 = arith.addf %1189, %1194 : vector<16x35xf32>
    %1196 = vector.extract_strided_slice %1159 {offsets = [0, 6], sizes = [16, 1], strides = [1, 1]} : vector<16x8xf32> to vector<16x1xf32>
    %1197 = vector.extract_strided_slice %1157 {offsets = [6, 0], sizes = [1, 35], strides = [1, 1]} : vector<8x35xf32> to vector<1x35xf32>
    %1198 = vector.broadcast %1196 : vector<16x1xf32> to vector<16x35xf32>
    %1199 = vector.broadcast %1197 : vector<1x35xf32> to vector<16x35xf32>
    %1200 = arith.mulf %1198, %1199 : vector<16x35xf32>
    %1201 = arith.addf %1195, %1200 : vector<16x35xf32>
    %1202 = vector.extract_strided_slice %1159 {offsets = [0, 7], sizes = [16, 1], strides = [1, 1]} : vector<16x8xf32> to vector<16x1xf32>
    %1203 = vector.extract_strided_slice %1157 {offsets = [7, 0], sizes = [1, 35], strides = [1, 1]} : vector<8x35xf32> to vector<1x35xf32>
    %1204 = vector.broadcast %1202 : vector<16x1xf32> to vector<16x35xf32>
    %1205 = vector.broadcast %1203 : vector<1x35xf32> to vector<16x35xf32>
    %1206 = arith.mulf %1204, %1205 : vector<16x35xf32>
    %1207 = arith.addf %1201, %1206 : vector<16x35xf32>
    %c0_351 = arith.constant 0 : index
    %c0_352 = arith.constant 0 : index
    %c1_353 = arith.constant 1 : index
    %1208 = vector.load %arg12[%c0_351, %c0_352, %c1_353] : memref<3x8x37xf32, #tpu.memory_space<vmem>>, vector<1x8x35xf32>
    %1209 = vector.shape_cast %1208 : vector<1x8x35xf32> to vector<8x35xf32>
    %c3_354 = arith.constant 3 : index
    %c0_355 = arith.constant 0 : index
    %c0_356 = arith.constant 0 : index
    %1210 = vector.load %arg6[%c3_354, %c0_355, %c0_356] : memref<7x16x8xf32, #tpu.memory_space<vmem>>, vector<1x16x8xf32>
    %1211 = vector.shape_cast %1210 : vector<1x16x8xf32> to vector<16x8xf32>
    %1212 = vector.extract_strided_slice %1211 {offsets = [0, 0], sizes = [16, 1], strides = [1, 1]} : vector<16x8xf32> to vector<16x1xf32>
    %1213 = vector.extract_strided_slice %1209 {offsets = [0, 0], sizes = [1, 35], strides = [1, 1]} : vector<8x35xf32> to vector<1x35xf32>
    %1214 = vector.broadcast %1212 : vector<16x1xf32> to vector<16x35xf32>
    %1215 = vector.broadcast %1213 : vector<1x35xf32> to vector<16x35xf32>
    %1216 = arith.mulf %1214, %1215 : vector<16x35xf32>
    %1217 = arith.addf %1207, %1216 : vector<16x35xf32>
    %1218 = vector.extract_strided_slice %1211 {offsets = [0, 1], sizes = [16, 1], strides = [1, 1]} : vector<16x8xf32> to vector<16x1xf32>
    %1219 = vector.extract_strided_slice %1209 {offsets = [1, 0], sizes = [1, 35], strides = [1, 1]} : vector<8x35xf32> to vector<1x35xf32>
    %1220 = vector.broadcast %1218 : vector<16x1xf32> to vector<16x35xf32>
    %1221 = vector.broadcast %1219 : vector<1x35xf32> to vector<16x35xf32>
    %1222 = arith.mulf %1220, %1221 : vector<16x35xf32>
    %1223 = arith.addf %1217, %1222 : vector<16x35xf32>
    %1224 = vector.extract_strided_slice %1211 {offsets = [0, 2], sizes = [16, 1], strides = [1, 1]} : vector<16x8xf32> to vector<16x1xf32>
    %1225 = vector.extract_strided_slice %1209 {offsets = [2, 0], sizes = [1, 35], strides = [1, 1]} : vector<8x35xf32> to vector<1x35xf32>
    %1226 = vector.broadcast %1224 : vector<16x1xf32> to vector<16x35xf32>
    %1227 = vector.broadcast %1225 : vector<1x35xf32> to vector<16x35xf32>
    %1228 = arith.mulf %1226, %1227 : vector<16x35xf32>
    %1229 = arith.addf %1223, %1228 : vector<16x35xf32>
    %1230 = vector.extract_strided_slice %1211 {offsets = [0, 3], sizes = [16, 1], strides = [1, 1]} : vector<16x8xf32> to vector<16x1xf32>
    %1231 = vector.extract_strided_slice %1209 {offsets = [3, 0], sizes = [1, 35], strides = [1, 1]} : vector<8x35xf32> to vector<1x35xf32>
    %1232 = vector.broadcast %1230 : vector<16x1xf32> to vector<16x35xf32>
    %1233 = vector.broadcast %1231 : vector<1x35xf32> to vector<16x35xf32>
    %1234 = arith.mulf %1232, %1233 : vector<16x35xf32>
    %1235 = arith.addf %1229, %1234 : vector<16x35xf32>
    %1236 = vector.extract_strided_slice %1211 {offsets = [0, 4], sizes = [16, 1], strides = [1, 1]} : vector<16x8xf32> to vector<16x1xf32>
    %1237 = vector.extract_strided_slice %1209 {offsets = [4, 0], sizes = [1, 35], strides = [1, 1]} : vector<8x35xf32> to vector<1x35xf32>
    %1238 = vector.broadcast %1236 : vector<16x1xf32> to vector<16x35xf32>
    %1239 = vector.broadcast %1237 : vector<1x35xf32> to vector<16x35xf32>
    %1240 = arith.mulf %1238, %1239 : vector<16x35xf32>
    %1241 = arith.addf %1235, %1240 : vector<16x35xf32>
    %1242 = vector.extract_strided_slice %1211 {offsets = [0, 5], sizes = [16, 1], strides = [1, 1]} : vector<16x8xf32> to vector<16x1xf32>
    %1243 = vector.extract_strided_slice %1209 {offsets = [5, 0], sizes = [1, 35], strides = [1, 1]} : vector<8x35xf32> to vector<1x35xf32>
    %1244 = vector.broadcast %1242 : vector<16x1xf32> to vector<16x35xf32>
    %1245 = vector.broadcast %1243 : vector<1x35xf32> to vector<16x35xf32>
    %1246 = arith.mulf %1244, %1245 : vector<16x35xf32>
    %1247 = arith.addf %1241, %1246 : vector<16x35xf32>
    %1248 = vector.extract_strided_slice %1211 {offsets = [0, 6], sizes = [16, 1], strides = [1, 1]} : vector<16x8xf32> to vector<16x1xf32>
    %1249 = vector.extract_strided_slice %1209 {offsets = [6, 0], sizes = [1, 35], strides = [1, 1]} : vector<8x35xf32> to vector<1x35xf32>
    %1250 = vector.broadcast %1248 : vector<16x1xf32> to vector<16x35xf32>
    %1251 = vector.broadcast %1249 : vector<1x35xf32> to vector<16x35xf32>
    %1252 = arith.mulf %1250, %1251 : vector<16x35xf32>
    %1253 = arith.addf %1247, %1252 : vector<16x35xf32>
    %1254 = vector.extract_strided_slice %1211 {offsets = [0, 7], sizes = [16, 1], strides = [1, 1]} : vector<16x8xf32> to vector<16x1xf32>
    %1255 = vector.extract_strided_slice %1209 {offsets = [7, 0], sizes = [1, 35], strides = [1, 1]} : vector<8x35xf32> to vector<1x35xf32>
    %1256 = vector.broadcast %1254 : vector<16x1xf32> to vector<16x35xf32>
    %1257 = vector.broadcast %1255 : vector<1x35xf32> to vector<16x35xf32>
    %1258 = arith.mulf %1256, %1257 : vector<16x35xf32>
    %1259 = arith.addf %1253, %1258 : vector<16x35xf32>
    %c1_357 = arith.constant 1 : index
    %c0_358 = arith.constant 0 : index
    %c1_359 = arith.constant 1 : index
    %1260 = vector.load %arg12[%c1_357, %c0_358, %c1_359] : memref<3x8x37xf32, #tpu.memory_space<vmem>>, vector<1x8x35xf32>
    %1261 = vector.shape_cast %1260 : vector<1x8x35xf32> to vector<8x35xf32>
    %c4_360 = arith.constant 4 : index
    %c0_361 = arith.constant 0 : index
    %c0_362 = arith.constant 0 : index
    %1262 = vector.load %arg6[%c4_360, %c0_361, %c0_362] : memref<7x16x8xf32, #tpu.memory_space<vmem>>, vector<1x16x8xf32>
    %1263 = vector.shape_cast %1262 : vector<1x16x8xf32> to vector<16x8xf32>
    %1264 = vector.extract_strided_slice %1263 {offsets = [0, 0], sizes = [16, 1], strides = [1, 1]} : vector<16x8xf32> to vector<16x1xf32>
    %1265 = vector.extract_strided_slice %1261 {offsets = [0, 0], sizes = [1, 35], strides = [1, 1]} : vector<8x35xf32> to vector<1x35xf32>
    %1266 = vector.broadcast %1264 : vector<16x1xf32> to vector<16x35xf32>
    %1267 = vector.broadcast %1265 : vector<1x35xf32> to vector<16x35xf32>
    %1268 = arith.mulf %1266, %1267 : vector<16x35xf32>
    %1269 = arith.addf %1259, %1268 : vector<16x35xf32>
    %1270 = vector.extract_strided_slice %1263 {offsets = [0, 1], sizes = [16, 1], strides = [1, 1]} : vector<16x8xf32> to vector<16x1xf32>
    %1271 = vector.extract_strided_slice %1261 {offsets = [1, 0], sizes = [1, 35], strides = [1, 1]} : vector<8x35xf32> to vector<1x35xf32>
    %1272 = vector.broadcast %1270 : vector<16x1xf32> to vector<16x35xf32>
    %1273 = vector.broadcast %1271 : vector<1x35xf32> to vector<16x35xf32>
    %1274 = arith.mulf %1272, %1273 : vector<16x35xf32>
    %1275 = arith.addf %1269, %1274 : vector<16x35xf32>
    %1276 = vector.extract_strided_slice %1263 {offsets = [0, 2], sizes = [16, 1], strides = [1, 1]} : vector<16x8xf32> to vector<16x1xf32>
    %1277 = vector.extract_strided_slice %1261 {offsets = [2, 0], sizes = [1, 35], strides = [1, 1]} : vector<8x35xf32> to vector<1x35xf32>
    %1278 = vector.broadcast %1276 : vector<16x1xf32> to vector<16x35xf32>
    %1279 = vector.broadcast %1277 : vector<1x35xf32> to vector<16x35xf32>
    %1280 = arith.mulf %1278, %1279 : vector<16x35xf32>
    %1281 = arith.addf %1275, %1280 : vector<16x35xf32>
    %1282 = vector.extract_strided_slice %1263 {offsets = [0, 3], sizes = [16, 1], strides = [1, 1]} : vector<16x8xf32> to vector<16x1xf32>
    %1283 = vector.extract_strided_slice %1261 {offsets = [3, 0], sizes = [1, 35], strides = [1, 1]} : vector<8x35xf32> to vector<1x35xf32>
    %1284 = vector.broadcast %1282 : vector<16x1xf32> to vector<16x35xf32>
    %1285 = vector.broadcast %1283 : vector<1x35xf32> to vector<16x35xf32>
    %1286 = arith.mulf %1284, %1285 : vector<16x35xf32>
    %1287 = arith.addf %1281, %1286 : vector<16x35xf32>
    %1288 = vector.extract_strided_slice %1263 {offsets = [0, 4], sizes = [16, 1], strides = [1, 1]} : vector<16x8xf32> to vector<16x1xf32>
    %1289 = vector.extract_strided_slice %1261 {offsets = [4, 0], sizes = [1, 35], strides = [1, 1]} : vector<8x35xf32> to vector<1x35xf32>
    %1290 = vector.broadcast %1288 : vector<16x1xf32> to vector<16x35xf32>
    %1291 = vector.broadcast %1289 : vector<1x35xf32> to vector<16x35xf32>
    %1292 = arith.mulf %1290, %1291 : vector<16x35xf32>
    %1293 = arith.addf %1287, %1292 : vector<16x35xf32>
    %1294 = vector.extract_strided_slice %1263 {offsets = [0, 5], sizes = [16, 1], strides = [1, 1]} : vector<16x8xf32> to vector<16x1xf32>
    %1295 = vector.extract_strided_slice %1261 {offsets = [5, 0], sizes = [1, 35], strides = [1, 1]} : vector<8x35xf32> to vector<1x35xf32>
    %1296 = vector.broadcast %1294 : vector<16x1xf32> to vector<16x35xf32>
    %1297 = vector.broadcast %1295 : vector<1x35xf32> to vector<16x35xf32>
    %1298 = arith.mulf %1296, %1297 : vector<16x35xf32>
    %1299 = arith.addf %1293, %1298 : vector<16x35xf32>
    %1300 = vector.extract_strided_slice %1263 {offsets = [0, 6], sizes = [16, 1], strides = [1, 1]} : vector<16x8xf32> to vector<16x1xf32>
    %1301 = vector.extract_strided_slice %1261 {offsets = [6, 0], sizes = [1, 35], strides = [1, 1]} : vector<8x35xf32> to vector<1x35xf32>
    %1302 = vector.broadcast %1300 : vector<16x1xf32> to vector<16x35xf32>
    %1303 = vector.broadcast %1301 : vector<1x35xf32> to vector<16x35xf32>
    %1304 = arith.mulf %1302, %1303 : vector<16x35xf32>
    %1305 = arith.addf %1299, %1304 : vector<16x35xf32>
    %1306 = vector.extract_strided_slice %1263 {offsets = [0, 7], sizes = [16, 1], strides = [1, 1]} : vector<16x8xf32> to vector<16x1xf32>
    %1307 = vector.extract_strided_slice %1261 {offsets = [7, 0], sizes = [1, 35], strides = [1, 1]} : vector<8x35xf32> to vector<1x35xf32>
    %1308 = vector.broadcast %1306 : vector<16x1xf32> to vector<16x35xf32>
    %1309 = vector.broadcast %1307 : vector<1x35xf32> to vector<16x35xf32>
    %1310 = arith.mulf %1308, %1309 : vector<16x35xf32>
    %1311 = arith.addf %1305, %1310 : vector<16x35xf32>
    %c2_363 = arith.constant 2 : index
    %c0_364 = arith.constant 0 : index
    %c1_365 = arith.constant 1 : index
    %1312 = vector.load %arg12[%c2_363, %c0_364, %c1_365] : memref<3x8x37xf32, #tpu.memory_space<vmem>>, vector<1x8x35xf32>
    %1313 = vector.shape_cast %1312 : vector<1x8x35xf32> to vector<8x35xf32>
    %c5_366 = arith.constant 5 : index
    %c0_367 = arith.constant 0 : index
    %c0_368 = arith.constant 0 : index
    %1314 = vector.load %arg6[%c5_366, %c0_367, %c0_368] : memref<7x16x8xf32, #tpu.memory_space<vmem>>, vector<1x16x8xf32>
    %1315 = vector.shape_cast %1314 : vector<1x16x8xf32> to vector<16x8xf32>
    %1316 = vector.extract_strided_slice %1315 {offsets = [0, 0], sizes = [16, 1], strides = [1, 1]} : vector<16x8xf32> to vector<16x1xf32>
    %1317 = vector.extract_strided_slice %1313 {offsets = [0, 0], sizes = [1, 35], strides = [1, 1]} : vector<8x35xf32> to vector<1x35xf32>
    %1318 = vector.broadcast %1316 : vector<16x1xf32> to vector<16x35xf32>
    %1319 = vector.broadcast %1317 : vector<1x35xf32> to vector<16x35xf32>
    %1320 = arith.mulf %1318, %1319 : vector<16x35xf32>
    %1321 = arith.addf %1311, %1320 : vector<16x35xf32>
    %1322 = vector.extract_strided_slice %1315 {offsets = [0, 1], sizes = [16, 1], strides = [1, 1]} : vector<16x8xf32> to vector<16x1xf32>
    %1323 = vector.extract_strided_slice %1313 {offsets = [1, 0], sizes = [1, 35], strides = [1, 1]} : vector<8x35xf32> to vector<1x35xf32>
    %1324 = vector.broadcast %1322 : vector<16x1xf32> to vector<16x35xf32>
    %1325 = vector.broadcast %1323 : vector<1x35xf32> to vector<16x35xf32>
    %1326 = arith.mulf %1324, %1325 : vector<16x35xf32>
    %1327 = arith.addf %1321, %1326 : vector<16x35xf32>
    %1328 = vector.extract_strided_slice %1315 {offsets = [0, 2], sizes = [16, 1], strides = [1, 1]} : vector<16x8xf32> to vector<16x1xf32>
    %1329 = vector.extract_strided_slice %1313 {offsets = [2, 0], sizes = [1, 35], strides = [1, 1]} : vector<8x35xf32> to vector<1x35xf32>
    %1330 = vector.broadcast %1328 : vector<16x1xf32> to vector<16x35xf32>
    %1331 = vector.broadcast %1329 : vector<1x35xf32> to vector<16x35xf32>
    %1332 = arith.mulf %1330, %1331 : vector<16x35xf32>
    %1333 = arith.addf %1327, %1332 : vector<16x35xf32>
    %1334 = vector.extract_strided_slice %1315 {offsets = [0, 3], sizes = [16, 1], strides = [1, 1]} : vector<16x8xf32> to vector<16x1xf32>
    %1335 = vector.extract_strided_slice %1313 {offsets = [3, 0], sizes = [1, 35], strides = [1, 1]} : vector<8x35xf32> to vector<1x35xf32>
    %1336 = vector.broadcast %1334 : vector<16x1xf32> to vector<16x35xf32>
    %1337 = vector.broadcast %1335 : vector<1x35xf32> to vector<16x35xf32>
    %1338 = arith.mulf %1336, %1337 : vector<16x35xf32>
    %1339 = arith.addf %1333, %1338 : vector<16x35xf32>
    %1340 = vector.extract_strided_slice %1315 {offsets = [0, 4], sizes = [16, 1], strides = [1, 1]} : vector<16x8xf32> to vector<16x1xf32>
    %1341 = vector.extract_strided_slice %1313 {offsets = [4, 0], sizes = [1, 35], strides = [1, 1]} : vector<8x35xf32> to vector<1x35xf32>
    %1342 = vector.broadcast %1340 : vector<16x1xf32> to vector<16x35xf32>
    %1343 = vector.broadcast %1341 : vector<1x35xf32> to vector<16x35xf32>
    %1344 = arith.mulf %1342, %1343 : vector<16x35xf32>
    %1345 = arith.addf %1339, %1344 : vector<16x35xf32>
    %1346 = vector.extract_strided_slice %1315 {offsets = [0, 5], sizes = [16, 1], strides = [1, 1]} : vector<16x8xf32> to vector<16x1xf32>
    %1347 = vector.extract_strided_slice %1313 {offsets = [5, 0], sizes = [1, 35], strides = [1, 1]} : vector<8x35xf32> to vector<1x35xf32>
    %1348 = vector.broadcast %1346 : vector<16x1xf32> to vector<16x35xf32>
    %1349 = vector.broadcast %1347 : vector<1x35xf32> to vector<16x35xf32>
    %1350 = arith.mulf %1348, %1349 : vector<16x35xf32>
    %1351 = arith.addf %1345, %1350 : vector<16x35xf32>
    %1352 = vector.extract_strided_slice %1315 {offsets = [0, 6], sizes = [16, 1], strides = [1, 1]} : vector<16x8xf32> to vector<16x1xf32>
    %1353 = vector.extract_strided_slice %1313 {offsets = [6, 0], sizes = [1, 35], strides = [1, 1]} : vector<8x35xf32> to vector<1x35xf32>
    %1354 = vector.broadcast %1352 : vector<16x1xf32> to vector<16x35xf32>
    %1355 = vector.broadcast %1353 : vector<1x35xf32> to vector<16x35xf32>
    %1356 = arith.mulf %1354, %1355 : vector<16x35xf32>
    %1357 = arith.addf %1351, %1356 : vector<16x35xf32>
    %1358 = vector.extract_strided_slice %1315 {offsets = [0, 7], sizes = [16, 1], strides = [1, 1]} : vector<16x8xf32> to vector<16x1xf32>
    %1359 = vector.extract_strided_slice %1313 {offsets = [7, 0], sizes = [1, 35], strides = [1, 1]} : vector<8x35xf32> to vector<1x35xf32>
    %1360 = vector.broadcast %1358 : vector<16x1xf32> to vector<16x35xf32>
    %1361 = vector.broadcast %1359 : vector<1x35xf32> to vector<16x35xf32>
    %1362 = arith.mulf %1360, %1361 : vector<16x35xf32>
    %1363 = arith.addf %1357, %1362 : vector<16x35xf32>
    %c0_369 = arith.constant 0 : index
    %c0_370 = arith.constant 0 : index
    %c2_371 = arith.constant 2 : index
    %1364 = vector.load %arg12[%c0_369, %c0_370, %c2_371] : memref<3x8x37xf32, #tpu.memory_space<vmem>>, vector<1x8x35xf32>
    %1365 = vector.shape_cast %1364 : vector<1x8x35xf32> to vector<8x35xf32>
    %c6_372 = arith.constant 6 : index
    %c0_373 = arith.constant 0 : index
    %c0_374 = arith.constant 0 : index
    %1366 = vector.load %arg6[%c6_372, %c0_373, %c0_374] : memref<7x16x8xf32, #tpu.memory_space<vmem>>, vector<1x16x8xf32>
    %1367 = vector.shape_cast %1366 : vector<1x16x8xf32> to vector<16x8xf32>
    %1368 = vector.extract_strided_slice %1367 {offsets = [0, 0], sizes = [16, 1], strides = [1, 1]} : vector<16x8xf32> to vector<16x1xf32>
    %1369 = vector.extract_strided_slice %1365 {offsets = [0, 0], sizes = [1, 35], strides = [1, 1]} : vector<8x35xf32> to vector<1x35xf32>
    %1370 = vector.broadcast %1368 : vector<16x1xf32> to vector<16x35xf32>
    %1371 = vector.broadcast %1369 : vector<1x35xf32> to vector<16x35xf32>
    %1372 = arith.mulf %1370, %1371 : vector<16x35xf32>
    %1373 = arith.addf %1363, %1372 : vector<16x35xf32>
    %1374 = vector.extract_strided_slice %1367 {offsets = [0, 1], sizes = [16, 1], strides = [1, 1]} : vector<16x8xf32> to vector<16x1xf32>
    %1375 = vector.extract_strided_slice %1365 {offsets = [1, 0], sizes = [1, 35], strides = [1, 1]} : vector<8x35xf32> to vector<1x35xf32>
    %1376 = vector.broadcast %1374 : vector<16x1xf32> to vector<16x35xf32>
    %1377 = vector.broadcast %1375 : vector<1x35xf32> to vector<16x35xf32>
    %1378 = arith.mulf %1376, %1377 : vector<16x35xf32>
    %1379 = arith.addf %1373, %1378 : vector<16x35xf32>
    %1380 = vector.extract_strided_slice %1367 {offsets = [0, 2], sizes = [16, 1], strides = [1, 1]} : vector<16x8xf32> to vector<16x1xf32>
    %1381 = vector.extract_strided_slice %1365 {offsets = [2, 0], sizes = [1, 35], strides = [1, 1]} : vector<8x35xf32> to vector<1x35xf32>
    %1382 = vector.broadcast %1380 : vector<16x1xf32> to vector<16x35xf32>
    %1383 = vector.broadcast %1381 : vector<1x35xf32> to vector<16x35xf32>
    %1384 = arith.mulf %1382, %1383 : vector<16x35xf32>
    %1385 = arith.addf %1379, %1384 : vector<16x35xf32>
    %1386 = vector.extract_strided_slice %1367 {offsets = [0, 3], sizes = [16, 1], strides = [1, 1]} : vector<16x8xf32> to vector<16x1xf32>
    %1387 = vector.extract_strided_slice %1365 {offsets = [3, 0], sizes = [1, 35], strides = [1, 1]} : vector<8x35xf32> to vector<1x35xf32>
    %1388 = vector.broadcast %1386 : vector<16x1xf32> to vector<16x35xf32>
    %1389 = vector.broadcast %1387 : vector<1x35xf32> to vector<16x35xf32>
    %1390 = arith.mulf %1388, %1389 : vector<16x35xf32>
    %1391 = arith.addf %1385, %1390 : vector<16x35xf32>
    %1392 = vector.extract_strided_slice %1367 {offsets = [0, 4], sizes = [16, 1], strides = [1, 1]} : vector<16x8xf32> to vector<16x1xf32>
    %1393 = vector.extract_strided_slice %1365 {offsets = [4, 0], sizes = [1, 35], strides = [1, 1]} : vector<8x35xf32> to vector<1x35xf32>
    %1394 = vector.broadcast %1392 : vector<16x1xf32> to vector<16x35xf32>
    %1395 = vector.broadcast %1393 : vector<1x35xf32> to vector<16x35xf32>
    %1396 = arith.mulf %1394, %1395 : vector<16x35xf32>
    %1397 = arith.addf %1391, %1396 : vector<16x35xf32>
    %1398 = vector.extract_strided_slice %1367 {offsets = [0, 5], sizes = [16, 1], strides = [1, 1]} : vector<16x8xf32> to vector<16x1xf32>
    %1399 = vector.extract_strided_slice %1365 {offsets = [5, 0], sizes = [1, 35], strides = [1, 1]} : vector<8x35xf32> to vector<1x35xf32>
    %1400 = vector.broadcast %1398 : vector<16x1xf32> to vector<16x35xf32>
    %1401 = vector.broadcast %1399 : vector<1x35xf32> to vector<16x35xf32>
    %1402 = arith.mulf %1400, %1401 : vector<16x35xf32>
    %1403 = arith.addf %1397, %1402 : vector<16x35xf32>
    %1404 = vector.extract_strided_slice %1367 {offsets = [0, 6], sizes = [16, 1], strides = [1, 1]} : vector<16x8xf32> to vector<16x1xf32>
    %1405 = vector.extract_strided_slice %1365 {offsets = [6, 0], sizes = [1, 35], strides = [1, 1]} : vector<8x35xf32> to vector<1x35xf32>
    %1406 = vector.broadcast %1404 : vector<16x1xf32> to vector<16x35xf32>
    %1407 = vector.broadcast %1405 : vector<1x35xf32> to vector<16x35xf32>
    %1408 = arith.mulf %1406, %1407 : vector<16x35xf32>
    %1409 = arith.addf %1403, %1408 : vector<16x35xf32>
    %1410 = vector.extract_strided_slice %1367 {offsets = [0, 7], sizes = [16, 1], strides = [1, 1]} : vector<16x8xf32> to vector<16x1xf32>
    %1411 = vector.extract_strided_slice %1365 {offsets = [7, 0], sizes = [1, 35], strides = [1, 1]} : vector<8x35xf32> to vector<1x35xf32>
    %1412 = vector.broadcast %1410 : vector<16x1xf32> to vector<16x35xf32>
    %1413 = vector.broadcast %1411 : vector<1x35xf32> to vector<16x35xf32>
    %1414 = arith.mulf %1412, %1413 : vector<16x35xf32>
    %1415 = arith.addf %1409, %1414 : vector<16x35xf32>
    %1416 = vector.broadcast %2 : vector<16x1xf32> to vector<16x35xf32>
    %1417 = arith.addf %1415, %1416 : vector<16x35xf32>
    %cst_375 = arith.constant 0.000000e+00 : f32
    %1418 = vector.broadcast %cst_375 : f32 to vector<16x35xf32>
    %1419 = arith.maximumf %1417, %1418 : vector<16x35xf32>
    %c0_376 = arith.constant 0 : index
    %c0_377 = arith.constant 0 : index
    %1420 = vector.load %arg8[%c0_376, %c0_377] : memref<16x35xf32, #tpu.memory_space<vmem>>, vector<16x35xf32>
    %1421 = arith.mulf %1419, %1420 : vector<16x35xf32>
    %1422 = vector.shape_cast %1421 : vector<16x35xf32> to vector<1x16x35xf32>
    %cst_378 = arith.constant dense<0.000000e+00> : vector<1xf32>
    %1423 = vector.multi_reduction <add>, %1422, %cst_378 [1, 2] : vector<1x16x35xf32> to vector<1xf32>
    %1424 = vector.shape_cast %1423 : vector<1xf32> to vector<1x1x1xf32>
    %1425 = vector.extract %1424[0, 0, 0] : f32 from vector<1x1x1xf32>
    %1426 = vector.broadcast %1425 : f32 to vector<1x1xf32>
    %c0_379 = arith.constant 0 : index
    %c0_380 = arith.constant 0 : index
    %1427 = vector.load %arg9[%c0_379, %c0_380] : memref<1x1xf32, #tpu.memory_space<vmem>>, vector<1x1xf32>
    %1428 = arith.addf %1426, %1427 : vector<1x1xf32>
    %c0_381 = arith.constant 0 : index
    %c0_382 = arith.constant 0 : index
    %c0_383 = arith.constant 0 : index
    %1429 = vector.load %arg10[%c0_381, %c0_382, %c0_383] : memref<1x1x1xf32, #tpu.memory_space<vmem>>, vector<1x1x1xf32>
    %1430 = vector.shape_cast %1429 : vector<1x1x1xf32> to vector<1x1xf32>
    %1431 = vector.shape_cast %1428 : vector<1x1xf32> to vector<1x1x1xf32>
    tpu.vector_store %arg10[%c0_381, %c0_382, %c0_383], %1431 {strides = array<i32>} : memref<1x1x1xf32, #tpu.memory_space<vmem>>, vector<1x1x1xf32>,
    return
  }
  func.func @transform_0(%arg0: i32) -> (i32, i32, i32) {
    %c0_i32 = arith.constant 0 : i32
    %c0_i32_0 = arith.constant 0 : i32
    %c0_i32_1 = arith.constant 0 : i32
    return %arg0, %c0_i32, %c0_i32_0 : i32, i32, i32
  }
  func.func @transform_1(%arg0: i32) -> (i32, i32, i32) {
    %c0_i32 = arith.constant 0 : i32
    %c0_i32_0 = arith.constant 0 : i32
    %c0_i32_1 = arith.constant 0 : i32
    %c0_i32_2 = arith.constant 0 : i32
    return %c0_i32, %c0_i32_0, %c0_i32_1 : i32, i32, i32
  }
  func.func @transform_2(%arg0: i32) -> (i32, i32) {
    %c0_i32 = arith.constant 0 : i32
    %c0_i32_0 = arith.constant 0 : i32
    %c0_i32_1 = arith.constant 0 : i32
    return %c0_i32, %c0_i32_0 : i32, i32
  }
  func.func @transform_3(%arg0: i32) -> (i32, i32, i32) {
    %c0_i32 = arith.constant 0 : i32
    %c0_i32_0 = arith.constant 0 : i32
    %c0_i32_1 = arith.constant 0 : i32
    %c0_i32_2 = arith.constant 0 : i32
    return %c0_i32, %c0_i32_0, %c0_i32_1 : i32, i32, i32
  }
  func.func @transform_4(%arg0: i32) -> (i32, i32) {
    %c0_i32 = arith.constant 0 : i32
    %c0_i32_0 = arith.constant 0 : i32
    %c0_i32_1 = arith.constant 0 : i32
    return %c0_i32, %c0_i32_0 : i32, i32
  }
  func.func @transform_5(%arg0: i32) -> (i32, i32, i32) {
    %c0_i32 = arith.constant 0 : i32
    %c0_i32_0 = arith.constant 0 : i32
    %c0_i32_1 = arith.constant 0 : i32
    %c0_i32_2 = arith.constant 0 : i32
    return %c0_i32, %c0_i32_0, %c0_i32_1 : i32, i32, i32
  }
  func.func @transform_6(%arg0: i32) -> (i32, i32) {
    %c0_i32 = arith.constant 0 : i32
    %c0_i32_0 = arith.constant 0 : i32
    %c0_i32_1 = arith.constant 0 : i32
    return %c0_i32, %c0_i32_0 : i32, i32
  }
  func.func @transform_7(%arg0: i32) -> (i32, i32) {
    %c0_i32 = arith.constant 0 : i32
    %c0_i32_0 = arith.constant 0 : i32
    %c0_i32_1 = arith.constant 0 : i32
    return %c0_i32, %c0_i32_0 : i32, i32
  }
  func.func @transform_8(%arg0: i32) -> (i32, i32) {
    %c0_i32 = arith.constant 0 : i32
    %c0_i32_0 = arith.constant 0 : i32
    %c0_i32_1 = arith.constant 0 : i32
    return %c0_i32, %c0_i32_0 : i32, i32
  }
  func.func @transform_9(%arg0: i32) -> (i32, i32, i32) {
    %c0_i32 = arith.constant 0 : i32
    %c0_i32_0 = arith.constant 0 : i32
    %c0_i32_1 = arith.constant 0 : i32
    return %arg0, %c0_i32, %c0_i32_0 : i32, i32, i32
  }
}

</mosaic_0001>

<bundles_post_ra>
// kernel: mul.0
= control target key start
LH: loop header
LB: loop body
LE: loop exit
PB: predicated region body
PF: predicated region fallthrough
CT: control target
= control target key end

     0   :  { %s100_s0 = inlined_call_operand.vmem [shape: f32[4,1,7], index: 0, kind: input, shape index: {}]   ;;  %s101_s1 = inlined_call_operand.vmem [shape: f32[4,1,7], index: 1, kind: input, shape index: {}]   ;;  %s102_s2 = inlined_call_operand.vmem [shape: f32[4,1,7], index: 2, kind: output, shape index: {}]  }
   0x1   :  { %v3_v0 = vld [vmem:[%s100_s0] sm:$0x1]  ;;  %v40_v2 = vld [vmem:[%s100_s0 + $0x1] sm:$0x1]  ;;  %v43_v5 = vld [vmem:[%s100_s0 + $0x2] sm:$0x1] }
   0x2   :  { %v4_v1 = vld [vmem:[%s101_s1] sm:$0x1]  ;;  %v41_v4 = vld [vmem:[%s101_s1 + $0x1] sm:$0x1]  ;;  %v44_v6 = vld [vmem:[%s101_s1 + $0x2] sm:$0x1] }
   0x3   :  { %v7_v3 = vmul.f32 %v4_v1, %v3_v0  ;;  %v16_v7 = vmul.f32 %v41_v4, %v40_v2  ;;  %v26_v8 = vmul.f32 %v44_v6, %v43_v5  ;;  %v46_v9 = vld [vmem:[%s100_s0 + $0x3] sm:$0x1] }
   0x4   :  { %v47_v10 = vld [vmem:[%s101_s1 + $0x3] sm:$0x1] }
   0x5   :  { %9 = vst [vmem:[%s102_s2] sm:$0x1] %v7_v3  ;;  %v36_v11 = vmul.f32 %v47_v10, %v46_v9  ;;  %42 = vst [vmem:[%s102_s2 + $0x1] sm:$0x1] %v16_v7 }
   0x6   :  { %45 = vst [vmem:[%s102_s2 + $0x2] sm:$0x1] %v26_v8 }
   0x7   :  { %48 = vst [vmem:[%s102_s2 + $0x3] sm:$0x1] %v36_v11 }

// kernel: pallas_forward.1
= control target key start
LH: loop header
LB: loop body
LE: loop exit
PB: predicated region body
PF: predicated region fallthrough
CT: control target
= control target key end

     0   :  { %s3067_s11 = smov 0   ;;  %s4468_s0 = inlined_call_operand.vmem [shape: f32[2,27,39], index: 0, kind: input, shape index: {}]   ;;  %s4469_s1 = inlined_call_operand.vmem [shape: f32[7,4,1], index: 1, kind: input, shape index: {}]   ;;  %s4470_s2 = inlined_call_operand.vmem [shape: f32[4,1], index: 2, kind: input, shape index: {}]   ;;  %s4471_s3 = inlined_call_operand.vmem [shape: f32[7,8,4], index: 3, kind: input, shape index: {}]   ;;  %s4472_s4 = inlined_call_operand.vmem [shape: f32[8,1], index: 4, kind: input, shape index: {}]   ;;  %s4473_s5 = inlined_call_operand.vmem [shape: f32[7,16,8], index: 5, kind: input, shape index: {}]   ;;  %s4474_s6 = inlined_call_operand.vmem [shape: f32[16,1], index: 6, kind: input, shape index: {}]   ;;  %s4475_s7 = inlined_call_operand.vmem [shape: f32[16,35], index: 7, kind: input, shape index: {}]   ;;  %s4476_s8 = inlined_call_operand.<no memory space> [shape: f32[1,1], index: 8, kind: input, shape index: {}]   ;;  %s4477_s9 = inlined_call_operand.vmem [shape: f32[2,1,1], index: 9, kind: output, shape index: {}]  }
   0x1   :  { %v14_v0 = vstv %s4476_s8 }
   0x2   :  { %15 = vst [vmem:[#allocation4] sm:$0x1] %v14_v0 }
   0x3 LB: > { %s2783_s12 = sadd.s32 4294967295, %s3002_s11   ;;  %p2787_p0 = scmp.ge.s32.totalorder %s3002_s11, 1  ;;  %s3002_s11 = sphi %s3067_s11, %s21_s11  }
   0x4   : > { %p289_p1 = scmp.lt.s32.totalorder %s3002_s11, 3 }
   0x6   : > { %p290_p2 = pnand %p2787_p0, %p289_p1 }
   0x8   : > { %293 = sbr.rel (%p290_p2) target bundleno = 1980 (0x7bc), region = 56 }
   0xf   : > { %v2796_v1 = vld [vmem:[%s4471_s3 + $0x8] sm:$0xff]  ;;  %v4480_v3 = vmov 3   ;;  %v4486_v4 = vmov 0   ;;  %v2799_v5 = vld [vmem:[%s4471_s3 + $0x20] sm:$0xff]  ;;  %v2794_v7 = vld [vmem:[%s4469_s1 + $0x14] sm:$0xf]  ;;  %v904_v36 = vlaneseq }
  0x10   : > { %v2791_v2 = vld [vmem:[%s4469_s1 + $0x8] sm:$0xf]  ;;  %2905 = vset.pattern.permute.xlu0 %v4480_v3  ;;  %2900 = vset.pattern.permute.xlu1 %v4486_v4  ;;  %v2792_v6 = vld [vmem:[%s4469_s1 + $0xc] sm:$0xf]  ;;  %v2797_v8 = vld [vmem:[%s4471_s3 + $0x10] sm:$0xff]  ;;  %v4482_v9 = vmov 2  }
  0x11   : > { %973 = vperm.xlu0 %2905, %v2796_v1   ;;  %388 = vperm.xlu1 %2900, %v2791_v2   ;;  %v331_v10 = vld [vmem:[%s4470_s2] sm:$0xf]  ;;  %v2800_v11 = vld [vmem:[%s4471_s3 + $0x28] sm:$0xff]  ;;  %v2790_v14 = vld [vmem:[%s4469_s1 + $0x4] sm:$0xf]  ;;  %v4484_v17 = vmov 1  }
  0x12   : > { %v348_v12 = vld [vmem:[%s4471_s3] sm:$0xff]  ;;  %v2793_v15 = vld [vmem:[%s4469_s1 + $0x10] sm:$0xf]  ;;  %v2795_v16 = vld [vmem:[%s4469_s1 + $0x18] sm:$0xf]  ;;  %p323_p3 = scmp.lt.s32.totalorder %s2783_s12, 1 }
  0x13   : > { %v335_v13 = vld [vmem:[%s4469_s1] sm:$0xf]  ;;  %v2798_v19 = vld [vmem:[%s4471_s3 + $0x18] sm:$0xff]  ;;  %v2801_v20 = vld [vmem:[%s4471_s3 + $0x30] sm:$0xff]  ;;  %s3008_s13 = smov 127   ;;  %v4478_v47 = vmov 4  }
  0x14   : > { %v332_v18 = vld [vmem:[%s4472_s4] sm:$0xff]  ;;  %v3155_v22 = vld [vmem:[%s4473_s5 + $0x8] sm:$0xff]  ;;  %s4643_s12 = smov (!%p323_p3, %s2783_s12), 1  ;;  %v3237_v52 = vshrl.u32 %v904_v36, 7  ;;  %vm452_vm0 = vcmask 306176   ;;  %vm1199_vm1 = vcmask 302080  }
  0x15   : > { %1099 = vperm.xlu0 %2905, %v2799_v5   ;;  %400 = vperm.xlu1 %2900, %v2792_v6   ;;  %v3139_v21 = vld [vmem:[%s4473_s5] sm:$0xff]  ;;  %4521 = vst [vmem:[#allocation6_spill] sm:$0xff] %v3155_v22  ;;  %s2879_s28 = sshll.u32 %s4643_s12, 5  ;;  %s3013_s22 = smov 126   ;;  %vm2718_vm2 = vcmask 285696   ;;  %vm2734_vm3 = vcmask 0  }
  0x16   : > { %4520 = vst [vmem:[#allocation5_spill] sm:$0xff] %v3139_v21  ;;  %s3179_s10 = scalar_lea.vmem %s4468_s0, %s2879_s28  ;;  %4532 = vst [vmem:[#allocation17_spill] sm:$0xff] %v3237_v52  ;;  %s330_s8 = scalar_lea.vmem %s4477_s9, %s4643_s12 }
  0x17   : > { %v3183_v25 = vld [vmem:[%s3179_s10] ss:$0 sm:$0xff]  ;;  %v2804_v30 = vld [vmem:[%s3179_s10 + $0x2] ss:$0 sm:$0xff]  ;;  %v2811_v33 = vld [vmem:[%s3179_s10 + $0x5] ss:$0 sm:$0xff] }
  0x18   : > { %4524 = vst [vmem:[#allocation9_spill] sm:$0xff] %v3183_v25  ;;  %v2818_v34 = vld [vmem:[%s3179_s10 + $0x8] ss:$0 sm:$0xff]  ;;  %v2825_v35 = vld [vmem:[%s3179_s10 + $0xb] ss:$0 sm:$0xff] }
  0x19   : > { %2914 = vset.pattern.permute.xlu0 %v4482_v9  ;;  %424 = vperm.xlu1 %2900, %v2794_v7   ;;  %v2832_v37 = vld [vmem:[%s3179_s10 + $0xe] ss:$0 sm:$0xff]  ;;  %v2839_v38 = vld [vmem:[%s3179_s10 + $0x11] ss:$0 sm:$0xff]  ;;  %v2846_v39 = vld [vmem:[%s3179_s10 + $0x14] ss:$0 sm:$0xff] }
  0x1a   : > { %1005 = vperm.xlu0 %2914, %v2797_v8   ;;  %v3208_v41 = vld [vmem:[%s3179_s10 + $0x3] ss:$0 sm:$0xff]  ;;  %v3211_v42 = vld [vmem:[%s3179_s10 + $0x6] ss:$0 sm:$0xff]  ;;  %v3216_v44 = vld [vmem:[%s3179_s10 + $0x9] ss:$0 sm:$0xff] }
  0x1b   : > { %4529 = vst [vmem:[#allocation14_spill] sm:$0xff] %v3208_v41  ;;  %v3219_v45 = vld [vmem:[%s3179_s10 + $0xc] ss:$0 sm:$0xff]  ;;  %v3222_v46 = vld [vmem:[%s3179_s10 + $0x1a] ss:$0 sm:$0xff] }
  0x1c   : > { %4531 = vst [vmem:[#allocation16_spill] sm:$0xff] %v3222_v46  ;;  %v3232_v50 = vld [vmem:[%s3179_s10 + $0xf] ss:$0 sm:$0xff]  ;;  %v3235_v51 = vld [vmem:[%s3179_s10 + $0x12] ss:$0 sm:$0xff] }
  0x1d   : > { %447 = vperm.xlu1 %2900, %v331_v10   ;;  %v3252_v57 = vld [vmem:[%s3179_s10 + $0x15] ss:$0 sm:$0xff] }
  0x1e   : > { %1131 = vperm.xlu0 %2914, %v2800_v11  }
  0x21   : > { %901 = vperm.xlu1 %2900, %v348_v12  }
  0x22   : > { %2917 = vset.pattern.permute.xlu0 %v4486_v4 }
  0x23   : > { %364 = vperm.xlu0 %2917, %v335_v13   ;;  %v2810_v13 = vld [vmem:[%s3179_s10 + $0x4] ss:$0 sm:$0xff] }
  0x25   : > { %2901 = vset.pattern.permute.xlu1 %v4482_v9 }
  0x26   : > { %921 = vperm.xlu1 %2901, %v348_v12  }
  0x27   : > { %376 = vperm.xlu0 %2917, %v2790_v14   ;;  %v3302_v14 = vld [vmem:[%s3179_s10 + $0x18] ss:$0 sm:$0xff] }
  0x28   : > { %4538 = vst [vmem:[#allocation23_spill] sm:$0xff] %v3302_v14 }
  0x2a   : > { %2902 = vset.pattern.permute.xlu1 %v4480_v3 }
  0x2b   : > { %412 = vperm.xlu0 %2917, %v2793_v15   ;;  %931 = vperm.xlu1 %2902, %v348_v12  }
  0x2f   : > { %436 = vperm.xlu0 %2917, %v2795_v16   ;;  %2903 = vset.pattern.permute.xlu1 %v4484_v17 }
  0x30   : > { %953 = vperm.xlu1 %2903, %v2796_v1  }
  0x33   : > { %943 = vperm.xlu0 %2917, %v2796_v1  }
  0x34   : > { %2904 = vset.pattern.permute.xlu1 %v4482_v9 }
  0x35   : > { %963 = vperm.xlu1 %2904, %v2796_v1  }
  0x37   : > { %1069 = vperm.xlu0 %2917, %v2799_v5  }
  0x39   : > { %2906 = vset.pattern.permute.xlu1 %v4486_v4 }
  0x3a   : > { %985 = vperm.xlu1 %2906, %v2797_v8  }
  0x3b   : > { %1194 = vperm.xlu0 %2917, %v332_v18  }
  0x3e   : > { %2907 = vset.pattern.permute.xlu1 %v4484_v17 }
  0x3f   : > { %2922 = vset.pattern.permute.xlu0 %v4484_v17  ;;  %995 = vperm.xlu1 %2907, %v2797_v8  }
  0x40   : > { %911 = vperm.xlu0 %2922, %v348_v12   ;;  %v3298_v12 = vld [vmem:[%s3179_s10 + $0x1] ss:$0 sm:$0xff] }
  0x41   : > { %4537 = vst [vmem:[#allocation22_spill] sm:$0xff] %v3298_v12 }
  0x43   : > { %2908 = vset.pattern.permute.xlu1 %v4480_v3 }
  0x44   : > { %1037 = vperm.xlu0 %2922, %v2798_v19   ;;  %1015 = vperm.xlu1 %2908, %v2797_v8  }
  0x48   : > { %1163 = vperm.xlu0 %2922, %v2801_v20   ;;  %2909 = vset.pattern.permute.xlu1 %v4486_v4 }
  0x49   : > { %1027 = vperm.xlu1 %2909, %v2798_v19  }
  0x4c   : > { %1661 = vperm.xlu0 %2922, %v3139_v21  }
  0x4d   : > { %2910 = vset.pattern.permute.xlu1 %v4482_v9 }
  0x4e   : > { %1047 = vperm.xlu1 %2910, %v2798_v19  }
  0x52   : > { %2911 = vset.pattern.permute.xlu1 %v4480_v3 }
  0x53   : > { %1057 = vperm.xlu1 %2911, %v2798_v19  }
  0x57   : > { %2912 = vset.pattern.permute.xlu1 %v4484_v17 }
  0x58   : > { %1079 = vperm.xlu1 %2912, %v2799_v5  }
  0x5c   : > { %2913 = vset.pattern.permute.xlu1 %v4482_v9 }
  0x5d   : > { %1089 = vperm.xlu1 %2913, %v2799_v5   ;;  %v3280_v5 = vld [vmem:[%s3179_s10 + $0x17] ss:$0 sm:$0xff] }
  0x5e   : > { %4535 = vst [vmem:[#allocation20_spill] sm:$0xff] %v3280_v5 }
  0x61   : > { %2915 = vset.pattern.permute.xlu1 %v4486_v4 }
  0x62   : > { %1111 = vperm.xlu1 %2915, %v2800_v11  }
  0x66   : > { %2916 = vset.pattern.permute.xlu1 %v4484_v17 }
  0x67   : > { %1121 = vperm.xlu1 %2916, %v2800_v11  }
  0x6b   : > { %2918 = vset.pattern.permute.xlu1 %v4480_v3 }
  0x6c   : > { %1141 = vperm.xlu1 %2918, %v2800_v11  }
  0x70   : > { %2919 = vset.pattern.permute.xlu1 %v4486_v4 }
  0x71   : > { %1153 = vperm.xlu1 %2919, %v2801_v20  }
  0x75   : > { %2920 = vset.pattern.permute.xlu1 %v4482_v9 }
  0x76   : > { %1173 = vperm.xlu1 %2920, %v2801_v20  }
  0x7a   : > { %2921 = vset.pattern.permute.xlu1 %v4480_v3 }
  0x7b   : > { %1183 = vperm.xlu1 %2921, %v2801_v20   ;;  %v2817_v20 = vld [vmem:[%s3179_s10 + $0x7] ss:$0 sm:$0xff] }
  0x7f   : > { %2923 = vset.pattern.permute.xlu1 %v4486_v4 }
  0x80   : > { %1649 = vperm.xlu1 %2923, %v3155_v22  }
  0x84   : > { %2924 = vset.pattern.permute.xlu1 %v4484_v17 }
  0x85   : > { %1665 = vperm.xlu1 %2924, %v3155_v22  }
  0x89   : > { %2925 = vset.pattern.permute.xlu1 %v4482_v9 }
  0x8a   : > { %1677 = vperm.xlu1 %2925, %v3139_v21  }
  0x8e   : > { %2926 = vset.pattern.permute.xlu1 %v4480_v3 }
  0x8f   : > { %1693 = vperm.xlu1 %2926, %v3139_v21  }
  0x90   : > { %v3172_v23 = vpop.permute.xlu1 %388  ;;  %v3174_v24 = vpop.permute.xlu0 %973 }
  0x91   : > { %4522 = vst [vmem:[#allocation7_spill] sm:$0xff] %v3172_v23  ;;  %4523 = vst [vmem:[#allocation8_spill] sm:$0xff] %v3174_v24  ;;  %v3226_v48 = vmul.f32 %v2804_v30, %v3172_v23  ;;  %v3229_v49 = vmul.f32 %v2811_v33, %v3172_v23  ;;  %v3240_v53 = vmul.f32 %v2818_v34, %v3172_v23 }
  0x92   : > { %v3243_v54 = vmul.f32 %v2825_v35, %v3172_v23  ;;  %v3246_v55 = vmul.f32 %v2832_v37, %v3172_v23  ;;  %v3249_v56 = vmul.f32 %v2839_v38, %v3172_v23  ;;  %v738_v59 = vmul.f32 %v2846_v39, %v3172_v23 }
  0x93   : > { %1697 = vperm.xlu1 %2926, %v3155_v22   ;;  %v3263_v62 = vmul.f32 %v3222_v46, %v3172_v23 }
  0x94   : > { %v3185_v26 = vpop.permute.xlu1 %400  ;;  %v3187_v27 = vpop.permute.xlu0 %1099 }
  0x95   : > { %4525 = vst [vmem:[#allocation10_spill] sm:$0xff] %v3185_v26  ;;  %4526 = vst [vmem:[#allocation11_spill] sm:$0xff] %v3187_v27  ;;  %v855_v28 = vmul.f32 %v3183_v25, %v3185_v26  ;;  %v407_v60 = vmul.f32 %v3208_v41, %v3185_v26  ;;  %v480_v61 = vmul.f32 %v3211_v42, %v3185_v26 }
  0x96   : > { %4534 = vst [vmem:[#allocation19_spill] sm:$0xff] %v3263_v62  ;;  %v533_v63 = vmul.f32 %v3216_v44, %v3185_v26  ;;  %v3269_v0 = vmul.f32 %v3219_v45, %v3185_v26  ;;  %v3273_v1 = vmul.f32 %v3232_v50, %v3185_v26  ;;  %v3277_v2 = vmul.f32 %v3235_v51, %v3185_v26 }
  0x97   : > { %857 = vrot.lane.b32.xlu1 %v855_v28, %s3008_s13  ;;  %v3286_v7 = vmul.f32 %v3252_v57, %v3185_v26  ;;  %v2824_v28 = vld [vmem:[%s3179_s10 + $0xa] ss:$0 sm:$0xff] }
  0x98   : > { %v3192_v29 = vpop.permute.xlu1 %424  ;;  %2927 = vset.pattern.permute.xlu1 %v4478_v47 }
  0x99   : > { %4527 = vst [vmem:[#allocation12_spill] sm:$0xff] %v3192_v29  ;;  %v3195_v31 = vpop.permute.xlu0 %1005  ;;  %v877_v32 = vmul.f32 %v2804_v30, %v3192_v29  ;;  %v3289_v8 = vmul.f32 %v2811_v33, %v3192_v29  ;;  %v3292_v10 = vmul.f32 %v2818_v34, %v3192_v29  ;;  %v3295_v11 = vmul.f32 %v2825_v35, %v3192_v29  ;;  %v2831_v30 = vld [vmem:[%s3179_s10 + $0xd] ss:$0 sm:$0xff] }
  0x9a   : > { %4528 = vst [vmem:[#allocation13_spill] sm:$0xff] %v3195_v31  ;;  %v3305_v15 = vmul.f32 %v2832_v37, %v3192_v29  ;;  %v3308_v16 = vmul.f32 %v2839_v38, %v3192_v29  ;;  %v3311_v18 = vmul.f32 %v2846_v39, %v3192_v29  ;;  %v3315_v19 = vmul.f32 %v3280_v5, %v3192_v29  ;;  %v2838_v37 = vld [vmem:[%s3179_s10 + $0x10] ss:$0 sm:$0xff]  ;;  %v2845_v38 = vld [vmem:[%s3179_s10 + $0x13] ss:$0 sm:$0xff] }
  0x9b   : > { %879 = vrot.lane.b32.xlu1 %v877_v32, %s3008_s13  ;;  %v3333_v39 = vld [vmem:[%s3179_s10 + $0x19] ss:$0 sm:$0xff] }
  0x9c   : > { %v3205_v40 = vpop.permute.xlu1 %447  ;;  %4539 = vst [vmem:[#allocation24_spill] sm:$0xff] %v3315_v19 }
  0x9d   : > { %v3213_v43 = vpop.permute.xlu0 %1131 }
  0x9e   : > { %4530 = vst [vmem:[#allocation15_spill] sm:$0xff] %v3213_v43 }
  0xa0   : > { %v3254_v58 = vpop.permute.xlu1 %901 }
  0xa1   : > { %4533 = vst [vmem:[#allocation18_spill] sm:$0xff] %v3254_v58 }
  0xa2   : > { %v3282_v6 = vpop.permute.xlu0 %364 }
  0xa3   : > { %4536 = vst [vmem:[#allocation21_spill] sm:$0xff] %v3282_v6  ;;  %v371_v32 = vmul.f32 %v3183_v25, %v3282_v6  ;;  %v459_v33 = vmul.f32 %v3208_v41, %v3282_v6  ;;  %v512_v34 = vmul.f32 %v3211_v42, %v3282_v6  ;;  %v565_v35 = vmul.f32 %v3216_v44, %v3282_v6 }
  0xa4   : > { %v618_v47 = vmul.f32 %v3219_v45, %v3282_v6  ;;  %v671_v3 = vmul.f32 %v3232_v50, %v3282_v6  ;;  %v724_v9 = vmul.f32 %v3235_v51, %v3282_v6  ;;  %v834_v4 = vmul.f32 %v3302_v14, %v3282_v6 }
  0xa5   : > { %v3328_v36 = vpop.permute.xlu1 %921 }
  0xa6   : > { %4540 = vst [vmem:[#allocation25_spill] sm:$0xff] %v3328_v36  ;;  %v3341_v17 = vpop.permute.xlu0 %376 }
  0xa7   : > { %v383_v21 = vmul.f32 %v3298_v12, %v3341_v17  ;;  %v466_v22 = vmul.f32 %v2810_v13, %v3341_v17  ;;  %v519_v43 = vmul.f32 %v2817_v20, %v3341_v17  ;;  %v572_v27 = vmul.f32 %v2824_v28, %v3341_v17 }
  0xa8   : > { %v625_v46 = vmul.f32 %v2831_v30, %v3341_v17  ;;  %v678_v29 = vmul.f32 %v2838_v37, %v3341_v17  ;;  %v731_v26 = vmul.f32 %v2845_v38, %v3341_v17  ;;  %v841_v31 = vmul.f32 %v3333_v39, %v3341_v17 }
  0xa9   : > { %v384_v24 = vadd.f32 %v383_v21, %v371_v32  ;;  %v467_v36 = vadd.f32 %v466_v22, %v459_v33  ;;  %v520_v58 = vadd.f32 %v519_v43, %v512_v34  ;;  %v573_v41 = vadd.f32 %v572_v27, %v565_v35 }
  0xaa   : > { %v626_v5 = vadd.f32 %v625_v46, %v618_v47  ;;  %v679_v23 = vadd.f32 %v678_v29, %v671_v3  ;;  %v732_v52 = vadd.f32 %v731_v26, %v724_v9  ;;  %v3355_v62 = vpop.permute.xlu0 %412  ;;  %v3357_v12 = vpop.permute.xlu1 %931  ;;  %v3359_v6 = vadd.f32 %v841_v31, %v834_v4 }
  0xab   : > { %v396_v25 = vadd.f32 %v3226_v48, %v384_v24  ;;  %v474_v14 = vadd.f32 %v3229_v49, %v467_v36  ;;  %v527_v19 = vadd.f32 %v3240_v53, %v520_v58  ;;  %v580_v21 = vadd.f32 %v3243_v54, %v573_v41  ;;  %v2848_v58 = vld [vmem:[%s3179_s10 + $0x16] ss:$0 sm:$0xff] }
  0xac   : > { %v633_v22 = vadd.f32 %v3246_v55, %v626_v5  ;;  %v686_v27 = vadd.f32 %v3249_v56, %v679_v23  ;;  %v739_v3 = vadd.f32 %v738_v59, %v732_v52  ;;  %v419_v9 = vmul.f32 %v2810_v13, %v3355_v62 }
  0xad   : > { %v408_v26 = vadd.f32 %v407_v60, %v396_v25  ;;  %v481_v29 = vadd.f32 %v480_v61, %v474_v14  ;;  %v487_v4 = vmul.f32 %v2817_v20, %v3355_v62  ;;  %v534_v31 = vadd.f32 %v533_v63, %v527_v19 }
  0xae   : > { %v540_v24 = vmul.f32 %v2824_v28, %v3355_v62  ;;  %v587_v43 = vadd.f32 %v3269_v0, %v580_v21  ;;  %v593_v46 = vmul.f32 %v2831_v30, %v3355_v62  ;;  %v640_v41 = vadd.f32 %v3273_v1, %v633_v22  ;;  %v3373_v47 = vpop.permute.xlu0 %436 }
  0xaf   : > { %v420_v23 = vadd.f32 %v419_v9, %v408_v26  ;;  %v488_v48 = vadd.f32 %v487_v4, %v481_v29  ;;  %v646_v25 = vmul.f32 %v2838_v37, %v3355_v62  ;;  %v693_v49 = vadd.f32 %v3277_v2, %v686_v27  ;;  %v3377_v52 = vpop.permute.xlu1 %953  ;;  %v4542_v37 = vld [vmem:[#allocation23_spill] sm:$0xff] }
  0xb0   : > { %v541_v53 = vadd.f32 %v540_v24, %v534_v31  ;;  %v594_v54 = vadd.f32 %v593_v46, %v587_v43  ;;  %v699_v55 = vmul.f32 %v2845_v38, %v3355_v62  ;;  %v746_v56 = vadd.f32 %v3286_v7, %v739_v3  ;;  %v4543_v3 = vld [vmem:[#allocation9_spill] sm:$0xff] }
  0xb1   : > { %v647_v59 = vadd.f32 %v646_v25, %v640_v41  ;;  %v752_v60 = vmul.f32 %v2848_v58, %v3355_v62  ;;  %v432_v61 = vadd.f32 %v3289_v8, %v420_v23  ;;  %v443_v63 = vmul.f32 %v3211_v42, %v3373_v47  ;;  %v4544_v24 = vld [vmem:[#allocation21_spill] sm:$0xff]  ;;  %v4545_v23 = vld [vmem:[#allocation22_spill] sm:$0xff]  ;;  %v4546_v25 = vld [vmem:[#allocation19_spill] sm:$0xff] }
  0xb2   : > { %v700_v0 = vadd.f32 %v699_v55, %v693_v49  ;;  %v495_v1 = vadd.f32 %v3292_v10, %v488_v48  ;;  %v501_v2 = vmul.f32 %v3216_v44, %v3373_v47  ;;  %v548_v5 = vadd.f32 %v3295_v11, %v541_v53  ;;  %v3390_v13 = vpop.permute.xlu0 %943  ;;  %v4547_v55 = vld [vmem:[#allocation17_spill] sm:$0xff] }
  0xb3   : > { %v753_v7 = vadd.f32 %v752_v60, %v746_v56  ;;  %v444_v14 = vadd.f32 %v443_v63, %v432_v61  ;;  %v554_v19 = vmul.f32 %v3219_v45, %v3373_v47  ;;  %v601_v8 = vadd.f32 %v3305_v15, %v594_v54  ;;  %v4548_v63 = vld [vmem:[#allocation7_spill] sm:$0xff] }
  0xb4   : > { %v502_v20 = vadd.f32 %v501_v2, %v495_v1  ;;  %v607_v42 = vmul.f32 %v3232_v50, %v3373_v47  ;;  %v654_v10 = vadd.f32 %v3308_v16, %v647_v59  ;;  %v660_v44 = vmul.f32 %v3235_v51, %v3373_v47  ;;  %v3400_v28 = vpop.permute.xlu1 %963  ;;  %v4541_v50 = vld [vmem:[#allocation24_spill] sm:$0xff] }
  0xb5   : > { %v450_v11 = vadd.f32 %v3205_v40, %v444_v14  ;;  %v555_v30 = vadd.f32 %v554_v19, %v548_v5  ;;  %v707_v32 = vadd.f32 %v3311_v18, %v700_v0  ;;  %v713_v45 = vmul.f32 %v3252_v57, %v3373_v47  ;;  %v4549_v0 = vld [vmem:[#allocation20_spill] sm:$0xff] }
  0xb6   : > { %v503_v15 = vadd.f32 %v502_v20, %v3205_v40  ;;  %v608_v33 = vadd.f32 %v607_v42, %v601_v8  ;;  %v661_v34 = vadd.f32 %v660_v44, %v654_v10  ;;  %v760_v35 = vadd.f32 %v4541_v50, %v753_v7  ;;  %v3411_v21 = vpop.permute.xlu0 %1069  ;;  %v4551_v10 = vld [vmem:[#allocation18_spill] sm:$0xff] }
  0xb7   : > { %v451_v16 = vmax.f32 %v450_v11, 0.0  ;;  %v556_v36 = vadd.f32 %v555_v30, %v3205_v40  ;;  %v714_v51 = vadd.f32 %v713_v45, %v707_v32  ;;  %v766_v38 = vmul.f32 %v4542_v37, %v3373_v47 }
  0xb8   : > { %v504_v22 = vmax.f32 %v503_v15, 0.0  ;;  %v609_v18 = vadd.f32 %v608_v33, %v3205_v40  ;;  %v662_v27 = vadd.f32 %v661_v34, %v3205_v40  ;;  %v819_v9 = vmul.f32 %v4543_v3, %v3373_v47  ;;  %v4552_v34 = vld [vmem:[#allocation25_spill] sm:$0xff] }
  0xb9   : > { %453 = vst.msk [vmem:[#allocation2] sm:$0xf] %vm452_vm0, %v451_v16  ;;  %v557_v26 = vmax.f32 %v556_v36, 0.0  ;;  %v715_v29 = vadd.f32 %v714_v51, %v3205_v40  ;;  %v767_v4 = vadd.f32 %v766_v38, %v760_v35  ;;  %v3419_v31 = vpop.permute.xlu1 %985  ;;  %v777_v43 = vmul.f32 %v3252_v57, %v4544_v24 }
  0xba   : > { %506 = vst.msk [vmem:[#allocation2 + $0x4] sm:$0xf] %vm452_vm0, %v504_v22  ;;  %v610_v46 = vmax.f32 %v609_v18, 0.0  ;;  %v663_v41 = vmax.f32 %v662_v27, 0.0  ;;  %821 = vrot.lane.b32.xlu0 %v819_v9, %s3008_s13  ;;  %v866_v48 = vmul.f32 %v4545_v23, %v3355_v62  ;;  %v3429_v49 = vadd.f32 %v4546_v25, %v3359_v6  ;;  %v3443_v60 = vpop.permute.xlu0 %1194  ;;  %v4553_v23 = vld [vmem:[#allocation8_spill] sm:$0xff] }
  0xbb   : > { %559 = vst.msk [vmem:[#allocation2 + $0x8] sm:$0xf] %vm452_vm0, %v557_v26  ;;  %v716_v53 = vmax.f32 %v715_v29, 0.0  ;;  %v768_v54 = vadd.f32 %v767_v4, %v3205_v40  ;;  %v784_v57 = vmul.f32 %v2848_v58, %v3341_v17  ;;  %v3437_v56 = vsub.s32 1, %v4547_v55  ;;  %v4550_v17 = vld [vmem:[#allocation14_spill] sm:$0xff] }
  0xbc   : > { %612 = vst.msk [vmem:[#allocation2 + $0xc] sm:$0xf] %vm452_vm0, %v610_v46  ;;  %665 = vst.msk [vmem:[#allocation2 + $0x10] sm:$0xf] %vm452_vm0, %v663_v41  ;;  %v3441_v6 = vsub.s32 0, %v4547_v55  ;;  %v791_v1 = vmul.f32 %v4549_v0, %v4548_v63  ;;  %v888_v58 = vmul.f32 %v4550_v17, %v3373_v47  ;;  %v3456_v7 = vsub.s32 2, %v4547_v55 }
  0xbd   : > { %718 = vst.msk [vmem:[#allocation2 + $0x14] sm:$0xf] %vm452_vm0, %v716_v53  ;;  %v769_v59 = vmax.f32 %v768_v54, 0.0  ;;  %v785_v61 = vadd.f32 %v784_v57, %v777_v43  ;;  %v3461_v20 = vsub.s32 3, %v4547_v55 }
  0xbe   : > { %868 = vrot.lane.b32.xlu0 %v866_v48, %s3008_s13  ;;  %v3450_v2 = vpop.permute.xlu1 %995 }
  0xbf   : > { %771 = vst.msk [vmem:[#allocation2 + $0x18] sm:$0xf] %vm452_vm0, %v769_v59  ;;  %v3453_v5 = vadd.f32 %v791_v1, %v785_v61  ;;  %v3464_v47 = vpop.permute.xlu0 %911 }
  0xc0   : > { %v898_v14 = vld [vmem:[#allocation2] sm:$0xf] }
  0xc1   : > { %v907_v19 = vrot.slane %v898_v14, %v3441_v6  ;;  %v917_v8 = vrot.slane %v898_v14, %v3437_v56  ;;  %v927_v30 = vrot.slane %v898_v14, %v3456_v7  ;;  %v940_v32 = vld [vmem:[#allocation2 + $0x4] sm:$0xf]  ;;  %v937_v45 = vrot.slane %v898_v14, %v3461_v20 }
  0xc2   : > { %890 = vrot.lane.b32.xlu0 %v888_v58, %s3008_s13  ;;  %v949_v15 = vrot.slane %v940_v32, %v3441_v6  ;;  %v959_v16 = vrot.slane %v940_v32, %v3437_v56  ;;  %v969_v22 = vrot.slane %v940_v32, %v3456_v7  ;;  %v982_v27 = vld [vmem:[#allocation2 + $0x8] sm:$0xf]  ;;  %v979_v26 = vrot.slane %v940_v32, %v3461_v20  ;;  %v4554_v58 = vld [vmem:[#allocation13_spill] sm:$0xff] }
  0xc3   : > { %v3466_v42 = vpop.permute.xlu1 %1015  ;;  %v908_v44 = vmul.f32 %v907_v19, %v4551_v10  ;;  %v918_v11 = vmul.f32 %v917_v8, %v3464_v47  ;;  %v928_v50 = vmul.f32 %v927_v30, %v4552_v34  ;;  %v938_v51 = vmul.f32 %v937_v45, %v3357_v12  ;;  %v1024_v0 = vld [vmem:[#allocation2 + $0xc] sm:$0xf]  ;;  %v3500_v30 = vpop.permute.xlu0 %1037 }
  0xc4   : > { %v950_v38 = vmul.f32 %v949_v15, %v3390_v13  ;;  %v960_v9 = vmul.f32 %v959_v16, %v3377_v52  ;;  %v970_v4 = vmul.f32 %v969_v22, %v3400_v28  ;;  %v991_v24 = vrot.slane %v982_v27, %v3441_v6 }
  0xc5   : > { %v919_v33 = vadd.f32 %v918_v11, %v908_v44  ;;  %v1001_v46 = vrot.slane %v982_v27, %v3437_v56  ;;  %v980_v48 = vmul.f32 %v979_v26, %v4553_v23  ;;  %v1011_v57 = vrot.slane %v982_v27, %v3456_v7 }
  0xc6   : > { %v992_v53 = vmul.f32 %v991_v24, %v3419_v31  ;;  %v1021_v63 = vrot.slane %v982_v27, %v3461_v20  ;;  %v1043_v19 = vrot.slane %v1024_v0, %v3437_v56  ;;  %v1033_v11 = vrot.slane %v1024_v0, %v3441_v6 }
  0xc7   : > { %v929_v36 = vadd.f32 %v928_v50, %v919_v33  ;;  %v1002_v59 = vmul.f32 %v1001_v46, %v3450_v2  ;;  %v1012_v14 = vmul.f32 %v1011_v57, %v4554_v58  ;;  %v1066_v33 = vld [vmem:[#allocation2 + $0x10] sm:$0xf] }
  0xc8   : > { %v3474_v35 = vpop.permute.xlu1 %1027  ;;  %v1022_v44 = vmul.f32 %v1021_v63, %v3466_v42  ;;  %v1044_v50 = vmul.f32 %v1043_v19, %v3500_v30  ;;  %v1085_v24 = vrot.slane %v1066_v33, %v3437_v56  ;;  %v1105_v57 = vrot.slane %v1066_v33, %v3461_v20 }
  0xc9   : > { %v939_v18 = vadd.f32 %v938_v51, %v929_v36  ;;  %v1034_v45 = vmul.f32 %v1033_v11, %v3474_v35  ;;  %v1053_v36 = vrot.slane %v1024_v0, %v3456_v7  ;;  %v1075_v51 = vrot.slane %v1066_v33, %v3441_v6 }
  0xcb   : > { %v951_v29 = vadd.f32 %v950_v38, %v939_v18  ;;  %v1063_v18 = vrot.slane %v1024_v0, %v3461_v20 }
  0xcd   : > { %v3480_v3 = vpop.permute.xlu1 %1047  ;;  %v961_v43 = vadd.f32 %v960_v9, %v951_v29  ;;  %v1076_v29 = vmul.f32 %v1075_v51, %v3411_v21  ;;  %v1150_v51 = vld [vmem:[#allocation2 + $0x18] sm:$0xf] }
  0xce   : > { %v1054_v22 = vmul.f32 %v1053_v36, %v3480_v3  ;;  %v1351_v36 = vld [vmem:[#allocation2] sm:$0xf] }
  0xcf   : > { %v971_v41 = vadd.f32 %v970_v4, %v961_v43  ;;  %v4555_v43 = vld [vmem:[#allocation10_spill] sm:$0xff] }
  0xd0   : > { %v798_v46 = vmul.f32 %v4542_v37, %v4555_v43  ;;  %v4557_v37 = vld [vmem:[#allocation16_spill] sm:$0xff]  ;;  %v1159_v43 = vrot.slane %v1150_v51, %v3441_v6 }
  0xd1   : > { %v981_v54 = vadd.f32 %v980_v48, %v971_v41  ;;  %v805_v41 = vmul.f32 %v3333_v39, %v3355_v62  ;;  %v4558_v62 = vld [vmem:[#allocation11_spill] sm:$0xff] }
  0xd2   : > { %v3488_v25 = vpop.permute.xlu1 %1057  ;;  %v1106_v39 = vmul.f32 %v1105_v57, %v4558_v62  ;;  %v1365_v57 = vrot.slane %v1351_v36, %v3437_v56 }
  0xd3   : > { %v993_v61 = vadd.f32 %v992_v53, %v981_v54  ;;  %v1064_v26 = vmul.f32 %v1063_v18, %v3488_v25  ;;  %v1095_v54 = vrot.slane %v1066_v33, %v3456_v7  ;;  %v1355_v18 = vrot.slane %v1351_v36, %v3441_v6 }
  0xd5   : > { %v1003_v17 = vadd.f32 %v1002_v59, %v993_v61  ;;  %v1108_v61 = vld [vmem:[#allocation2 + $0x14] sm:$0xf] }
  0xd7   : > { %v3494_v1 = vpop.permute.xlu1 %1079  ;;  %v1013_v8 = vadd.f32 %v1012_v14, %v1003_v17  ;;  %v799_v17 = vadd.f32 %v798_v46, %v3453_v5  ;;  %v4556_v14 = vld [vmem:[#allocation12_spill] sm:$0xff] }
  0xd8   : > { %v1086_v53 = vmul.f32 %v1085_v24, %v3494_v1  ;;  %v812_v19 = vmul.f32 %v4557_v37, %v4556_v14  ;;  %v1179_v14 = vrot.slane %v1150_v51, %v3456_v7 }
  0xd9   : > { %v1023_v32 = vadd.f32 %v1022_v44, %v1013_v8  ;;  %v1117_v44 = vrot.slane %v1108_v61, %v3441_v6  ;;  %v806_v11 = vadd.f32 %v805_v41, %v799_v17  ;;  %v3545_v41 = vpop.permute.xlu0 %1163 }
  0xda   : > { %v1366_v37 = vmul.f32 %v1365_v57, %v3545_v41 }
  0xdb   : > { %v1035_v16 = vadd.f32 %v1034_v45, %v1023_v32  ;;  %v1127_v32 = vrot.slane %v1108_v61, %v3437_v56  ;;  %v3535_v5 = vadd.f32 %v812_v19, %v806_v11  ;;  %v1471_v19 = vld [vmem:[#allocation2] sm:$0xf] }
  0xdc   : > { %v3503_v15 = vpop.permute.xlu1 %1089 }
  0xdd   : > { %v1045_v38 = vadd.f32 %v1044_v50, %v1035_v16  ;;  %v1096_v0 = vmul.f32 %v1095_v54, %v3503_v15  ;;  %v1137_v16 = vrot.slane %v1108_v61, %v3456_v7 }
  0xdf   : > { %v1055_v9 = vadd.f32 %v1054_v22, %v1045_v38 }
  0xe1   : > { %v3510_v27 = vpop.permute.xlu1 %1111  ;;  %v1065_v4 = vadd.f32 %v1064_v26, %v1055_v9  ;;  %v4559_v26 = vld [vmem:[#allocation15_spill] sm:$0xff] }
  0xe2   : > { %v1118_v50 = vmul.f32 %v1117_v44, %v3510_v27 }
  0xe3   : > { %v1077_v48 = vadd.f32 %v1076_v29, %v1065_v4  ;;  %v1138_v29 = vmul.f32 %v1137_v16, %v4559_v26  ;;  %v1147_v4 = vrot.slane %v1108_v61, %v3461_v20  ;;  %v1385_v16 = vrot.slane %v1351_v36, %v3461_v20 }
  0xe5   : > { %v1087_v63 = vadd.f32 %v1086_v53, %v1077_v48 }
  0xe6   : > { %v3522_v59 = vpop.permute.xlu1 %1121 }
  0xe7   : > { %v1097_v8 = vadd.f32 %v1096_v0, %v1087_v63  ;;  %v1128_v22 = vmul.f32 %v1127_v32, %v3522_v59  ;;  %v1169_v63 = vrot.slane %v1150_v51, %v3437_v56  ;;  %v1375_v0 = vrot.slane %v1351_v36, %v3456_v7 }
  0xe9   : > { %v1107_v33 = vadd.f32 %v1106_v39, %v1097_v8  ;;  %v1170_v8 = vmul.f32 %v1169_v63, %v3545_v41  ;;  %v1505_v63 = vrot.slane %v1471_v19, %v3461_v20 }
  0xeb   : > { %v3531_v45 = vpop.permute.xlu1 %1141  ;;  %v1119_v38 = vadd.f32 %v1118_v50, %v1107_v33  ;;  %v1475_v33 = vrot.slane %v1471_v19, %v3441_v6  ;;  %v1189_v50 = vrot.slane %v1150_v51, %v3461_v20 }
  0xec   : > { %v1148_v53 = vmul.f32 %v1147_v4, %v3531_v45  ;;  %v1485_v4 = vrot.slane %v1471_v19, %v3437_v56 }
  0xed   : > { %v1129_v9 = vadd.f32 %v1128_v22, %v1119_v38  ;;  %v1476_v22 = vmul.f32 %v1475_v33, %v3474_v35 }
  0xef   : > { %v1139_v48 = vadd.f32 %v1138_v29, %v1129_v9 }
  0xf0   : > { %v3541_v24 = vpop.permute.xlu1 %1153 }
  0xf1   : > { %v1356_v46 = vmul.f32 %v1355_v18, %v3541_v24  ;;  %v1160_v54 = vmul.f32 %v1159_v43, %v3541_v24  ;;  %v1149_v61 = vadd.f32 %v1148_v53, %v1139_v48  ;;  %v1512_v43 = vld [vmem:[#allocation2 + $0x4] sm:$0xf] }
  0xf2   : > { %v1516_v51 = vrot.slane %v1512_v43, %v3441_v6 }
  0xf3   : > { %1358 = vrot.lane.b32.xlu1 %v1356_v46, %s3008_s13  ;;  %v1161_v39 = vadd.f32 %v1160_v54, %v1149_v61  ;;  %v1495_v46 = vrot.slane %v1471_v19, %v3456_v7  ;;  %v1486_v54 = vmul.f32 %v1485_v4, %v3500_v30 }
  0xf4   : > { %v1517_v61 = vmul.f32 %v1516_v51, %v3411_v21 }
  0xf5   : > { %v3553_v17 = vpop.permute.xlu1 %1173  ;;  %v1171_v32 = vadd.f32 %v1170_v8, %v1161_v39  ;;  %v1496_v36 = vmul.f32 %v1495_v46, %v3480_v3  ;;  %v1526_v8 = vrot.slane %v1512_v43, %v3437_v56  ;;  %v1553_v39 = vld [vmem:[#allocation2 + $0x8] sm:$0xf] }
  0xf6   : > { %v1376_v44 = vmul.f32 %v1375_v0, %v3553_v17  ;;  %v1180_v11 = vmul.f32 %v1179_v14, %v3553_v17  ;;  %v1506_v0 = vmul.f32 %v1505_v63, %v3488_v25  ;;  %v1536_v14 = vrot.slane %v1512_v43, %v3456_v7 }
  0xf7   : > { %1368 = vrot.lane.b32.xlu1 %v1366_v37, %s3008_s13  ;;  %v1201_v37 = vld [vmem:[#allocation2 + $0xc] sm:$0xf]  ;;  %v1527_v19 = vmul.f32 %v1526_v8, %v3494_v1  ;;  %v1567_v4 = vrot.slane %v1553_v39, %v3437_v56 }
  0xf8   : > { %1378 = vrot.lane.b32.xlu0 %v1376_v44, %s3008_s13  ;;  %v1181_v18 = vadd.f32 %v1180_v11, %v1171_v32  ;;  %v1537_v44 = vmul.f32 %v1536_v14, %v3503_v15  ;;  %v1546_v11 = vrot.slane %v1512_v43, %v3461_v20  ;;  %v1205_v32 = vrot.slane %v1201_v37, %v3441_v6  ;;  %v1594_v43 = vld [vmem:[#allocation2 + $0xc] sm:$0xf]  ;;  %v1226_v14 = vld [vmem:[#allocation2 + $0x10] sm:$0xf] }
  0xf9   : > { %v1211_v33 = vrot.slane %v1201_v37, %v3437_v56  ;;  %v1217_v46 = vrot.slane %v1201_v37, %v3456_v7  ;;  %v1568_v51 = vmul.f32 %v1567_v4, %v3522_v59 }
  0xfa   : > { %v3565_v38 = vpop.permute.xlu1 %1183 }
  0xfb   : > { %v1190_v9 = vmul.f32 %v1189_v50, %v3565_v38  ;;  %v1386_v29 = vmul.f32 %v1385_v16, %v3565_v38  ;;  %v1557_v50 = vrot.slane %v1553_v39, %v3441_v6  ;;  %v1218_v63 = vmul.f32 %v1217_v46, %v4552_v34 }
  0xfc   : > { %1478 = vrot.lane.b32.xlu0 %v1476_v22, %s3008_s13  ;;  %v1577_v22 = vrot.slane %v1553_v39, %v3456_v7  ;;  %v1242_v46 = vrot.slane %v1226_v14, %v3456_v7 }
  0xfd   : > { %v1191_v48 = vadd.f32 %v1190_v9, %v1181_v18  ;;  %1388 = vrot.lane.b32.xlu1 %v1386_v29, %s3008_s13  ;;  %v1558_v16 = vmul.f32 %v1557_v50, %v3510_v27  ;;  %v1547_v18 = vmul.f32 %v1546_v11, %v4558_v62  ;;  %v1206_v9 = vmul.f32 %v1205_v32, %v4551_v10 }
  0xfe   : > { %v1212_v29 = vmul.f32 %v1211_v33, %v3464_v47  ;;  %v1618_v11 = vrot.slane %v1594_v43, %v3456_v7  ;;  %v1230_v32 = vrot.slane %v1226_v14, %v3441_v6 }
  0xff   : > { %v1197_v53 = vadd.f32 %v3443_v60, %v1191_v48  ;;  %v3605_v48 = vpop.permute.xlu1 %1649 }
 0x100   : > { %1498 = vrot.lane.b32.xlu0 %v1496_v36, %s3008_s13  ;;  %v1578_v36 = vmul.f32 %v1577_v22, %v4559_v26  ;;  %v1628_v22 = vrot.slane %v1594_v43, %v3461_v20 }
 0x101   : > { %v1198_v57 = vmax.f32 %v1197_v53, 0.0  ;;  %1488 = vrot.lane.b32.xlu1 %v1486_v54, %s3008_s13  ;;  %v1213_v53 = vadd.f32 %v1212_v29, %v1206_v9  ;;  %v1598_v54 = vrot.slane %v1594_v43, %v3441_v6  ;;  %v1231_v9 = vmul.f32 %v1230_v32, %v3390_v13 }
 0x103   : > { %1200 = vst.msk [vmem:[#allocation3] sm:$0xff] %vm1199_vm1, %v1198_v57  ;;  %v1587_v57 = vrot.slane %v1553_v39, %v3461_v20  ;;  %v1608_v39 = vrot.slane %v1594_v43, %v3437_v56  ;;  %v4560_v43 = vld [vmem:[#allocation6_spill] sm:$0xff] }
 0x104   : > { %1519 = vrot.lane.b32.xlu0 %v1517_v61, %s3008_s13  ;;  %v1223_v61 = vrot.slane %v1201_v37, %v3461_v20 }
 0x105   : > { %1508 = vrot.lane.b32.xlu1 %v1506_v0, %s3008_s13  ;;  %v1599_v0 = vmul.f32 %v1598_v54, %v3541_v24  ;;  %v1588_v8 = vmul.f32 %v1587_v57, %v3531_v45  ;;  %v1619_v24 = vmul.f32 %v1618_v11, %v3553_v17  ;;  %v1609_v33 = vmul.f32 %v1608_v39, %v3545_v41  ;;  %v1251_v57 = vld [vmem:[#allocation2 + $0x14] sm:$0xf]  ;;  %v3655_v39 = vpop.permute.xlu0 %1661 }
 0x106   : > { %v1224_v37 = vmul.f32 %v1223_v61, %v3357_v12  ;;  %v1629_v41 = vmul.f32 %v1628_v22, %v3565_v38  ;;  %v1243_v54 = vmul.f32 %v1242_v46, %v3400_v28  ;;  %v1255_v61 = vrot.slane %v1251_v57, %v3441_v6 }
 0x107   : > { %v1261_v32 = vrot.slane %v1251_v57, %v3437_v56 }
 0x108   : > { %1539 = vrot.lane.b32.xlu0 %v1537_v44, %s3008_s13  ;;  %v1219_v44 = vadd.f32 %v1218_v63, %v1213_v53  ;;  %v1248_v53 = vrot.slane %v1226_v14, %v3461_v20  ;;  %v4514_v63 = vmov 5  }
 0x109   : > { %1529 = vrot.lane.b32.xlu1 %v1527_v19, %s3008_s13  ;;  %v3617_v19 = vpop.permute.xlu1 %1665 }
 0x10a   : > { %v1225_v50 = vadd.f32 %v1224_v37, %v1219_v44  ;;  %v4561_v44 = vld [vmem:[#allocation5_spill] sm:$0xff]  ;;  %v4512_v37 = vmov 6  }
 0x10c   : > { %1560 = vrot.lane.b32.xlu0 %v1558_v16, %s3008_s13  ;;  %v3632_v16 = vld [vmem:[%s4473_s5 + $0x28] sm:$0xff]  ;;  %v1232_v17 = vadd.f32 %v1231_v9, %v1225_v50  ;;  %v1267_v9 = vrot.slane %v1251_v57, %v3456_v7 }
 0x10d   : > { %1549 = vrot.lane.b32.xlu1 %v1547_v18, %s3008_s13  ;;  %v1236_v18 = vrot.slane %v1226_v14, %v3437_v56  ;;  %v3637_v29 = vpop.permute.xlu1 %1677  ;;  %v1256_v14 = vmul.f32 %v1255_v61, %v3419_v31 }
 0x10f   : > { %v1237_v4 = vmul.f32 %v1236_v18, %v3377_v52  ;;  %v1262_v18 = vmul.f32 %v1261_v32, %v3450_v2 }
 0x110   : > { %1580 = vrot.lane.b32.xlu0 %v1578_v36, %s3008_s13 }
 0x111   : > { %1570 = vrot.lane.b32.xlu1 %v1568_v51, %s3008_s13  ;;  %v1238_v36 = vadd.f32 %v1237_v4, %v1232_v17  ;;  %v3644_v51 = vpop.permute.xlu1 %1693 }
 0x113   : > { %v1244_v38 = vadd.f32 %v1243_v54, %v1238_v36  ;;  %v1268_v54 = vmul.f32 %v1267_v9, %v4554_v58 }
 0x114   : > { %1601 = vrot.lane.b32.xlu0 %v1599_v0, %s3008_s13  ;;  %v1249_v0 = vmul.f32 %v1248_v53, %v4553_v23 }
 0x115   : > { %1590 = vrot.lane.b32.xlu1 %v1588_v8, %s3008_s13  ;;  %v3652_v8 = vpop.permute.xlu1 %1697 }
 0x116   : > { %v1250_v11 = vadd.f32 %v1249_v0, %v1244_v38  ;;  %v1273_v38 = vrot.slane %v1251_v57, %v3461_v20  ;;  %v4510_v0 = vmov 7  }
 0x118   : > { %1621 = vrot.lane.b32.xlu0 %v1619_v24, %s3008_s13  ;;  %v1257_v24 = vadd.f32 %v1256_v14, %v1250_v11  ;;  %v1276_v11 = vld [vmem:[#allocation2 + $0x18] sm:$0xf]  ;;  %v1274_v32 = vmul.f32 %v1273_v38, %v3466_v42 }
 0x119   : > { %1611 = vrot.lane.b32.xlu1 %v1609_v33, %s3008_s13  ;;  %v858_v33 = vpop.permute.xlu1 %857 }
 0x11a   : > { %v1263_v4 = vadd.f32 %v1262_v18, %v1257_v24  ;;  %v3676_v24 = vld [vmem:[%s4473_s5 + $0x10] sm:$0xff] }
 0x11c   : > { %1933 = vperm.xlu0 %2922, %v3632_v16  }
 0x11d   : > { %1631 = vrot.lane.b32.xlu1 %v1629_v41, %s3008_s13  ;;  %v860_v41 = vadd.f32 %v858_v33, %v3429_v49  ;;  %v880_v61 = vpop.permute.xlu1 %879  ;;  %v1269_v49 = vadd.f32 %v1268_v54, %v1263_v4  ;;  %v1292_v54 = vrot.slane %v1276_v11, %v3456_v7 }
 0x11f   : > { %v1275_v33 = vadd.f32 %v1274_v32, %v1269_v49  ;;  %v1298_v49 = vrot.slane %v1276_v11, %v3461_v20 }
 0x121   : > { %1713 = vperm.xlu1 %2927, %v4560_v43   ;;  %v1299_v32 = vmul.f32 %v1298_v49, %v3488_v25 }
 0x125   : > { %2928 = vset.pattern.permute.xlu1 %v4514_v63 }
 0x126   : > { %1725 = vperm.xlu1 %2928, %v4561_v44  }
 0x12a   : > { %2929 = vset.pattern.permute.xlu1 %v4512_v37 }
 0x12b   : > { %1741 = vperm.xlu1 %2929, %v4561_v44  }
 0x12c   : > { %v822_v50 = vpop.permute.xlu0 %821 }
 0x12d   : > { %v824_v22 = vadd.f32 %v822_v50, %v3535_v5  ;;  %v1280_v50 = vrot.slane %v1276_v11, %v3441_v6 }
 0x12f   : > { %v825_v17 = vadd.f32 %v824_v22, %v3205_v40  ;;  %1745 = vperm.xlu1 %2929, %v4560_v43   ;;  %v4562_v22 = vmov 0   ;;  %v1281_v9 = vmul.f32 %v1280_v50, %v3474_v35 }
 0x130   : > { %v869_v46 = vpop.permute.xlu0 %868 }
 0x131   : > { %v826_v36 = vmax.f32 %v825_v17, 0.0  ;;  %v871_v53 = vadd.f32 %v869_v46, %v860_v41  ;;  %v1282_v41 = vadd.f32 %v1281_v9, %v1275_v33  ;;  %v4563_v17 = vmov 1   ;;  %v3691_v46 = vld [vmem:[%s4473_s5 + $0x18] sm:$0xff] }
 0x133   : > { %828 = vst.msk [vmem:[#allocation2 + $0x1c] sm:$0xf] %vm452_vm0, %v826_v36  ;;  %v882_v5 = vadd.f32 %v880_v61, %v871_v53  ;;  %2930 = vset.pattern.permute.xlu1 %v4510_v0  ;;  %v1293_v61 = vmul.f32 %v1292_v54, %v3480_v3 }
 0x134   : > { %v891_v44 = vpop.permute.xlu0 %890  ;;  %1761 = vperm.xlu1 %2930, %v4560_v43   ;;  %v1286_v43 = vrot.slane %v1276_v11, %v3437_v56 }
 0x135   : > { %v893_v14 = vadd.f32 %v891_v44, %v882_v5 }
 0x136   : > { %v1287_v4 = vmul.f32 %v1286_v43, %v3500_v30 }
 0x137   : > { %v894_v57 = vadd.f32 %v893_v14, %v3205_v40  ;;  %v1396_v40 = vld [vmem:[#allocation2 + $0x18] sm:$0xf] }
 0x138   : > { %2931 = vset.pattern.permute.xlu1 %v4562_v22  ;;  %v1288_v53 = vadd.f32 %v1287_v4, %v1282_v41  ;;  %v1400_v35 = vrot.slane %v1396_v40, %v3441_v6  ;;  %v1406_v38 = vrot.slane %v1396_v40, %v3437_v56  ;;  %v1412_v50 = vrot.slane %v1396_v40, %v3456_v7 }
 0x139   : > { %v895_v18 = vmax.f32 %v894_v57, 0.0  ;;  %1778 = vperm.xlu1 %2931, %v3676_v24   ;;  %v4564_v57 = vmov 2   ;;  %v4565_v41 = vmov 3  }
 0x13a   : > { %v1301_v36 = vld [vmem:[#allocation2 + $0x1c] sm:$0xf]  ;;  %v1294_v5 = vadd.f32 %v1293_v61, %v1288_v53  ;;  %v1401_v44 = vmul.f32 %v1400_v35, %v4551_v10  ;;  %v1407_v14 = vmul.f32 %v1406_v38, %v3464_v47  ;;  %v1413_v10 = vmul.f32 %v1412_v50, %v4552_v34 }
 0x13b   : > { %897 = vst.msk [vmem:[#allocation2 + $0x20] sm:$0xf] %vm452_vm0, %v895_v18  ;;  %v1305_v30 = vrot.slane %v1301_v36, %v3441_v6  ;;  %v1311_v18 = vrot.slane %v1301_v36, %v3437_v56  ;;  %v1421_v43 = vld [vmem:[#allocation2 + $0x1c] sm:$0xf]  ;;  %v1418_v47 = vrot.slane %v1396_v40, %v3461_v20  ;;  %v1317_v25 = vrot.slane %v1301_v36, %v3456_v7 }
 0x13c   : > { %v1300_v3 = vadd.f32 %v1299_v32, %v1294_v5  ;;  %v1408_v9 = vadd.f32 %v1407_v14, %v1401_v44  ;;  %v1425_v4 = vrot.slane %v1421_v43, %v3441_v6  ;;  %v4566_v61 = vmov 4  }
 0x13d   : > { %2932 = vset.pattern.permute.xlu1 %v4563_v17  ;;  %v1306_v33 = vmul.f32 %v1305_v30, %v3411_v21  ;;  %v1312_v21 = vmul.f32 %v1311_v18, %v3494_v1  ;;  %v1419_v38 = vmul.f32 %v1418_v47, %v3357_v12  ;;  %v1318_v34 = vmul.f32 %v1317_v25, %v3503_v15 }
 0x13e   : > { %1795 = vperm.xlu1 %2932, %v3676_v24   ;;  %v1414_v53 = vadd.f32 %v1413_v10, %v1408_v9  ;;  %v1323_v30 = vrot.slane %v1301_v36, %v3461_v20  ;;  %v1426_v40 = vmul.f32 %v1425_v4, %v3390_v13  ;;  %v1431_v44 = vrot.slane %v1421_v43, %v3437_v56 }
 0x13f   : > { %v1307_v11 = vadd.f32 %v1306_v33, %v1300_v3  ;;  %v1437_v13 = vrot.slane %v1421_v43, %v3456_v7  ;;  %v1443_v9 = vrot.slane %v1421_v43, %v3461_v20 }
 0x140   : > { %v1420_v1 = vadd.f32 %v1419_v38, %v1414_v53  ;;  %v1324_v14 = vmul.f32 %v1323_v30, %v4558_v62  ;;  %v1432_v36 = vmul.f32 %v1431_v44, %v3377_v52 }
 0x141   : > { %v1313_v54 = vadd.f32 %v1312_v21, %v1307_v11  ;;  %v1438_v62 = vmul.f32 %v1437_v13, %v3400_v28  ;;  %v1444_v21 = vmul.f32 %v1443_v9, %v4553_v23 }
 0x142   : > { %1799 = vperm.xlu1 %2932, %v3691_v46   ;;  %v1326_v35 = vld [vmem:[#allocation2 + $0x20] sm:$0xf]  ;;  %v1427_v32 = vadd.f32 %v1426_v40, %v1420_v1 }
 0x143   : > { %v1319_v5 = vadd.f32 %v1318_v34, %v1313_v54  ;;  %v1330_v49 = vrot.slane %v1326_v35, %v3441_v6  ;;  %v1336_v33 = vrot.slane %v1326_v35, %v3437_v56  ;;  %v1446_v3 = vld [vmem:[#allocation2 + $0x20] sm:$0xf]  ;;  %v1348_v28 = vrot.slane %v1326_v35, %v3461_v20 }
 0x144   : > { %v1433_v50 = vadd.f32 %v1432_v36, %v1427_v32  ;;  %v1450_v10 = vrot.slane %v1446_v3, %v3441_v6  ;;  %v1456_v53 = vrot.slane %v1446_v3, %v3437_v56  ;;  %v1468_v44 = vrot.slane %v1446_v3, %v3461_v20 }
 0x145   : > { %v1325_v12 = vadd.f32 %v1324_v14, %v1319_v5  ;;  %v1331_v15 = vmul.f32 %v1330_v49, %v3510_v27  ;;  %v1337_v11 = vmul.f32 %v1336_v33, %v3522_v59  ;;  %v1342_v27 = vrot.slane %v1326_v35, %v3456_v7 }
 0x146   : > { %2933 = vset.pattern.permute.xlu1 %v4564_v57  ;;  %v1439_v52 = vadd.f32 %v1438_v62, %v1433_v50  ;;  %v1451_v43 = vmul.f32 %v1450_v10, %v3419_v31  ;;  %v1349_v54 = vmul.f32 %v1348_v28, %v3531_v45  ;;  %v1457_v30 = vmul.f32 %v1456_v53, %v3450_v2 }
 0x147   : > { %1815 = vperm.xlu1 %2933, %v3691_v46   ;;  %v1332_v18 = vadd.f32 %v1331_v15, %v1325_v12  ;;  %v1343_v25 = vmul.f32 %v1342_v27, %v4559_v26  ;;  %v1462_v26 = vrot.slane %v1446_v3, %v3456_v7  ;;  %v1469_v2 = vmul.f32 %v1468_v44, %v3466_v42  ;;  %v3757_v15 = vld [vmem:[%s4473_s5 + $0x20] sm:$0xff] }
 0x148   : > { %v1445_v4 = vadd.f32 %v1444_v21, %v1439_v52 }
 0x149   : > { %v1338_v47 = vadd.f32 %v1337_v11, %v1332_v18  ;;  %v1463_v49 = vmul.f32 %v1462_v26, %v4554_v58 }
 0x14a   : > { %v1452_v38 = vadd.f32 %v1451_v43, %v1445_v4 }
 0x14b   : > { %2934 = vset.pattern.permute.xlu1 %v4565_v41  ;;  %v1344_v59 = vadd.f32 %v1343_v25, %v1338_v47 }
 0x14c   : > { %1827 = vperm.xlu1 %2934, %v3676_v24   ;;  %v1458_v31 = vadd.f32 %v1457_v30, %v1452_v38 }
 0x14d   : > { %v1350_v34 = vadd.f32 %v1349_v54, %v1344_v59 }
 0x14e   : > { %v1464_v45 = vadd.f32 %v1463_v49, %v1458_v31 }
 0x150   : > { %2935 = vset.pattern.permute.xlu1 %v4566_v61  ;;  %v1470_v36 = vadd.f32 %v1469_v2, %v1464_v45  ;;  %v3782_v2 = vld [vmem:[%s4473_s5 + $0x30] sm:$0xff] }
 0x151   : > { %1843 = vperm.xlu1 %2935, %v3676_v24  }
 0x155   : > { %1847 = vperm.xlu1 %2935, %v3691_v46  }
 0x159   : > { %2936 = vset.pattern.permute.xlu1 %v4514_v63 }
 0x15a   : > { %1863 = vperm.xlu1 %2936, %v3691_v46  }
 0x15e   : > { %2937 = vset.pattern.permute.xlu1 %v4512_v37 }
 0x15f   : > { %1875 = vperm.xlu1 %2937, %v3676_v24  }
 0x163   : > { %2938 = vset.pattern.permute.xlu1 %v4510_v0 }
 0x164   : > { %1891 = vperm.xlu1 %2938, %v3676_v24  }
 0x165   : > { %v1359_v23 = vpop.permute.xlu1 %1358 }
 0x166   : > { %v1361_v35 = vadd.f32 %v1359_v23, %v1350_v34 }
 0x168   : > { %1895 = vperm.xlu1 %2938, %v3691_v46  }
 0x169   : > { %v1369_v40 = vpop.permute.xlu1 %1368 }
 0x16a   : > { %v1371_v1 = vadd.f32 %v1369_v40, %v1361_v35  ;;  %v1379_v5 = vpop.permute.xlu0 %1378 }
 0x16c   : > { %2939 = vset.pattern.permute.xlu1 %v4562_v22  ;;  %v1381_v14 = vadd.f32 %v1379_v5, %v1371_v1 }
 0x16d   : > { %1917 = vperm.xlu1 %2939, %v3632_v16  }
 0x16e   : > { %v1479_v32 = vpop.permute.xlu0 %1478 }
 0x16f   : > { %v1389_v12 = vpop.permute.xlu1 %1388  ;;  %v1481_v58 = vadd.f32 %v1479_v32, %v1470_v36 }
 0x170   : > { %v1391_v13 = vadd.f32 %v1389_v12, %v1381_v14 }
 0x171   : > { %2940 = vset.pattern.permute.xlu1 %v4563_v17 }
 0x172   : > { %v1392_v33 = vadd.f32 %v1391_v13, %v3443_v60  ;;  %v1499_v50 = vpop.permute.xlu0 %1498  ;;  %1929 = vperm.xlu1 %2940, %v3757_v15  }
 0x173   : > { %v1489_v3 = vpop.permute.xlu1 %1488 }
 0x174   : > { %v1393_v18 = vmax.f32 %v1392_v33, 0.0  ;;  %v1491_v42 = vadd.f32 %v1489_v3, %v1481_v58 }
 0x176   : > { %1395 = vst.msk [vmem:[#allocation3 + $0x8] sm:$0xff] %vm1199_vm1, %v1393_v18  ;;  %v1520_v62 = vpop.permute.xlu0 %1519  ;;  %2941 = vset.pattern.permute.xlu1 %v4564_v57  ;;  %v1501_v9 = vadd.f32 %v1499_v50, %v1491_v42 }
 0x177   : > { %1945 = vperm.xlu1 %2941, %v3757_v15   ;;  %v1509_v11 = vpop.permute.xlu1 %1508 }
 0x178   : > { %v1511_v27 = vadd.f32 %v1509_v11, %v1501_v9 }
 0x17a   : > { %v1540_v52 = vpop.permute.xlu0 %1539  ;;  %v1522_v10 = vadd.f32 %v1520_v62, %v1511_v27 }
 0x17b   : > { %1949 = vperm.xlu1 %2941, %v3632_v16   ;;  %v1530_v47 = vpop.permute.xlu1 %1529 }
 0x17c   : > { %v1532_v21 = vadd.f32 %v1530_v47, %v1522_v10 }
 0x17e   : > { %v1561_v25 = vpop.permute.xlu0 %1560  ;;  %v1542_v28 = vadd.f32 %v1540_v52, %v1532_v21 }
 0x17f   : > { %2942 = vset.pattern.permute.xlu1 %v4565_v41  ;;  %v1550_v4 = vpop.permute.xlu1 %1549 }
 0x180   : > { %v1552_v43 = vadd.f32 %v1550_v4, %v1542_v28  ;;  %1965 = vperm.xlu1 %2942, %v3632_v16  }
 0x182   : > { %v1581_v59 = vpop.permute.xlu0 %1580  ;;  %v1563_v53 = vadd.f32 %v1561_v25, %v1552_v43 }
 0x183   : > { %v1571_v54 = vpop.permute.xlu1 %1570 }
 0x184   : > { %v1573_v38 = vadd.f32 %v1571_v54, %v1563_v53  ;;  %2943 = vset.pattern.permute.xlu1 %v4566_v61 }
 0x185   : > { %1977 = vperm.xlu1 %2943, %v3757_v15  }
 0x186   : > { %v1583_v23 = vadd.f32 %v1581_v59, %v1573_v38  ;;  %v1602_v34 = vpop.permute.xlu0 %1601 }
 0x187   : > { %v1591_v30 = vpop.permute.xlu1 %1590 }
 0x188   : > { %v1593_v26 = vadd.f32 %v1591_v30, %v1583_v23  ;;  %v3845_v23 = vld [vmem:[#allocation3] sm:$0xff] }
 0x189   : > { %2944 = vset.pattern.permute.xlu1 %v4514_v63 }
 0x18a   : > { %1993 = vperm.xlu1 %2944, %v3757_v15   ;;  %v1604_v35 = vadd.f32 %v1602_v34, %v1593_v26  ;;  %v1622_v1 = vpop.permute.xlu0 %1621  ;;  %v3849_v34 = vrot.slane %v3845_v23, %v3441_v6 }
 0x18b   : > { %v1612_v31 = vpop.permute.xlu1 %1611 }
 0x18c   : > { %v1614_v40 = vadd.f32 %v1612_v31, %v1604_v35 }
 0x18e   : > { %1997 = vperm.xlu1 %2944, %v3632_v16   ;;  %v1624_v5 = vadd.f32 %v1622_v1, %v1614_v40  ;;  %v2994_v40 = vld [vmem:[%s4473_s5 + $0x8] sm:$0xff] }
 0x18f   : > { %v1632_v49 = vpop.permute.xlu1 %1631 }
 0x190   : > { %v1634_v44 = vadd.f32 %v1632_v49, %v1624_v5  ;;  %v3873_v49 = vrot.slane %v3845_v23, %v3437_v56 }
 0x192   : > { %v1635_v45 = vadd.f32 %v1634_v44, %v3443_v60  ;;  %2945 = vset.pattern.permute.xlu1 %v4512_v37  ;;  %v3789_v60 = vld [vmem:[%s4473_s5 + $0x38] sm:$0xff] }
 0x193   : > { %2013 = vperm.xlu1 %2945, %v3632_v16  }
 0x194   : > { %v1636_v14 = vmax.f32 %v1635_v45, 0.0 }
 0x196   : > { %1638 = vst.msk [vmem:[#allocation3 + $0x10] sm:$0xff] %vm1199_vm1, %v1636_v14 }
 0x197   : > { %2946 = vset.pattern.permute.xlu1 %v4510_v0  ;;  %v3902_v0 = vrot.slane %v3845_v23, %v3456_v7 }
 0x198   : > { %2025 = vperm.xlu1 %2946, %v3757_v15  }
 0x19b   : > { %v3867_v1 = vpop.permute.xlu0 %1933 }
 0x19c   : > { %2947 = vset.pattern.permute.xlu1 %v4562_v22 }
 0x19d   : > { %2045 = vperm.xlu1 %2947, %v3782_v2  }
 0x1a0   : > { %v3791_v32 = vpop.permute.xlu1 %1713 }
 0x1a1   : > { %2050 = vperm.xlu1 %2947, %v3789_v60  }
 0x1a5   : > { %v3794_v12 = vpop.permute.xlu1 %1725  ;;  %2949 = vset.pattern.permute.xlu1 %v4563_v17 }
 0x1aa   : > { %v3797_v36 = vpop.permute.xlu1 %1741 }
 0x1ab   : > { %4567 = vst [vmem:[#allocation24_spill] sm:$0xff] %v3797_v36 }
 0x1ae   : > { %v3799_v13 = vpop.permute.xlu1 %1745 }
 0x1b3   : > { %v3801_v58 = vpop.permute.xlu1 %1761 }
 0x1b8   : > { %v3803_v33 = vpop.permute.xlu1 %1778 }
 0x1b9   : > { %4568 = vst [vmem:[#allocation23_spill] sm:$0xff] %v3803_v33 }
 0x1bd   : > { %v3805_v50 = vpop.permute.xlu1 %1795 }
 0x1be   : > { %4569 = vst [vmem:[#allocation9_spill] sm:$0xff] %v3805_v50 }
 0x1c1   : > { %v3807_v3 = vpop.permute.xlu1 %1799 }
 0x1c6   : > { %v3809_v18 = vpop.permute.xlu1 %1815 }
 0x1cb   : > { %v3811_v42 = vpop.permute.xlu1 %1827 }
 0x1cc   : > { %4570 = vst [vmem:[#allocation21_spill] sm:$0xff] %v3811_v42 }
 0x1d0   : > { %v3813_v62 = vpop.permute.xlu1 %1843 }
 0x1d1   : > { %4571 = vst [vmem:[#allocation22_spill] sm:$0xff] %v3813_v62 }
 0x1d4   : > { %v3815_v9 = vpop.permute.xlu1 %1847 }
 0x1d9   : > { %v3817_v11 = vpop.permute.xlu1 %1863 }
 0x1de   : > { %v3819_v27 = vpop.permute.xlu1 %1875 }
 0x1df   : > { %4572 = vst [vmem:[#allocation19_spill] sm:$0xff] %v3819_v27 }
 0x1e3   : > { %v3821_v52 = vpop.permute.xlu1 %1891 }
 0x1e4   : > { %4573 = vst [vmem:[#allocation17_spill] sm:$0xff] %v3821_v52 }
 0x1e7   : > { %v3823_v10 = vpop.permute.xlu1 %1895 }
 0x1ec   : > { %v3825_v47 = vpop.permute.xlu1 %1917 }
 0x1f1   : > { %v3827_v21 = vpop.permute.xlu1 %1929 }
 0x1f2   : > { %4574 = vst [vmem:[#allocation7_spill] sm:$0xff] %v3827_v21 }
 0x1f6   : > { %v3829_v25 = vpop.permute.xlu1 %1945 }
 0x1f7   : > { %4575 = vst [vmem:[#allocation20_spill] sm:$0xff] %v3829_v25 }
 0x1fa   : > { %v3831_v28 = vpop.permute.xlu1 %1949 }
 0x1ff   : > { %v3833_v4 = vpop.permute.xlu1 %1965 }
 0x204   : > { %v3835_v43 = vpop.permute.xlu1 %1977 }
 0x205   : > { %4576 = vst [vmem:[#allocation14_spill] sm:$0xff] %v3835_v43 }
 0x209   : > { %v3837_v59 = vpop.permute.xlu1 %1993 }
 0x20a   : > { %4577 = vst [vmem:[#allocation18_spill] sm:$0xff] %v3837_v59 }
 0x20d   : > { %v3839_v53 = vpop.permute.xlu1 %1997 }
 0x20e   : > { %4578 = vst [vmem:[#allocation25_spill] sm:$0xff] %v3839_v53 }
 0x212   : > { %v3841_v54 = vpop.permute.xlu1 %2013 }
 0x213   : > { %4579 = vst [vmem:[#allocation8_spill] sm:$0xff] %v3841_v54 }
 0x217   : > { %v3843_v38 = vpop.permute.xlu1 %2025 }
 0x218   : > { %4580 = vst [vmem:[#allocation13_spill] sm:$0xff] %v3843_v38 }
 0x21c   : > { %v2046_v30 = vpop.permute.xlu1 %2045 }
 0x21d   : > { %v2053_v26 = vmul.f32 %v2046_v30, %v3849_v34 }
 0x21f   : > { %2057 = vrot.lane.b32.xlu0 %v2053_v26, %s3008_s13 }
 0x220   : > { %v2051_v35 = vpop.permute.xlu1 %2050 }
 0x221   : > { %v2054_v31 = vmul.f32 %v2051_v35, %v3849_v34  ;;  %v3888_v35 = vld [vmem:[%s4473_s5] sm:$0xff] }
 0x223   : > { %2059 = vrot.lane.b32.xlu1 %v2054_v31, %s3008_s13  ;;  %2066 = vperm.xlu0 %2922, %v3782_v2  }
 0x227   : > { %2070 = vperm.xlu1 %2949, %v3789_v60   ;;  %2948 = vset.pattern.permute.xlu0 %v4564_v57 }
 0x228   : > { %1681 = vperm.xlu0 %2948, %v2994_v40  }
 0x22b   : > { %2950 = vset.pattern.permute.xlu1 %v4564_v57 }
 0x22c   : > { %1811 = vperm.xlu0 %2948, %v3676_v24  }
 0x230   : > { %2090 = vperm.xlu0 %2948, %v3789_v60  }
 0x234   : > { %2951 = vset.pattern.permute.xlu0 %v4565_v41 }
 0x235   : > { %1831 = vperm.xlu0 %2951, %v3691_v46  }
 0x239   : > { %1961 = vperm.xlu0 %2951, %v3757_v15  }
 0x291   : > { %v3869_v5 = vpop.permute.xlu0 %2057 }
 0x292   : > { %4581 = vst [vmem:[#allocation10_spill] sm:$0xff] %v3869_v5 }
 0x295   : > { %v3875_v44 = vpop.permute.xlu1 %2059 }
 0x296   : > { %4582 = vst [vmem:[#allocation12_spill] sm:$0xff] %v3875_v44 }
 0x2a2   : > { %v2067_v45 = vpop.permute.xlu0 %2066 }
 0x2a3   : > { %v2073_v14 = vmul.f32 %v2067_v45, %v3873_v49 }
 0x2a5   : > { %2077 = vrot.lane.b32.xlu1 %v2073_v14, %s3008_s13 }
 0x2a6   : > { %v2071_v30 = vpop.permute.xlu1 %2070 }
 0x2a7   : > { %v2074_v26 = vmul.f32 %v2071_v30, %v3873_v49  ;;  %v3892_v31 = vpop.permute.xlu0 %1681 }
 0x2a9   : > { %2079 = vrot.lane.b32.xlu0 %v2074_v26, %s3008_s13  ;;  %2086 = vperm.xlu1 %2950, %v3782_v2  }
 0x2ab   : > { %v3894_v45 = vpop.permute.xlu0 %1811 }
 0x2ac   : > { %4583 = vst [vmem:[#allocation16_spill] sm:$0xff] %v3894_v45  ;;  %v3979_v45 = vsub.s32 6, %v4547_v55 }
 0x2ad   : > { %2106 = vperm.xlu0 %2951, %v3782_v2   ;;  %2953 = vset.pattern.permute.xlu1 %v4565_v41 }
 0x2af   : > { %v2091_v14 = vpop.permute.xlu0 %2090 }
 0x2b0   : > { %v2094_v5 = vmul.f32 %v2091_v14, %v3902_v0 }
 0x2b1   : > { %2952 = vset.pattern.permute.xlu0 %v4566_v61 }
 0x2b2   : > { %1709 = vperm.xlu0 %2952, %v3888_v35  }
 0x2b4   : > { %v3896_v30 = vpop.permute.xlu0 %1831 }
 0x2b6   : > { %1981 = vperm.xlu0 %2952, %v3632_v16  }
 0x2b8   : > { %v3905_v44 = vpop.permute.xlu0 %1961 }
 0x2b9   : > { %4585 = vst [vmem:[#allocation15_spill] sm:$0xff] %v3905_v44  ;;  %v3928_v44 = vsub.s32 4, %v4547_v55 }
 0x317   : > { %v3898_v26 = vpop.permute.xlu1 %2077 }
 0x318   : > { %4584 = vst [vmem:[#allocation11_spill] sm:$0xff] %v3898_v26  ;;  %v3914_v26 = vrot.slane %v3845_v23, %v3461_v20 }
 0x31b   : > { %v3909_v38 = vpop.permute.xlu0 %2079 }
 0x31c   : > { %4586 = vst [vmem:[#allocation6_spill] sm:$0xff] %v3909_v38 }
 0x328   : > { %v2087_v37 = vpop.permute.xlu1 %2086 }
 0x329   : > { %v2093_v63 = vmul.f32 %v2087_v37, %v3902_v0 }
 0x32b   : > { %2097 = vrot.lane.b32.xlu1 %v2093_v63, %s3008_s13  ;;  %v4587_v63 = vmov 5  }
 0x32c   : > { %v2107_v59 = vpop.permute.xlu0 %2106 }
 0x32d   : > { %v2113_v43 = vmul.f32 %v2107_v59, %v3914_v26 }
 0x32f   : > { %2099 = vrot.lane.b32.xlu1 %v2094_v5, %s3008_s13 }
 0x333   : > { %2110 = vperm.xlu1 %2953, %v3789_v60  }
 0x337   : > { %2117 = vrot.lane.b32.xlu1 %v2113_v43, %s3008_s13  ;;  %v3935_v43 = vrot.slane %v3845_v23, %v3928_v44 }
 0x338   : > { %2954 = vset.pattern.permute.xlu1 %v4566_v61 }
 0x33b   : > { %2126 = vperm.xlu1 %2954, %v3782_v2  }
 0x33f   : > { %2957 = vset.pattern.permute.xlu1 %v4587_v63 }
 0x39d   : > { %v3922_v37 = vpop.permute.xlu1 %2097 }
 0x39e   : > { %4588 = vst [vmem:[#allocation5_spill] sm:$0xff] %v3922_v37 }
 0x3a1   : > { %v3924_v5 = vpop.permute.xlu1 %2099 }
 0x3a2   : > { %4589 = vst [vmem:[#allocation26_spill] sm:$0xff] %v3924_v5 }
 0x3b2   : > { %v2111_v14 = vpop.permute.xlu1 %2110 }
 0x3b3   : > { %v2114_v38 = vmul.f32 %v2111_v14, %v3914_v26  ;;  %v3946_v14 = vpop.permute.xlu0 %1709 }
 0x3b5   : > { %2119 = vrot.lane.b32.xlu0 %v2114_v38, %s3008_s13  ;;  %v4591_v38 = vmov 6  }
 0x3b6   : > { %v3931_v59 = vpop.permute.xlu1 %2117 }
 0x3b7   : > { %4590 = vst [vmem:[#allocation27_spill] sm:$0xff] %v3931_v59  ;;  %v3948_v5 = vpop.permute.xlu0 %1981 }
 0x3b9   : > { %2130 = vperm.xlu0 %2952, %v3789_v60  }
 0x3ba   : > { %v2127_v25 = vpop.permute.xlu1 %2126 }
 0x3bb   : > { %v2133_v37 = vmul.f32 %v2127_v25, %v3935_v43 }
 0x3bd   : > { %2955 = vset.pattern.permute.xlu0 %v4587_v63  ;;  %2137 = vrot.lane.b32.xlu1 %v2133_v37, %s3008_s13 }
 0x3be   : > { %1729 = vperm.xlu0 %2955, %v2994_v40   ;;  %v3958_v40 = vsub.s32 5, %v4547_v55 }
 0x3c0   : > { %v3965_v52 = vrot.slane %v3845_v23, %v3958_v40 }
 0x3c2   : > { %1859 = vperm.xlu0 %2955, %v3676_v24  }
 0x3c6   : > { %2146 = vperm.xlu0 %2955, %v3782_v2  }
 0x3ca   : > { %2956 = vset.pattern.permute.xlu0 %v4591_v38 }
 0x3cb   : > { %1879 = vperm.xlu0 %2956, %v3691_v46  }
 0x3cf   : > { %2009 = vperm.xlu0 %2956, %v3757_v15  }
 0x427   : > { %v3950_v25 = vpop.permute.xlu0 %2119 }
 0x428   : > { %4592 = vst [vmem:[#allocation28_spill] sm:$0xff] %v3950_v25 }
 0x42f   : > { %v3971_v27 = vpop.permute.xlu1 %2137 }
 0x430   : > { %4595 = vst [vmem:[#allocation30_spill] sm:$0xff] %v3971_v27 }
 0x438   : > { %v2131_v59 = vpop.permute.xlu0 %2130 }
 0x439   : > { %v2134_v37 = vmul.f32 %v2131_v59, %v3935_v43 }
 0x43b   : > { %2139 = vrot.lane.b32.xlu1 %v2134_v37, %s3008_s13  ;;  %v4594_v37 = vmov 7  }
 0x43d   : > { %v3954_v24 = vpop.permute.xlu0 %1729 }
 0x43f   : > { %2150 = vperm.xlu1 %2957, %v3789_v60  }
 0x441   : > { %v3960_v21 = vpop.permute.xlu0 %1859 }
 0x442   : > { %4593 = vst [vmem:[#allocation29_spill] sm:$0xff] %v3960_v21 }
 0x443   : > { %2958 = vset.pattern.permute.xlu1 %v4591_v38 }
 0x445   : > { %v2147_v25 = vpop.permute.xlu0 %2146 }
 0x446   : > { %v2153_v59 = vmul.f32 %v2147_v25, %v3965_v52 }
 0x448   : > { %2157 = vrot.lane.b32.xlu1 %v2153_v59, %s3008_s13  ;;  %v3986_v59 = vrot.slane %v3845_v23, %v3979_v45 }
 0x44a   : > { %v4050_v27 = vpop.permute.xlu0 %1879 }
 0x44c   : > { %2166 = vperm.xlu1 %2958, %v3782_v2  }
 0x44e   : > { %v4052_v50 = vpop.permute.xlu0 %2009 }
 0x44f   : > { %4600 = vst [vmem:[#allocation35_spill] sm:$0xff] %v4052_v50 }
 0x450   : > { %2960 = vset.pattern.permute.xlu1 %v4594_v37 }
 0x4ad   : > { %v3973_v62 = vpop.permute.xlu1 %2139 }
 0x4ae   : > { %4596 = vst [vmem:[#allocation31_spill] sm:$0xff] %v3973_v62 }
 0x4be   : > { %v2151_v21 = vpop.permute.xlu1 %2150 }
 0x4bf   : > { %v2154_v42 = vmul.f32 %v2151_v21, %v3965_v52 }
 0x4c1   : > { %2159 = vrot.lane.b32.xlu0 %v2154_v42, %s3008_s13  ;;  %v3996_v42 = vld [vmem:[%s4473_s5 + $0x48] sm:$0xff] }
 0x4c2   : > { %v3981_v25 = vpop.permute.xlu1 %2157 }
 0x4c3   : > { %4597 = vst [vmem:[#allocation32_spill] sm:$0xff] %v3981_v25  ;;  %v4033_v25 = vld [vmem:[%s4473_s5 + $0x68] sm:$0xff] }
 0x4c4   : > { %4599 = vst [vmem:[#allocation34_spill] sm:$0xff] %v4033_v25 }
 0x4c5   : > { %2170 = vperm.xlu0 %2956, %v3789_v60  }
 0x4c9   : > { %2959 = vset.pattern.permute.xlu0 %v4562_v22 }
 0x4ca   : > { %1644 = vperm.xlu0 %2959, %v3888_v35  }
 0x4cb   : > { %v2167_v62 = vpop.permute.xlu1 %2166 }
 0x4cc   : > { %v2173_v21 = vmul.f32 %v2167_v62, %v3986_v59  ;;  %v4004_v62 = vld [vmem:[%s4473_s5 + $0x50] sm:$0xff] }
 0x4ce   : > { %1783 = vperm.xlu0 %2959, %v3691_v46   ;;  %2177 = vrot.lane.b32.xlu1 %v2173_v21, %s3008_s13  ;;  %v4013_v46 = vld [vmem:[%s4473_s5 + $0x58] sm:$0xff]  ;;  %v4026_v21 = vld [vmem:[%s4473_s5 + $0x40] sm:$0xff] }
 0x4d2   : > { %1912 = vperm.xlu0 %2959, %v3757_v15   ;;  %v4020_v15 = vld [vmem:[%s4473_s5 + $0x60] sm:$0xff] }
 0x4d3   : > { %4598 = vst [vmem:[#allocation33_spill] sm:$0xff] %v4020_v15 }
 0x4d6   : > { %2215 = vperm.xlu0 %2959, %v3996_v42  }
 0x4da   : > { %2965 = vset.pattern.permute.xlu0 %v4565_v41 }
 0x4db   : > { %2275 = vperm.xlu0 %2965, %v3996_v42  }
 0x4df   : > { %2436 = vperm.xlu0 %2965, %v4004_v62  }
 0x4e3   : > { %2973 = vset.pattern.permute.xlu0 %v4591_v38 }
 0x4e4   : > { %2335 = vperm.xlu0 %2973, %v3996_v42  }
 0x4e8   : > { %2496 = vperm.xlu0 %2973, %v4004_v62  }
 0x4ec   : > { %2977 = vset.pattern.permute.xlu0 %v4563_v17 }
 0x4ed   : > { %2400 = vperm.xlu0 %2977, %v4013_v46  }
 0x4f1   : > { %2561 = vperm.xlu0 %2977, %v4020_v15  }
 0x4f5   : > { %2981 = vset.pattern.permute.xlu0 %v4564_v57 }
 0x4f6   : > { %2251 = vperm.xlu0 %2981, %v4026_v21  }
 0x4fa   : > { %2585 = vperm.xlu0 %2981, %v4033_v25  }
 0x4fe   : > { %2984 = vset.pattern.permute.xlu0 %v4566_v61 }
 0x4ff   : > { %2460 = vperm.xlu0 %2984, %v4013_v46  }
 0x503   : > { %2621 = vperm.xlu0 %2984, %v4020_v15  }
 0x507   : > { %2986 = vset.pattern.permute.xlu0 %v4587_v63 }
 0x508   : > { %2311 = vperm.xlu0 %2986, %v4026_v21  }
 0x50c   : > { %2645 = vperm.xlu0 %2986, %v4033_v25  }
 0x510   : > { %2989 = vset.pattern.permute.xlu0 %v4594_v37 }
 0x511   : > { %1757 = vperm.xlu0 %2989, %v3888_v35   ;;  %v1657_v35 = vmul.f32 %v3849_v34, %v3605_v48 }
 0x515   : > { %2029 = vperm.xlu0 %2989, %v3632_v16   ;;  %v1673_v16 = vmul.f32 %v3873_v49, %v3617_v19  ;;  %v1721_v19 = vmul.f32 %v3935_v43, %v3791_v32  ;;  %v1753_v32 = vmul.f32 %v3986_v59, %v3799_v13 }
 0x517   : > { %v1675_v33 = vadd.f32 %v1673_v16, %v1657_v35 }
 0x519   : > { %2186 = vperm.xlu0 %2989, %v3782_v2  }
 0x51d   : > { %2520 = vperm.xlu0 %2989, %v4013_v46  }
 0x521   : > { %2681 = vperm.xlu0 %2989, %v4020_v15   ;;  %v1689_v15 = vmul.f32 %v3902_v0, %v3892_v31  ;;  %v1737_v31 = vmul.f32 %v3965_v52, %v3954_v24 }
 0x523   : > { %v1691_v53 = vadd.f32 %v1689_v15, %v1675_v33  ;;  %v4078_v15 = vsub.s32 7, %v4547_v55 }
 0x525   : > { %2991 = vset.pattern.permute.xlu0 %v4562_v22  ;;  %v4088_v24 = vrot.slane %v3845_v23, %v4078_v15 }
 0x526   : > { %2375 = vperm.xlu0 %2991, %v4004_v62  }
 0x527   : > { %v1769_v35 = vmul.f32 %v4088_v24, %v3801_v58 }
 0x533   : > { %v4054_v25 = vpop.permute.xlu0 %2159 }
 0x534   : > { %4601 = vst [vmem:[#allocation36_spill] sm:$0xff] %v4054_v25  ;;  %v1705_v25 = vmul.f32 %v3914_v26, %v3652_v8 }
 0x536   : > { %v1707_v48 = vadd.f32 %v1705_v25, %v1691_v53 }
 0x538   : > { %v1723_v33 = vadd.f32 %v1721_v19, %v1707_v48 }
 0x53a   : > { %v1739_v8 = vadd.f32 %v1737_v31, %v1723_v33 }
 0x53c   : > { %v1755_v55 = vadd.f32 %v1753_v32, %v1739_v8 }
 0x544   : > { %v2171_v2 = vpop.permute.xlu0 %2170 }
 0x545   : > { %v2174_v54 = vmul.f32 %v2171_v2, %v3986_v59  ;;  %v1771_v2 = vadd.f32 %v1769_v35, %v1755_v55 }
 0x547   : > { %2179 = vrot.lane.b32.xlu1 %v2174_v54, %s3008_s13 }
 0x549   : > { %v4064_v36 = vpop.permute.xlu0 %1644 }
 0x54b   : > { %2190 = vperm.xlu1 %2960, %v3789_v60   ;;  %v1772_v60 = vld [vmem:[#allocation3 + $0x8] sm:$0xff] }
 0x54c   : > { %v4091_v25 = vrot.slane %v1772_v60, %v3441_v6  ;;  %v4100_v48 = vrot.slane %v1772_v60, %v3437_v56  ;;  %v4118_v32 = vrot.slane %v1772_v60, %v3461_v20 }
 0x54d   : > { %v1784_v50 = vpop.permute.xlu0 %1783 }
 0x54e   : > { %v1791_v16 = vmul.f32 %v4091_v25, %v1784_v50  ;;  %v1807_v58 = vmul.f32 %v4100_v48, %v3807_v3  ;;  %v4109_v50 = vrot.slane %v1772_v60, %v3456_v7  ;;  %v1839_v3 = vmul.f32 %v4118_v32, %v3896_v30 }
 0x54f   : > { %2961 = vset.pattern.permute.xlu1 %v4562_v22 }
 0x550   : > { %2210 = vperm.xlu1 %2961, %v4026_v21   ;;  %v1793_v19 = vadd.f32 %v1791_v16, %v1771_v2  ;;  %v1823_v33 = vmul.f32 %v4109_v50, %v3809_v18  ;;  %v4127_v16 = vrot.slane %v1772_v60, %v3928_v44 }
 0x551   : > { %v4075_v54 = vpop.permute.xlu0 %1912 }
 0x552   : > { %v1809_v31 = vadd.f32 %v1807_v58, %v1793_v19  ;;  %v1855_v2 = vmul.f32 %v4127_v16, %v3815_v9  ;;  %v4135_v58 = vrot.slane %v1772_v60, %v3958_v40 }
 0x554   : > { %2962 = vset.pattern.permute.xlu1 %v4563_v17  ;;  %v1825_v55 = vadd.f32 %v1823_v33, %v1809_v31  ;;  %v1871_v31 = vmul.f32 %v4135_v58, %v3817_v11 }
 0x555   : > { %2231 = vperm.xlu1 %2962, %v4026_v21   ;;  %v4084_v53 = vpop.permute.xlu0 %2215 }
 0x556   : > { %v1841_v18 = vadd.f32 %v1839_v3, %v1825_v55  ;;  %v4143_v55 = vrot.slane %v1772_v60, %v3979_v45 }
 0x558   : > { %v1857_v30 = vadd.f32 %v1855_v2, %v1841_v18  ;;  %v1887_v9 = vmul.f32 %v4143_v55, %v4050_v27  ;;  %v1906_v2 = vld [vmem:[#allocation3 + $0x10] sm:$0xff]  ;;  %v1656_v27 = vmul.f32 %v3849_v34, %v4064_v36  ;;  %v1688_v36 = vmul.f32 %v3902_v0, %v3637_v29 }
 0x559   : > { %2235 = vperm.xlu1 %2962, %v3996_v42   ;;  %v4192_v29 = vrot.slane %v1906_v2, %v3461_v20 }
 0x55a   : > { %v4097_v13 = vpop.permute.xlu0 %2275  ;;  %v1873_v3 = vadd.f32 %v1871_v31, %v1857_v30  ;;  %v4158_v30 = vrot.slane %v1906_v2, %v3441_v6 }
 0x55c   : > { %v1889_v18 = vadd.f32 %v1887_v9, %v1873_v3  ;;  %v4166_v3 = vrot.slane %v1906_v2, %v3437_v56  ;;  %v1925_v9 = vmul.f32 %v4158_v30, %v3825_v47  ;;  %v4181_v56 = vrot.slane %v1906_v2, %v3456_v7 }
 0x55d   : > { %2963 = vset.pattern.permute.xlu1 %v4564_v57 }
 0x55e   : > { %2255 = vperm.xlu1 %2963, %v3996_v42   ;;  %v4104_v23 = vpop.permute.xlu0 %2436 }
 0x55f   : > { %4602 = vst [vmem:[#allocation37_spill] sm:$0xff] %v4104_v23 }
 0x562   : > { %2964 = vset.pattern.permute.xlu1 %v4565_v41 }
 0x563   : > { %2271 = vperm.xlu1 %2964, %v4026_v21   ;;  %v4115_v8 = vpop.permute.xlu0 %2335 }
 0x567   : > { %2966 = vset.pattern.permute.xlu1 %v4566_v61  ;;  %v4123_v35 = vpop.permute.xlu0 %2496 }
 0x568   : > { %4603 = vst [vmem:[#allocation38_spill] sm:$0xff] %v4123_v35  ;;  %2291 = vperm.xlu1 %2966, %v4026_v21   ;;  %v4149_v35 = vrot.slane %v1772_v60, %v4078_v15 }
 0x56c   : > { %2295 = vperm.xlu1 %2966, %v3996_v42   ;;  %v4132_v19 = vpop.permute.xlu0 %2400 }
 0x56d   : > { %4604 = vst [vmem:[#allocation39_spill] sm:$0xff] %v4132_v19 }
 0x570   : > { %2967 = vset.pattern.permute.xlu1 %v4587_v63  ;;  %v4140_v33 = vpop.permute.xlu0 %2561 }
 0x571   : > { %4605 = vst [vmem:[#allocation40_spill] sm:$0xff] %v4140_v33  ;;  %2315 = vperm.xlu1 %2967, %v3996_v42   ;;  %v1903_v33 = vmul.f32 %v4149_v35, %v3823_v10  ;;  %v1672_v10 = vmul.f32 %v3873_v49, %v3655_v39 }
 0x573   : > { %v1905_v31 = vadd.f32 %v1903_v33, %v1889_v18  ;;  %v1674_v6 = vadd.f32 %v1672_v10, %v1656_v27  ;;  %v1941_v33 = vmul.f32 %v4166_v3, %v3867_v1  ;;  %v1957_v27 = vmul.f32 %v4181_v56, %v3831_v28 }
 0x575   : > { %2968 = vset.pattern.permute.xlu1 %v4591_v38  ;;  %v4152_v11 = vpop.permute.xlu0 %2251  ;;  %v1927_v23 = vadd.f32 %v1925_v9, %v1905_v31  ;;  %v1690_v47 = vadd.f32 %v1688_v36, %v1674_v6  ;;  %v1736_v9 = vmul.f32 %v3965_v52, %v3794_v12  ;;  %v4606_v36 = vld [vmem:[#allocation24_spill] sm:$0xff] }
 0x576   : > { %2331 = vperm.xlu1 %2968, %v4026_v21  }
 0x577   : > { %v1943_v18 = vadd.f32 %v1941_v33, %v1927_v23  ;;  %v1720_v23 = vmul.f32 %v3935_v43, %v3946_v14  ;;  %v4212_v14 = vrot.slane %v1906_v2, %v3958_v40  ;;  %v1752_v33 = vmul.f32 %v3986_v59, %v4606_v36 }
 0x579   : > { %v4162_v60 = vpop.permute.xlu0 %2585  ;;  %v1959_v7 = vadd.f32 %v1957_v27, %v1943_v18 }
 0x57a   : > { %2969 = vset.pattern.permute.xlu1 %v4594_v37 }
 0x57b   : > { %2351 = vperm.xlu1 %2969, %v4026_v21   ;;  %v1704_v21 = vmul.f32 %v3914_v26, %v3644_v51  ;;  %v4202_v51 = vrot.slane %v1906_v2, %v3928_v44 }
 0x57d   : > { %v1706_v1 = vadd.f32 %v1704_v21, %v1690_v47  ;;  %v4607_v47 = vld [vmem:[#allocation25_spill] sm:$0xff] }
 0x57e   : > { %v4173_v19 = vpop.permute.xlu0 %2460  ;;  %v2005_v12 = vmul.f32 %v4212_v14, %v4607_v47 }
 0x57f   : > { %2355 = vperm.xlu1 %2969, %v3996_v42   ;;  %v1973_v42 = vmul.f32 %v4192_v29, %v3833_v4  ;;  %v1722_v28 = vadd.f32 %v1720_v23, %v1706_v1  ;;  %v1989_v4 = vmul.f32 %v4202_v51, %v3948_v5  ;;  %v4221_v5 = vrot.slane %v1906_v2, %v3979_v45  ;;  %v4608_v1 = vld [vmem:[#allocation23_spill] sm:$0xff] }
 0x581   : > { %v1975_v20 = vadd.f32 %v1973_v42, %v1959_v7  ;;  %v1738_v6 = vadd.f32 %v1736_v9, %v1722_v28  ;;  %v1790_v7 = vmul.f32 %v4091_v25, %v4608_v1  ;;  %v4609_v42 = vld [vmem:[#allocation8_spill] sm:$0xff]  ;;  %v4230_v28 = vrot.slane %v1906_v2, %v4078_v15  ;;  %v4612_v15 = vld [vmem:[#allocation21_spill] sm:$0xff] }
 0x582   : > { %v4183_v39 = vpop.permute.xlu0 %2621  ;;  %v2021_v23 = vmul.f32 %v4221_v5, %v4609_v42  ;;  %v1838_v2 = vmul.f32 %v4118_v32, %v4612_v15  ;;  %v4618_v15 = vld [vmem:[#allocation34_spill] sm:$0xff] }
 0x583   : > { %2970 = vset.pattern.permute.xlu1 %v4562_v22  ;;  %v1991_v44 = vadd.f32 %v1989_v4, %v1975_v20  ;;  %v1754_v21 = vadd.f32 %v1752_v33, %v1738_v6  ;;  %v4610_v4 = vld [vmem:[#allocation9_spill] sm:$0xff]  ;;  %v4611_v33 = vld [vmem:[#allocation16_spill] sm:$0xff] }
 0x584   : > { %2380 = vperm.xlu1 %2970, %v4013_v46   ;;  %v1806_v45 = vmul.f32 %v4100_v48, %v4610_v4  ;;  %v1822_v47 = vmul.f32 %v4109_v50, %v4611_v33 }
 0x585   : > { %v2007_v27 = vadd.f32 %v2005_v12, %v1991_v44 }
 0x587   : > { %v4198_v31 = vpop.permute.xlu0 %2311  ;;  %v2023_v36 = vadd.f32 %v2021_v23, %v2007_v27 }
 0x588   : > { %2971 = vset.pattern.permute.xlu1 %v4563_v17 }
 0x589   : > { %2396 = vperm.xlu1 %2971, %v4004_v62  }
 0x58b   : > { %v4209_v10 = vpop.permute.xlu0 %2645 }
 0x58d   : > { %2972 = vset.pattern.permute.xlu1 %v4564_v57 }
 0x58e   : > { %2416 = vperm.xlu1 %2972, %v4004_v62  }
 0x590   : > { %v1758_v18 = vpop.permute.xlu0 %1757 }
 0x591   : > { %v1768_v40 = vmul.f32 %v4088_v24, %v1758_v18 }
 0x592   : > { %2420 = vperm.xlu1 %2972, %v4013_v46  }
 0x593   : > { %v1770_v20 = vadd.f32 %v1768_v40, %v1754_v21  ;;  %v4613_v40 = vld [vmem:[#allocation22_spill] sm:$0xff] }
 0x594   : > { %v2030_v9 = vpop.permute.xlu0 %2029  ;;  %v1854_v1 = vmul.f32 %v4127_v16, %v4613_v40 }
 0x595   : > { %v1792_v6 = vadd.f32 %v1790_v7, %v1770_v20  ;;  %v2037_v44 = vmul.f32 %v4230_v28, %v2030_v9  ;;  %v4614_v7 = vld [vmem:[#allocation29_spill] sm:$0xff]  ;;  %v4615_v20 = vld [vmem:[#allocation19_spill] sm:$0xff] }
 0x596   : > { %2974 = vset.pattern.permute.xlu1 %v4565_v41  ;;  %v1870_v42 = vmul.f32 %v4135_v58, %v4614_v7  ;;  %v1886_v9 = vmul.f32 %v4143_v55, %v4615_v20 }
 0x597   : > { %v1808_v12 = vadd.f32 %v1806_v45, %v1792_v6  ;;  %v4238_v18 = vadd.f32 %v2037_v44, %v2023_v36  ;;  %2440 = vperm.xlu1 %2974, %v4013_v46   ;;  %v4616_v45 = vld [vmem:[#allocation17_spill] sm:$0xff]  ;;  %v1924_v44 = vmul.f32 %v4158_v30, %v4075_v54  ;;  %v4270_v54 = vpop.permute.xlu1 %2177 }
 0x598   : > { %v1902_v6 = vmul.f32 %v4149_v35, %v4616_v45 }
 0x599   : > { %v1824_v21 = vadd.f32 %v1822_v47, %v1808_v12  ;;  %v4617_v12 = vld [vmem:[#allocation33_spill] sm:$0xff] }
 0x59b   : > { %v1840_v27 = vadd.f32 %v1838_v2, %v1824_v21  ;;  %2975 = vset.pattern.permute.xlu1 %v4566_v61 }
 0x59c   : > { %2456 = vperm.xlu1 %2975, %v4004_v62  }
 0x59d   : > { %v1856_v23 = vadd.f32 %v1854_v1, %v1840_v27  ;;  %v2187_v1 = vpop.permute.xlu0 %2186 }
 0x59f   : > { %v1872_v4 = vadd.f32 %v1870_v42, %v1856_v23 }
 0x5a0   : > { %2976 = vset.pattern.permute.xlu1 %v4587_v63 }
 0x5a1   : > { %v1888_v36 = vadd.f32 %v1886_v9, %v1872_v4  ;;  %2476 = vperm.xlu1 %2976, %v4004_v62   ;;  %v2258_v9 = vmul.f32 %v4152_v11, %v4109_v50  ;;  %v2318_v11 = vmul.f32 %v4198_v31, %v4135_v58 }
 0x5a3   : > { %v1904_v33 = vadd.f32 %v1902_v6, %v1888_v36  ;;  %v2521_v6 = vpop.permute.xlu0 %2520 }
 0x5a5   : > { %v4257_v47 = vadd.f32 %v1924_v44, %v1904_v33  ;;  %2480 = vperm.xlu1 %2976, %v4013_v46  }
 0x5a9   : > { %2978 = vset.pattern.permute.xlu1 %v4591_v38 }
 0x5aa   : > { %2500 = vperm.xlu1 %2978, %v4013_v46  }
 0x5ae   : > { %2979 = vset.pattern.permute.xlu1 %v4594_v37 }
 0x5af   : > { %2516 = vperm.xlu1 %2979, %v4004_v62  }
 0x5b3   : > { %2980 = vset.pattern.permute.xlu1 %v4562_v22 }
 0x5b4   : > { %2540 = vperm.xlu1 %2980, %v4617_v12  }
 0x5b8   : > { %2545 = vperm.xlu1 %2980, %v4618_v15  }
 0x5b9   : > { %v4273_v46 = vpop.permute.xlu1 %2179 }
 0x5bc   : > { %2982 = vset.pattern.permute.xlu1 %v4563_v17  ;;  %v2219_v17 = vmul.f32 %v4084_v53, %v4091_v25 }
 0x5bd   : > { %2565 = vperm.xlu1 %2982, %v4618_v15  }
 0x5c1   : > { %2983 = vset.pattern.permute.xlu1 %v4564_v57 }
 0x5c2   : > { %2581 = vperm.xlu1 %2983, %v4617_v12  }
 0x5c6   : > { %2985 = vset.pattern.permute.xlu1 %v4565_v41 }
 0x5c7   : > { %2601 = vperm.xlu1 %2985, %v4617_v12  }
 0x5ca   : > { %v2191_v62 = vpop.permute.xlu1 %2190 }
 0x5cb   : > { %v2194_v2 = vmul.f32 %v2191_v62, %v4088_v24  ;;  %2605 = vperm.xlu1 %2985, %v4618_v15  }
 0x5cd   : > { %2199 = vrot.lane.b32.xlu0 %v2194_v2, %s3008_s13 }
 0x5cf   : > { %2987 = vset.pattern.permute.xlu1 %v4566_v61  ;;  %v2211_v57 = vpop.permute.xlu1 %2210 }
 0x5d0   : > { %2625 = vperm.xlu1 %2987, %v4618_v15   ;;  %v2218_v42 = vmul.f32 %v2211_v57, %v4091_v25 }
 0x5d1   : > { %2224 = vrot.lane.b32.xlu0 %v2219_v17, %s3008_s13 }
 0x5d4   : > { %2988 = vset.pattern.permute.xlu1 %v4587_v63  ;;  %v2232_v41 = vpop.permute.xlu1 %2231  ;;  %v2279_v63 = vmul.f32 %v4097_v13, %v4118_v32 }
 0x5d5   : > { %2641 = vperm.xlu1 %2988, %v4617_v12  }
 0x5d8   : > { %v2236_v21 = vpop.permute.xlu1 %2235 }
 0x5d9   : > { %v2239_v40 = vmul.f32 %v2236_v21, %v4100_v48  ;;  %2990 = vset.pattern.permute.xlu1 %v4591_v38  ;;  %v2193_v38 = vmul.f32 %v2187_v1, %v4088_v24 }
 0x5da   : > { %2661 = vperm.xlu1 %2990, %v4617_v12  }
 0x5db   : > { %2244 = vrot.lane.b32.xlu0 %v2239_v40, %s3008_s13 }
 0x5dd   : > { %v2256_v61 = vpop.permute.xlu1 %2255 }
 0x5de   : > { %v2259_v53 = vmul.f32 %v2256_v61, %v4109_v50  ;;  %2665 = vperm.xlu1 %2990, %v4618_v15  }
 0x5e0   : > { %2264 = vrot.lane.b32.xlu0 %v2259_v53, %s3008_s13  ;;  %v2464_v53 = vmul.f32 %v4173_v19, %v4202_v51 }
 0x5e2   : > { %2992 = vset.pattern.permute.xlu1 %v4594_v37  ;;  %v2272_v27 = vpop.permute.xlu1 %2271  ;;  %v2238_v37 = vmul.f32 %v2232_v41, %v4100_v48 }
 0x5e3   : > { %2685 = vperm.xlu1 %2992, %v4618_v15   ;;  %v2278_v25 = vmul.f32 %v2272_v27, %v4118_v32 }
 0x5e4   : > { %2284 = vrot.lane.b32.xlu0 %v2279_v63, %s3008_s13 }
 0x5e7   : > { %v2292_v7 = vpop.permute.xlu1 %2291  ;;  %2197 = vrot.lane.b32.xlu1 %v2193_v38, %s3008_s13 }
 0x5e8   : > { %2993 = vset.pattern.permute.xlu1 %v4562_v22  ;;  %v2339_v22 = vmul.f32 %v4115_v8, %v4143_v55  ;;  %v2298_v45 = vmul.f32 %v2292_v7, %v4127_v16  ;;  %v4324_v8 = vpop.permute.xlu0 %2681 }
 0x5eb   : > { %v2296_v23 = vpop.permute.xlu1 %2295  ;;  %2222 = vrot.lane.b32.xlu1 %v2218_v42, %s3008_s13  ;;  %v4621_v42 = vld [vmem:[#allocation38_spill] sm:$0xff] }
 0x5ec   : > { %v2299_v13 = vmul.f32 %v2296_v23, %v4127_v16  ;;  %v2376_v15 = vpop.permute.xlu0 %2375  ;;  %v2503_v23 = vmul.f32 %v4621_v42, %v4221_v5 }
 0x5ee   : > { %2304 = vrot.lane.b32.xlu0 %v2299_v13, %s3008_s13 }
 0x5ef   : > { %2242 = vrot.lane.b32.xlu1 %v2238_v37, %s3008_s13 }
 0x5f0   : > { %v2316_v20 = vpop.permute.xlu1 %2315 }
 0x5f1   : > { %v2319_v4 = vmul.f32 %v2316_v20, %v4135_v58  ;;  %v4619_v58 = vld [vmem:[#allocation39_spill] sm:$0xff]  ;;  %v2524_v20 = vmul.f32 %v2521_v6, %v4230_v28 }
 0x5f2   : > { %v2404_v31 = vmul.f32 %v4619_v58, %v4166_v3 }
 0x5f3   : > { %2324 = vrot.lane.b32.xlu0 %v2319_v4, %s3008_s13  ;;  %2262 = vrot.lane.b32.xlu1 %v2258_v9, %s3008_s13 }
 0x5f5   : > { %v2332_v48 = vpop.permute.xlu1 %2331 }
 0x5f6   : > { %v2338_v32 = vmul.f32 %v2332_v48, %v4143_v55  ;;  %v2383_v55 = vmul.f32 %v2376_v15, %v4158_v30 }
 0x5f7   : > { %2344 = vrot.lane.b32.xlu0 %v2339_v22, %s3008_s13  ;;  %2282 = vrot.lane.b32.xlu1 %v2278_v25, %s3008_s13 }
 0x5fa   : > { %v2352_v50 = vpop.permute.xlu1 %2351 }
 0x5fb   : > { %2302 = vrot.lane.b32.xlu1 %v2298_v45, %s3008_s13  ;;  %v2358_v12 = vmul.f32 %v2352_v50, %v4149_v35  ;;  %v4622_v45 = vld [vmem:[#allocation40_spill] sm:$0xff] }
 0x5fc   : > { %v2568_v50 = vmul.f32 %v4622_v45, %v3873_v49  ;;  %v4627_v45 = vld [vmem:[#allocation18_spill] sm:$0xff] }
 0x5fe   : > { %v2356_v36 = vpop.permute.xlu1 %2355 }
 0x5ff   : > { %v2359_v44 = vmul.f32 %v2356_v36, %v4149_v35  ;;  %2322 = vrot.lane.b32.xlu1 %v2318_v11, %s3008_s13 }
 0x601   : > { %2364 = vrot.lane.b32.xlu0 %v2359_v44, %s3008_s13  ;;  %v2589_v44 = vmul.f32 %v4162_v60, %v3902_v0 }
 0x603   : > { %v2381_v33 = vpop.permute.xlu1 %2380  ;;  %2342 = vrot.lane.b32.xlu1 %v2338_v32, %s3008_s13 }
 0x604   : > { %v2384_v16 = vmul.f32 %v2381_v33, %v4158_v30  ;;  %v4620_v30 = vld [vmem:[#allocation37_spill] sm:$0xff] }
 0x605   : > { %v2443_v21 = vmul.f32 %v4620_v30, %v4192_v29 }
 0x606   : > { %2389 = vrot.lane.b32.xlu0 %v2384_v16, %s3008_s13 }
 0x607   : > { %2362 = vrot.lane.b32.xlu1 %v2358_v12, %s3008_s13 }
 0x608   : > { %v2397_v62 = vpop.permute.xlu1 %2396 }
 0x609   : > { %v2403_v2 = vmul.f32 %v2397_v62, %v4166_v3  ;;  %v2649_v62 = vmul.f32 %v4209_v10, %v3965_v52 }
 0x60a   : > { %2409 = vrot.lane.b32.xlu0 %v2404_v31, %s3008_s13 }
 0x60b   : > { %2387 = vrot.lane.b32.xlu1 %v2383_v55, %s3008_s13 }
 0x60d   : > { %v2417_v17 = vpop.permute.xlu1 %2416 }
 0x60e   : > { %v2423_v35 = vmul.f32 %v2417_v17, %v4181_v56  ;;  %v2688_v17 = vmul.f32 %v4324_v8, %v4088_v24 }
 0x60f   : > { %2407 = vrot.lane.b32.xlu1 %v2403_v2, %s3008_s13 }
 0x611   : > { %v2421_v57 = vpop.permute.xlu1 %2420 }
 0x612   : > { %v2424_v41 = vmul.f32 %v2421_v57, %v4181_v56 }
 0x613   : > { %2427 = vrot.lane.b32.xlu1 %v2423_v35, %s3008_s13 }
 0x614   : > { %2429 = vrot.lane.b32.xlu0 %v2424_v41, %s3008_s13 }
 0x616   : > { %v2441_v40 = vpop.permute.xlu1 %2440 }
 0x617   : > { %v2444_v61 = vmul.f32 %v2441_v40, %v4192_v29  ;;  %2447 = vrot.lane.b32.xlu1 %v2443_v21, %s3008_s13 }
 0x619   : > { %2449 = vrot.lane.b32.xlu0 %v2444_v61, %s3008_s13 }
 0x61b   : > { %v2457_v63 = vpop.permute.xlu1 %2456 }
 0x61c   : > { %v2463_v1 = vmul.f32 %v2457_v63, %v4202_v51 }
 0x61d   : > { %2469 = vrot.lane.b32.xlu0 %v2464_v53, %s3008_s13  ;;  %v4623_v53 = vld [vmem:[#allocation7_spill] sm:$0xff] }
 0x61e   : > { %2467 = vrot.lane.b32.xlu1 %v2463_v1, %s3008_s13  ;;  %v1940_v63 = vmul.f32 %v4166_v3, %v4623_v53 }
 0x620   : > { %v2477_v27 = vpop.permute.xlu1 %2476 }
 0x621   : > { %v2483_v38 = vmul.f32 %v2477_v27, %v4212_v14 }
 0x623   : > { %2487 = vrot.lane.b32.xlu1 %v2483_v38, %s3008_s13  ;;  %v4624_v38 = vld [vmem:[#allocation20_spill] sm:$0xff] }
 0x624   : > { %v2481_v7 = vpop.permute.xlu1 %2480 }
 0x625   : > { %v2484_v13 = vmul.f32 %v2481_v7, %v4212_v14  ;;  %v1956_v7 = vmul.f32 %v4181_v56, %v4624_v38 }
 0x627   : > { %2489 = vrot.lane.b32.xlu0 %v2484_v13, %s3008_s13  ;;  %2507 = vrot.lane.b32.xlu1 %v2503_v23, %s3008_s13 }
 0x629   : > { %v2501_v19 = vpop.permute.xlu1 %2500 }
 0x62a   : > { %v2504_v37 = vmul.f32 %v2501_v19, %v4221_v5  ;;  %v4625_v19 = vld [vmem:[#allocation15_spill] sm:$0xff] }
 0x62c   : > { %2509 = vrot.lane.b32.xlu0 %v2504_v37, %s3008_s13  ;;  %v1972_v37 = vmul.f32 %v4192_v29, %v4625_v19 }
 0x62e   : > { %v2517_v9 = vpop.permute.xlu1 %2516 }
 0x62f   : > { %v2523_v4 = vmul.f32 %v2517_v9, %v4230_v28 }
 0x630   : > { %2529 = vrot.lane.b32.xlu0 %v2524_v20, %s3008_s13 }
 0x631   : > { %2527 = vrot.lane.b32.xlu1 %v2523_v4, %s3008_s13 }
 0x633   : > { %v2541_v22 = vpop.permute.xlu1 %2540 }
 0x634   : > { %v2548_v25 = vmul.f32 %v2541_v22, %v3849_v34  ;;  %v4626_v22 = vld [vmem:[#allocation14_spill] sm:$0xff] }
 0x635   : > { %v1988_v3 = vmul.f32 %v4202_v51, %v4626_v22 }
 0x636   : > { %2552 = vrot.lane.b32.xlu1 %v2548_v25, %s3013_s22 }
 0x637   : > { %v2546_v48 = vpop.permute.xlu1 %2545 }
 0x638   : > { %v2549_v11 = vmul.f32 %v2546_v48, %v3849_v34 }
 0x63a   : > { %2554 = vrot.lane.b32.xlu0 %v2549_v11, %s3013_s22  ;;  %2572 = vrot.lane.b32.xlu1 %v2568_v50, %s3013_s22 }
 0x63c   : > { %v2566_v6 = vpop.permute.xlu1 %2565 }
 0x63d   : > { %v2569_v36 = vmul.f32 %v2566_v6, %v3873_v49  ;;  %v2628_v49 = vmul.f32 %v4183_v39, %v3935_v43  ;;  %v334_v39 = vld [vmem:[%s4474_s6 + $0x8] sm:$0xff] }
 0x63e   : > { %v4628_v6 = vld [vmem:[#allocation35_spill] sm:$0xff] }
 0x63f   : > { %2574 = vrot.lane.b32.xlu0 %v2569_v36, %s3013_s22  ;;  %v4408_v57 = vpop.permute.xlu0 %2199  ;;  %v2020_v36 = vmul.f32 %v4221_v5, %v4628_v6 }
 0x641   : > { %v2582_v32 = vpop.permute.xlu1 %2581 }
 0x642   : > { %v2588_v33 = vmul.f32 %v2582_v32, %v3902_v0  ;;  %v333_v0 = vld [vmem:[%s4474_s6] sm:$0xff] }
 0x643   : > { %2594 = vrot.lane.b32.xlu0 %v2589_v44, %s3013_s22  ;;  %v4412_v30 = vpop.permute.xlu0 %2224 }
 0x644   : > { %2592 = vrot.lane.b32.xlu1 %v2588_v33, %s3013_s22  ;;  %v4629_v33 = vld [vmem:[#allocation13_spill] sm:$0xff] }
 0x646   : > { %v2602_v34 = vpop.permute.xlu1 %2601 }
 0x647   : > { %v2608_v16 = vmul.f32 %v2602_v34, %v3914_v26  ;;  %v2036_v34 = vmul.f32 %v4230_v28, %v4629_v33  ;;  %v4635_v28 = vld [vmem:[#allocation27_spill] sm:$0xff] }
 0x649   : > { %2612 = vrot.lane.b32.xlu1 %v2608_v16, %s3013_s22 }
 0x64a   : > { %v2606_v12 = vpop.permute.xlu1 %2605 }
 0x64b   : > { %v2609_v15 = vmul.f32 %v2606_v12, %v3914_v26 }
 0x64d   : > { %2614 = vrot.lane.b32.xlu0 %v2609_v15, %s3013_s22  ;;  %2632 = vrot.lane.b32.xlu1 %v2628_v49, %s3013_s22  ;;  %v4414_v40 = vpop.permute.xlu0 %2244  ;;  %v4630_v15 = vld [vmem:[#allocation10_spill] sm:$0xff] }
 0x64f   : > { %v2626_v60 = vpop.permute.xlu1 %2625 }
 0x650   : > { %v2629_v58 = vmul.f32 %v2626_v60, %v3935_v43 }
 0x651   : > { %2702 = vperm.xlu1 %2993, %v333_v0  }
 0x652   : > { %2634 = vrot.lane.b32.xlu0 %v2629_v58, %s3013_s22  ;;  %v4416_v61 = vpop.permute.xlu0 %2264 }
 0x654   : > { %v2642_v31 = vpop.permute.xlu1 %2641 }
 0x655   : > { %v2648_v26 = vmul.f32 %v2642_v31, %v3965_v52  ;;  %v4632_v31 = vld [vmem:[#allocation12_spill] sm:$0xff] }
 0x656   : > { %2707 = vperm.xlu0 %2991, %v334_v39   ;;  %v4420_v27 = vpop.permute.xlu0 %2284 }
 0x657   : > { %2652 = vrot.lane.b32.xlu1 %v2648_v26, %s3013_s22  ;;  %v2064_v26 = vadd.f32 %v4632_v31, %v4238_v18  ;;  %v4640_v18 = vld [vmem:[#allocation31_spill] sm:$0xff] }
 0x659   : > { %v2662_v55 = vpop.permute.xlu1 %2661 }
 0x65a   : > { %v2668_v2 = vmul.f32 %v2662_v55, %v3986_v59 }
 0x65b   : > { %2654 = vrot.lane.b32.xlu1 %v2649_v62, %s3013_s22  ;;  %v4633_v62 = vld [vmem:[#allocation5_spill] sm:$0xff] }
 0x65c   : > { %2672 = vrot.lane.b32.xlu0 %v2668_v2, %s3013_s22  ;;  %v4634_v2 = vld [vmem:[#allocation6_spill] sm:$0xff] }
 0x65d   : > { %v2666_v43 = vpop.permute.xlu1 %2665 }
 0x65e   : > { %v2669_v35 = vmul.f32 %v2666_v43, %v3986_v59  ;;  %v2084_v43 = vadd.f32 %v4634_v2, %v2064_v26 }
 0x660   : > { %2692 = vrot.lane.b32.xlu0 %v2688_v17, %s3013_s22  ;;  %2674 = vrot.lane.b32.xlu1 %v2669_v35, %s3013_s22  ;;  %v2305_v23 = vpop.permute.xlu0 %2304 }
 0x662   : > { %v2686_v52 = vpop.permute.xlu1 %2685 }
 0x663   : > { %v2689_v10 = vmul.f32 %v2686_v52, %v4088_v24  ;;  %v1942_v24 = vadd.f32 %v1940_v63, %v4257_v47  ;;  %v2004_v47 = vmul.f32 %v4212_v14, %v4627_v45  ;;  %v4631_v14 = vld [vmem:[#allocation11_spill] sm:$0xff]  ;;  %v4636_v52 = vld [vmem:[#allocation26_spill] sm:$0xff] }
 0x664   : > { %v4637_v63 = vld [vmem:[#allocation30_spill] sm:$0xff] }
 0x665   : > { %2694 = vrot.lane.b32.xlu1 %v2689_v10, %s3013_s22  ;;  %v1958_v13 = vadd.f32 %v1956_v7, %v1942_v24  ;;  %v2325_v4 = vpop.permute.xlu0 %2324  ;;  %v2104_v10 = vadd.f32 %v4636_v52, %v2084_v43  ;;  %v4638_v7 = vld [vmem:[#allocation28_spill] sm:$0xff] }
 0x666   : > { %v2198_v41 = vpop.permute.xlu1 %2197 }
 0x667   : > { %v1974_v9 = vadd.f32 %v1972_v37, %v1958_v13  ;;  %v2124_v13 = vadd.f32 %v4638_v7, %v2104_v10  ;;  %v4639_v37 = vld [vmem:[#allocation32_spill] sm:$0xff] }
 0x669   : > { %v1990_v48 = vadd.f32 %v1988_v3, %v1974_v9  ;;  %v2345_v11 = vpop.permute.xlu0 %2344  ;;  %v2144_v22 = vadd.f32 %v4640_v18, %v2124_v13 }
 0x66a   : > { %v2223_v21 = vpop.permute.xlu1 %2222 }
 0x66b   : > { %v2006_v56 = vadd.f32 %v2004_v47, %v1990_v48  ;;  %v4641_v47 = vld [vmem:[#allocation36_spill] sm:$0xff] }
 0x66d   : > { %v2022_v29 = vadd.f32 %v2020_v36, %v2006_v56  ;;  %v2164_v56 = vadd.f32 %v4641_v47, %v2144_v22 }
 0x66e   : > { %v2243_v8 = vpop.permute.xlu1 %2242 }
 0x66f   : > { %v2038_v12 = vadd.f32 %v2036_v34, %v2022_v29  ;;  %v2184_v36 = vadd.f32 %v4273_v46, %v2164_v56 }
 0x671   : > { %v2063_v0 = vadd.f32 %v4630_v15, %v2038_v12  ;;  %v2204_v34 = vadd.f32 %v4408_v57, %v2184_v36 }
 0x672   : > { %v2263_v59 = vpop.permute.xlu1 %2262 }
 0x673   : > { %v2365_v32 = vpop.permute.xlu0 %2364  ;;  %v2083_v58 = vadd.f32 %v4631_v14, %v2063_v0  ;;  %v2229_v0 = vadd.f32 %v4412_v30, %v2204_v34 }
 0x675   : > { %v2103_v55 = vadd.f32 %v4633_v62, %v2083_v58  ;;  %v2249_v58 = vadd.f32 %v4414_v40, %v2229_v0 }
 0x676   : > { %v2283_v1 = vpop.permute.xlu1 %2282 }
 0x677   : > { %v2123_v35 = vadd.f32 %v4635_v28, %v2103_v55 }
 0x678   : > { %v2390_v51 = vpop.permute.xlu0 %2389 }
 0x679   : > { %v2143_v24 = vadd.f32 %v4637_v63, %v2123_v35 }
 0x67a   : > { %v2303_v42 = vpop.permute.xlu1 %2302 }
 0x67b   : > { %v2163_v9 = vadd.f32 %v4639_v37, %v2143_v24 }
 0x67c   : > { %v2410_v60 = vpop.permute.xlu0 %2409 }
 0x67d   : > { %v2183_v45 = vadd.f32 %v4270_v54, %v2163_v9  ;;  %v2269_v54 = vadd.f32 %v4416_v61, %v2249_v58  ;;  %v2714_v58 = vld [vmem:[%s4475_s7] sm:$0xff] }
 0x67e   : > { %v2323_v20 = vpop.permute.xlu1 %2322 }
 0x67f   : > { %v2203_v6 = vadd.f32 %v2198_v41, %v2183_v45  ;;  %v2289_v41 = vadd.f32 %v4420_v27, %v2269_v54  ;;  %v2715_v54 = vld [vmem:[%s4475_s7 + $0x8] sm:$0xff] }
 0x681   : > { %v2228_v29 = vadd.f32 %v2223_v21, %v2203_v6  ;;  %v2309_v21 = vadd.f32 %v2305_v23, %v2289_v41 }
 0x682   : > { %v2343_v25 = vpop.permute.xlu1 %2342 }
 0x683   : > { %v2248_v15 = vadd.f32 %v2243_v8, %v2228_v29  ;;  %v2329_v28 = vadd.f32 %v2325_v4, %v2309_v21 }
 0x685   : > { %v2268_v14 = vadd.f32 %v2263_v59, %v2248_v15  ;;  %v2349_v35 = vadd.f32 %v2345_v11, %v2329_v28 }
 0x686   : > { %v2363_v50 = vpop.permute.xlu1 %2362  ;;  %v2430_v5 = vpop.permute.xlu0 %2429 }
 0x687   : > { %v2288_v31 = vadd.f32 %v2283_v1, %v2268_v14  ;;  %v2369_v52 = vadd.f32 %v2365_v32, %v2349_v35 }
 0x689   : > { %v2308_v55 = vadd.f32 %v2303_v42, %v2288_v31  ;;  %v2394_v10 = vadd.f32 %v2390_v51, %v2369_v52  ;;  %v2732_v52 = vld [vmem:[#allocation4] sm:$0x1] }
 0x68a   : > { %v2388_v44 = vpop.permute.xlu1 %2387 }
 0x68b   : > { %v2450_v53 = vpop.permute.xlu0 %2449  ;;  %v2328_v46 = vadd.f32 %v2323_v20, %v2308_v55  ;;  %v2414_v61 = vadd.f32 %v2410_v60, %v2394_v10 }
 0x68d   : > { %v2348_v43 = vadd.f32 %v2343_v25, %v2328_v46  ;;  %v2434_v7 = vadd.f32 %v2430_v5, %v2414_v61 }
 0x68e   : > { %v2408_v16 = vpop.permute.xlu1 %2407 }
 0x68f   : > { %v2470_v19 = vpop.permute.xlu0 %2469  ;;  %v2368_v8 = vadd.f32 %v2363_v50, %v2348_v43  ;;  %v2454_v23 = vadd.f32 %v2450_v53, %v2434_v7 }
 0x691   : > { %v2393_v30 = vadd.f32 %v2388_v44, %v2368_v8  ;;  %v2474_v25 = vadd.f32 %v2470_v19, %v2454_v23 }
 0x692   : > { %v2428_v49 = vpop.permute.xlu1 %2427 }
 0x693   : > { %v2413_v1 = vadd.f32 %v2408_v16, %v2393_v30 }
 0x695   : > { %v2433_v63 = vadd.f32 %v2428_v49, %v2413_v1 }
 0x696   : > { %v2448_v39 = vpop.permute.xlu1 %2447 }
 0x697   : > { %v2453_v24 = vadd.f32 %v2448_v39, %v2433_v63 }
 0x699   : > { %v2490_v48 = vpop.permute.xlu0 %2489 }
 0x69a   : > { %v2468_v17 = vpop.permute.xlu1 %2467  ;;  %v2494_v11 = vadd.f32 %v2490_v48, %v2474_v25 }
 0x69b   : > { %v2473_v20 = vadd.f32 %v2468_v17, %v2453_v24 }
 0x69e   : > { %v2488_v38 = vpop.permute.xlu1 %2487  ;;  %v2510_v12 = vpop.permute.xlu0 %2509 }
 0x69f   : > { %v2493_v13 = vadd.f32 %v2488_v38, %v2473_v20  ;;  %v2514_v9 = vadd.f32 %v2510_v12, %v2494_v11 }
 0x6a2   : > { %v2508_v3 = vpop.permute.xlu1 %2507  ;;  %v2530_v62 = vpop.permute.xlu0 %2529 }
 0x6a3   : > { %v2513_v4 = vadd.f32 %v2508_v3, %v2493_v13  ;;  %v2534_v16 = vadd.f32 %v2530_v62, %v2514_v9 }
 0x6a6   : > { %v2528_v33 = vpop.permute.xlu1 %2527 }
 0x6a7   : > { %v2533_v44 = vadd.f32 %v2528_v33, %v2513_v4 }
 0x6aa   : > { %v2553_v26 = vpop.permute.xlu1 %2552 }
 0x6ab   : > { %v2558_v32 = vadd.f32 %v2553_v26, %v2533_v44 }
 0x6ac   : > { %v2555_v2 = vpop.permute.xlu0 %2554 }
 0x6ad   : > { %v2559_v60 = vadd.f32 %v2555_v2, %v2534_v16 }
 0x6ae   : > { %v2573_v57 = vpop.permute.xlu1 %2572 }
 0x6af   : > { %v2578_v49 = vadd.f32 %v2573_v57, %v2558_v32 }
 0x6b1   : > { %v2575_v40 = vpop.permute.xlu0 %2574 }
 0x6b2   : > { %v2579_v5 = vadd.f32 %v2575_v40, %v2559_v60 }
 0x6b5   : > { %v2595_v27 = vpop.permute.xlu0 %2594 }
 0x6b6   : > { %v2593_v59 = vpop.permute.xlu1 %2592  ;;  %v2599_v53 = vadd.f32 %v2595_v27, %v2579_v5 }
 0x6b7   : > { %v2598_v39 = vadd.f32 %v2593_v59, %v2578_v49 }
 0x6bb   : > { %v2613_v42 = vpop.permute.xlu1 %2612 }
 0x6bc   : > { %v2618_v17 = vadd.f32 %v2613_v42, %v2598_v39 }
 0x6bf   : > { %v2615_v37 = vpop.permute.xlu0 %2614  ;;  %v2633_v50 = vpop.permute.xlu1 %2632 }
 0x6c0   : > { %v2638_v38 = vadd.f32 %v2633_v50, %v2618_v17  ;;  %v2619_v47 = vadd.f32 %v2615_v37, %v2599_v53 }
 0x6c4   : > { %v2635_v51 = vpop.permute.xlu0 %2634 }
 0x6c5   : > { %v2639_v48 = vadd.f32 %v2635_v51, %v2619_v47 }
 0x6d0   : > { %v2703_v18 = vpop.permute.xlu1 %2702 }
 0x6d4   : > { %v2653_v22 = vpop.permute.xlu1 %2652 }
 0x6d5   : > { %v2708_v45 = vpop.permute.xlu0 %2707  ;;  %v2658_v56 = vadd.f32 %v2653_v22, %v2638_v38 }
 0x6d8   : > { %v2655_v19 = vpop.permute.xlu1 %2654 }
 0x6d9   : > { %v2673_v3 = vpop.permute.xlu0 %2672  ;;  %v2659_v29 = vadd.f32 %v2655_v19, %v2639_v48 }
 0x6da   : > { %v2678_v6 = vadd.f32 %v2673_v3, %v2658_v56 }
 0x6dc   : > { %v2675_v36 = vpop.permute.xlu1 %2674 }
 0x6dd   : > { %v2693_v33 = vpop.permute.xlu0 %2692  ;;  %v2679_v12 = vadd.f32 %v2675_v36, %v2659_v29 }
 0x6de   : > { %v2698_v34 = vadd.f32 %v2693_v33, %v2678_v6 }
 0x6e0   : > { %v2710_v15 = vadd.f32 %v2703_v18, %v2698_v34  ;;  %v2695_v0 = vpop.permute.xlu1 %2694 }
 0x6e1   : > { %v2699_v14 = vadd.f32 %v2695_v0, %v2679_v12 }
 0x6e2   : > { %v2712_v31 = vmax.f32 %v2710_v15, 0.0 }
 0x6e3   : > { %v2711_v26 = vadd.f32 %v2708_v45, %v2699_v14 }
 0x6e4   : > { %v2716_v62 = vmul.f32 %v2714_v58, %v2712_v31 }
 0x6e5   : > { %v2713_v55 = vmax.f32 %v2711_v26, 0.0 }
 0x6e6   : > { %v2719_v46 = vsel %vm2718_vm2, %v2716_v62, 0.0 }
 0x6e7   : > { %v2717_v41 = vmul.f32 %v2715_v54, %v2713_v55 }
 0x6e9   : > { %v2720_v21 = vsel %vm2718_vm2, %v2717_v41, 0.0 }
 0x6ea   : > { %v2721_v2 = vadd.f32 %v2720_v21, %v2719_v46 }
 0x6ec   : > { %2722 = vadd.xlane.f32.xlu0 %v2721_v2 }
 0x779   : > { %v2723_v43 = vpop.xlane.xlu0 %2722 }
 0x77a   : > { %v2724_v57 = vrot.slane %v2723_v43, 4 }
 0x77c   : > { %v2725_v28 = vadd.f32 %v2724_v57, %v2723_v43 }
 0x77e   : > { %v2726_v8 = vrot.slane %v2725_v28, 2 }
 0x780   : > { %v2727_v35 = vadd.f32 %v2726_v8, %v2725_v28 }
 0x782   : > { %v2728_v30 = vrot.slane %v2727_v35, 1 }
 0x784   : > { %v2729_v59 = vadd.f32 %v2728_v30, %v2727_v35 }
 0x786   : > { %2880 = vpush %v2729_v59 }
 0x7b7   : > { %s2881_s30 = spop %2880 }
 0x7b8   : > { %v2731_v40 = vstv %s2881_s30 }
 0x7b9   : > { %v2733_v1 = vadd.f32 %v2732_v52, %v2731_v40 }
 0x7bb   : > { %2735 = vst.msk [vmem:[%s330_s8] sm:$0x1] %vm2734_vm3, %v2733_v1 }
 0x7bc PF: > { %s21_s11 = sadd.s32 1, %s3002_s11  }
 0x7bd   : > { %p18_p4 = scmp.ge.s32.totalorder %s21_s11, 4  }
 0x7bf   :  { %20 = sbr.rel (!%p18_p4) target bundleno = 3 (0x3), region = 114 }

</bundles_post_ra>
